<compile_context>
chip_gen: v6e
topology: v6e:2x2x1
jax: 0.10.0
libtpu: 0.0.40
codegen_flags: <defaults>
</compile_context>

<pallas_src>
import functools

import jax
import jax.numpy as jnp
from jax.experimental import pallas as pl
from jax.experimental.pallas import tpu as pltpu


# ---------------------------------------------------------------------------
# Problem sizes (small, consistent with the module's forward).
# ---------------------------------------------------------------------------
B = 8            # batch
C = 4            # input_channels
H = 32           # hidden_channels
WD = 128         # hidden_width
O = 4            # output_channels
L = 8            # spline length (=> L-1 = 7 cubic pieces, interval [0, 7])
STEPS_PER_UNIT = 4
N_STEPS = (L - 1) * STEPS_PER_UNIT       # 28 RK4 steps
DT = float(L - 1) / N_STEPS              # 0.25
UNROLL = 4
assert N_STEPS % UNROLL == 0


# ---------------------------------------------------------------------------
# Pallas kernel: full RK4 time integration in one invocation.
# ---------------------------------------------------------------------------
def _cde_kernel(dxdt_ref, z0_ref,
                w1_ref, b1_ref, w2_ref, b2_ref,
                wr_ref, br_ref, s_ref,
                out_ref, *, dt, n_steps, unroll):
    # Load loop-invariant weights once.
    w1 = w1_ref[...]
    b1 = b1_ref[...]
    w2 = w2_ref[...]
    b2 = b2_ref[...]
    s_mat = s_ref[...]

    def vector_field(z, dxdt_tiled):
        # CDEFunc: linear1 -> relu -> linear2 -> tanh, then contract with dX/dt.
        h1 = jnp.maximum(
            jnp.dot(z, w1, preferred_element_type=jnp.float32) + b1, 0.0)
        f_flat = jnp.tanh(
            jnp.dot(h1, w2, preferred_element_type=jnp.float32) + b2)
        # f_flat is (B, H*C) with flat index j = h*C + c (torch .view(B, H, C));
        # dxdt_tiled already has dX/dt[b, c] replicated into lane j = h*C + c.
        # dz[b, h] = sum_c f[b, h*C+c] * dxdt[b, c]   via (H*C, H) reduce matrix.
        return jnp.dot(f_flat * dxdt_tiled, s_mat,
                       preferred_element_type=jnp.float32)

    def rk4_step(step, z):
        base = 3 * step
        d0 = dxdt_ref[base]        # dX/dt at t          (B, H*C)
        dm = dxdt_ref[base + 1]    # dX/dt at t + dt/2
        d1 = dxdt_ref[base + 2]    # dX/dt at t + dt
        k1 = vector_field(z, d0)
        k2 = vector_field(z + 0.5 * dt * k1, dm)
        k3 = vector_field(z + 0.5 * dt * k2, dm)
        k4 = vector_field(z + dt * k3, d1)
        return z + (dt / 6.0) * (k1 + 2.0 * k2 + 2.0 * k3 + k4)

    def unrolled_body(i, z):
        base_step = i * unroll
        for u in range(unroll):    # static x4 unroll inside the fori body
            z = rk4_step(base_step + u, z)
        return z

    z_final = jax.lax.fori_loop(0, n_steps // unroll, unrolled_body, z0_ref[...])

    # Readout exactly once, after the final RK4 step.
    out_ref[...] = (
        jnp.dot(z_final, wr_ref[...], preferred_element_type=jnp.float32)
        + br_ref[...]
    )


def neural_cde_forward(coeffs, params):
    """coeffs: (B, L-1, 4*C) float32 cubic-spline coefficients."""
    coeffs = coeffs.astype(jnp.float32)
    n_pieces = coeffs.shape[1]
    a = coeffs[..., :C]
    b = coeffs[..., C:2 * C]
    two_c = coeffs[..., 2 * C:3 * C]
    three_d = coeffs[..., 3 * C:]

    # X0 = X.evaluate(interval[0] = 0) -> piece 0, frac 0 -> a[:, 0, :]
    x0 = a[:, 0, :]
    # z0 = initial(X0) : one tiny matmul, done in XLA (keeps kernel lean).
    z0 = jnp.dot(x0, params["wi"]) + params["bi"]                    # (B, H)

    # Spline derivative dX/dt at all RK4 stage times (glue, computed in XLA).
    grid_t = jnp.arange(n_pieces + 1, dtype=jnp.float32)
    step_t = jnp.arange(N_STEPS, dtype=jnp.float32) * DT             # (N,)
    stage_t = (step_t[:, None]
               + jnp.array([0.0, 0.5 * DT, DT], jnp.float32)[None, :])   # (N, 3)
    ts = stage_t.reshape(-1)                                          # (3N,)
    idx = jnp.clip(jnp.searchsorted(grid_t, ts, side="left") - 1, 0, n_pieces - 1)
    frac = (ts - grid_t[idx])[None, :, None]                          # (1, 3N, 1)
    deriv = b[:, idx, :] + (two_c[:, idx, :] + three_d[:, idx, :] * frac) * frac
    # (B, 3N, C) -> (3N, B, C)
    dxdt = jnp.transpose(deriv, (1, 0, 2))

    # Hoisted lane-tiling: replicate dX/dt[b, c] into lane j = h*C + c so the
    # in-kernel contraction is a single elementwise multiply + reduce matmul.
    hc = jnp.arange(H * C)
    t_mat = (hc[None, :] % C == jnp.arange(C)[:, None]).astype(jnp.float32)   # (C, H*C)
    s_mat = (hc[:, None] // C == jnp.arange(H)[None, :]).astype(jnp.float32)  # (H*C, H)
    dxdt_tiled = jnp.dot(dxdt.reshape(3 * N_STEPS * B, C), t_mat)
    dxdt_tiled = dxdt_tiled.reshape(3 * N_STEPS, B, H * C)            # lane-dense (…, 128)

    kernel = functools.partial(_cde_kernel, dt=DT, n_steps=N_STEPS, unroll=UNROLL)
    vmem = lambda: pl.BlockSpec(memory_space=pltpu.MemorySpace.VMEM)

    out = pl.pallas_call(
        kernel,
        out_shape=jax.ShapeDtypeStruct((B, O), jnp.float32),
        in_specs=[vmem() for _ in range(9)],
        out_specs=vmem(),
    )(
        dxdt_tiled, z0,
        params["w1"], params["b1"], params["w2"], params["b2"],
        params["wr"], params["br"], s_mat,
    )
    return out


# ---------------------------------------------------------------------------
# Deterministic parameter init (PyTorch nn.Linear-style uniform).
# ---------------------------------------------------------------------------
def init_params(key):
    def linear(key, fan_in, fan_out):
        kw, kb = jax.random.split(key)
        bound = 1.0 / (fan_in ** 0.5)
        w = jax.random.uniform(kw, (fan_in, fan_out), jnp.float32, -bound, bound)
        b = jax.random.uniform(kb, (1, fan_out), jnp.float32, -bound, bound)
        return w, b

    k1, k2, k3, k4 = jax.random.split(key, 4)
    w1, b1 = linear(k1, H, WD)          # CDEFunc.linear1
    w2, b2 = linear(k2, WD, C * H)      # CDEFunc.linear2
    wi, bi = linear(k3, C, H)           # initial
    wr, br = linear(k4, H, O)           # readout
    return dict(w1=w1, b1=b1, w2=w2, b2=b2, wi=wi, bi=bi, wr=wr, br=br)


if __name__ == "__main__":
    key = jax.random.PRNGKey(0)
    k_coeffs, k_params = jax.random.split(key)
    # Synthetic cubic-spline coefficients (what torchcde would hand to forward).
    coeffs = 0.1 * jax.random.normal(k_coeffs, (B, L - 1, 4 * C), jnp.float32)
    params = init_params(k_params)

    pred_y = jax.jit(neural_cde_forward)(coeffs, params)
    pred_y = jax.block_until_ready(pred_y)

    assert pred_y.shape == (B, O)
    assert bool(jnp.all(jnp.isfinite(pred_y)))
    print("KERNEL_OK")
</pallas_src>

<mosaic_0001>
module attributes {stable_mosaic.version = 11 : i64} {
  func.func @_cde_kernel(%arg0: memref<84x8x128xf32, #tpu.memory_space<vmem>>, %arg1: memref<8x32xf32, #tpu.memory_space<vmem>>, %arg2: memref<32x128xf32, #tpu.memory_space<vmem>>, %arg3: memref<1x128xf32, #tpu.memory_space<vmem>>, %arg4: memref<128x128xf32, #tpu.memory_space<vmem>>, %arg5: memref<1x128xf32, #tpu.memory_space<vmem>>, %arg6: memref<32x4xf32, #tpu.memory_space<vmem>>, %arg7: memref<1x4xf32, #tpu.memory_space<vmem>>, %arg8: memref<128x32xf32, #tpu.memory_space<vmem>>, %arg9: memref<8x4xf32, #tpu.memory_space<vmem>>) attributes {dimension_semantics = [], scalar_prefetch = 0 : i64, scratch_operands = 0 : i64, tpu.core_type = #tpu.core_type<tc>} {
    %c0 = arith.constant 0 : index
    %c0_0 = arith.constant 0 : index
    %0 = vector.load %arg2[%c0, %c0_0] : memref<32x128xf32, #tpu.memory_space<vmem>>, vector<32x128xf32>
    %c0_1 = arith.constant 0 : index
    %c0_2 = arith.constant 0 : index
    %1 = vector.load %arg3[%c0_1, %c0_2] : memref<1x128xf32, #tpu.memory_space<vmem>>, vector<1x128xf32>
    %c0_3 = arith.constant 0 : index
    %c0_4 = arith.constant 0 : index
    %2 = vector.load %arg4[%c0_3, %c0_4] : memref<128x128xf32, #tpu.memory_space<vmem>>, vector<128x128xf32>
    %c0_5 = arith.constant 0 : index
    %c0_6 = arith.constant 0 : index
    %3 = vector.load %arg5[%c0_5, %c0_6] : memref<1x128xf32, #tpu.memory_space<vmem>>, vector<1x128xf32>
    %c0_7 = arith.constant 0 : index
    %c0_8 = arith.constant 0 : index
    %4 = vector.load %arg8[%c0_7, %c0_8] : memref<128x32xf32, #tpu.memory_space<vmem>>, vector<128x32xf32>
    %c0_9 = arith.constant 0 : index
    %c0_10 = arith.constant 0 : index
    %5 = vector.load %arg1[%c0_9, %c0_10] : memref<8x32xf32, #tpu.memory_space<vmem>>, vector<8x32xf32>
    %c0_i32 = arith.constant 0 : i32
    %c7_i32 = arith.constant 7 : i32
    %6 = arith.addi %c0_i32, %c7_i32 : i32
    %c1_i32 = arith.constant 1 : i32
    %7 = scf.for %arg10 = %c0_i32 to %6 step %c1_i32 iter_args(%arg11 = %5) -> (vector<8x32xf32>)  : i32 {
      %c4_i32 = arith.constant 4 : i32
      %14 = arith.muli %arg10, %c4_i32 : i32
      %c0_i32_18 = arith.constant 0 : i32
      %15 = arith.addi %14, %c0_i32_18 : i32
      %c3_i32 = arith.constant 3 : i32
      %16 = arith.muli %c3_i32, %15 : i32
      %17 = arith.index_cast %16 : i32 to index
      %c0_19 = arith.constant 0 : index
      %c0_20 = arith.constant 0 : index
      %18 = vector.load %arg0[%17, %c0_19, %c0_20] : memref<84x8x128xf32, #tpu.memory_space<vmem>>, vector<1x8x128xf32>
      %19 = vector.shape_cast %18 : vector<1x8x128xf32> to vector<8x128xf32>
      %c1_i32_21 = arith.constant 1 : i32
      %20 = arith.addi %16, %c1_i32_21 : i32
      %21 = arith.index_cast %20 : i32 to index
      %c0_22 = arith.constant 0 : index
      %c0_23 = arith.constant 0 : index
      %22 = vector.load %arg0[%21, %c0_22, %c0_23] : memref<84x8x128xf32, #tpu.memory_space<vmem>>, vector<1x8x128xf32>
      %23 = vector.shape_cast %22 : vector<1x8x128xf32> to vector<8x128xf32>
      %c2_i32 = arith.constant 2 : i32
      %24 = arith.addi %16, %c2_i32 : i32
      %25 = arith.index_cast %24 : i32 to index
      %c0_24 = arith.constant 0 : index
      %c0_25 = arith.constant 0 : index
      %26 = vector.load %arg0[%25, %c0_24, %c0_25] : memref<84x8x128xf32, #tpu.memory_space<vmem>>, vector<1x8x128xf32>
      %27 = vector.shape_cast %26 : vector<1x8x128xf32> to vector<8x128xf32>
      %cst_26 = arith.constant dense<0.000000e+00> : vector<8x128xf32>
      %28 = tpu.matmul %arg11, %0, %cst_26 {dimension_numbers = #tpu.dot_dimension_numbers<[1], [0], [0], [1], [0, 0, 1, 1], [], []>} : vector<8x32xf32>, vector<32x128xf32>, vector<8x128xf32> -> vector<8x128xf32>
      %29 = vector.broadcast %1 : vector<1x128xf32> to vector<8x128xf32>
      %30 = arith.addf %28, %29 : vector<8x128xf32>
      %cst_27 = arith.constant 0.000000e+00 : f32
      %31 = vector.broadcast %cst_27 : f32 to vector<8x128xf32>
      %32 = arith.maximumf %30, %31 : vector<8x128xf32>
      %cst_28 = arith.constant dense<0.000000e+00> : vector<8x128xf32>
      %33 = tpu.matmul %32, %2, %cst_28 {dimension_numbers = #tpu.dot_dimension_numbers<[1], [0], [0], [1], [0, 0, 1, 1], [], []>} : vector<8x128xf32>, vector<128x128xf32>, vector<8x128xf32> -> vector<8x128xf32>
      %34 = vector.broadcast %3 : vector<1x128xf32> to vector<8x128xf32>
      %35 = arith.addf %33, %34 : vector<8x128xf32>
      %36 = math.tanh %35 : vector<8x128xf32>
      %37 = arith.mulf %36, %19 : vector<8x128xf32>
      %cst_29 = arith.constant dense<0.000000e+00> : vector<8x32xf32>
      %38 = tpu.matmul %37, %4, %cst_29 {dimension_numbers = #tpu.dot_dimension_numbers<[1], [0], [0], [1], [0, 0, 1, 1], [], []>} : vector<8x128xf32>, vector<128x32xf32>, vector<8x32xf32> -> vector<8x32xf32>
      %cst_30 = arith.constant 1.250000e-01 : f32
      %39 = vector.broadcast %cst_30 : f32 to vector<8x32xf32>
      %40 = arith.mulf %39, %38 : vector<8x32xf32>
      %41 = arith.addf %arg11, %40 : vector<8x32xf32>
      %cst_31 = arith.constant dense<0.000000e+00> : vector<8x128xf32>
      %42 = tpu.matmul %41, %0, %cst_31 {dimension_numbers = #tpu.dot_dimension_numbers<[1], [0], [0], [1], [0, 0, 1, 1], [], []>} : vector<8x32xf32>, vector<32x128xf32>, vector<8x128xf32> -> vector<8x128xf32>
      %43 = vector.broadcast %1 : vector<1x128xf32> to vector<8x128xf32>
      %44 = arith.addf %42, %43 : vector<8x128xf32>
      %cst_32 = arith.constant 0.000000e+00 : f32
      %45 = vector.broadcast %cst_32 : f32 to vector<8x128xf32>
      %46 = arith.maximumf %44, %45 : vector<8x128xf32>
      %cst_33 = arith.constant dense<0.000000e+00> : vector<8x128xf32>
      %47 = tpu.matmul %46, %2, %cst_33 {dimension_numbers = #tpu.dot_dimension_numbers<[1], [0], [0], [1], [0, 0, 1, 1], [], []>} : vector<8x128xf32>, vector<128x128xf32>, vector<8x128xf32> -> vector<8x128xf32>
      %48 = vector.broadcast %3 : vector<1x128xf32> to vector<8x128xf32>
      %49 = arith.addf %47, %48 : vector<8x128xf32>
      %50 = math.tanh %49 : vector<8x128xf32>
      %51 = arith.mulf %50, %23 : vector<8x128xf32>
      %cst_34 = arith.constant dense<0.000000e+00> : vector<8x32xf32>
      %52 = tpu.matmul %51, %4, %cst_34 {dimension_numbers = #tpu.dot_dimension_numbers<[1], [0], [0], [1], [0, 0, 1, 1], [], []>} : vector<8x128xf32>, vector<128x32xf32>, vector<8x32xf32> -> vector<8x32xf32>
      %cst_35 = arith.constant 1.250000e-01 : f32
      %53 = vector.broadcast %cst_35 : f32 to vector<8x32xf32>
      %54 = arith.mulf %53, %52 : vector<8x32xf32>
      %55 = arith.addf %arg11, %54 : vector<8x32xf32>
      %cst_36 = arith.constant dense<0.000000e+00> : vector<8x128xf32>
      %56 = tpu.matmul %55, %0, %cst_36 {dimension_numbers = #tpu.dot_dimension_numbers<[1], [0], [0], [1], [0, 0, 1, 1], [], []>} : vector<8x32xf32>, vector<32x128xf32>, vector<8x128xf32> -> vector<8x128xf32>
      %57 = vector.broadcast %1 : vector<1x128xf32> to vector<8x128xf32>
      %58 = arith.addf %56, %57 : vector<8x128xf32>
      %cst_37 = arith.constant 0.000000e+00 : f32
      %59 = vector.broadcast %cst_37 : f32 to vector<8x128xf32>
      %60 = arith.maximumf %58, %59 : vector<8x128xf32>
      %cst_38 = arith.constant dense<0.000000e+00> : vector<8x128xf32>
      %61 = tpu.matmul %60, %2, %cst_38 {dimension_numbers = #tpu.dot_dimension_numbers<[1], [0], [0], [1], [0, 0, 1, 1], [], []>} : vector<8x128xf32>, vector<128x128xf32>, vector<8x128xf32> -> vector<8x128xf32>
      %62 = vector.broadcast %3 : vector<1x128xf32> to vector<8x128xf32>
      %63 = arith.addf %61, %62 : vector<8x128xf32>
      %64 = math.tanh %63 : vector<8x128xf32>
      %65 = arith.mulf %64, %23 : vector<8x128xf32>
      %cst_39 = arith.constant dense<0.000000e+00> : vector<8x32xf32>
      %66 = tpu.matmul %65, %4, %cst_39 {dimension_numbers = #tpu.dot_dimension_numbers<[1], [0], [0], [1], [0, 0, 1, 1], [], []>} : vector<8x128xf32>, vector<128x32xf32>, vector<8x32xf32> -> vector<8x32xf32>
      %cst_40 = arith.constant 2.500000e-01 : f32
      %67 = vector.broadcast %cst_40 : f32 to vector<8x32xf32>
      %68 = arith.mulf %67, %66 : vector<8x32xf32>
      %69 = arith.addf %arg11, %68 : vector<8x32xf32>
      %cst_41 = arith.constant dense<0.000000e+00> : vector<8x128xf32>
      %70 = tpu.matmul %69, %0, %cst_41 {dimension_numbers = #tpu.dot_dimension_numbers<[1], [0], [0], [1], [0, 0, 1, 1], [], []>} : vector<8x32xf32>, vector<32x128xf32>, vector<8x128xf32> -> vector<8x128xf32>
      %71 = vector.broadcast %1 : vector<1x128xf32> to vector<8x128xf32>
      %72 = arith.addf %70, %71 : vector<8x128xf32>
      %cst_42 = arith.constant 0.000000e+00 : f32
      %73 = vector.broadcast %cst_42 : f32 to vector<8x128xf32>
      %74 = arith.maximumf %72, %73 : vector<8x128xf32>
      %cst_43 = arith.constant dense<0.000000e+00> : vector<8x128xf32>
      %75 = tpu.matmul %74, %2, %cst_43 {dimension_numbers = #tpu.dot_dimension_numbers<[1], [0], [0], [1], [0, 0, 1, 1], [], []>} : vector<8x128xf32>, vector<128x128xf32>, vector<8x128xf32> -> vector<8x128xf32>
      %76 = vector.broadcast %3 : vector<1x128xf32> to vector<8x128xf32>
      %77 = arith.addf %75, %76 : vector<8x128xf32>
      %78 = math.tanh %77 : vector<8x128xf32>
      %79 = arith.mulf %78, %27 : vector<8x128xf32>
      %cst_44 = arith.constant dense<0.000000e+00> : vector<8x32xf32>
      %80 = tpu.matmul %79, %4, %cst_44 {dimension_numbers = #tpu.dot_dimension_numbers<[1], [0], [0], [1], [0, 0, 1, 1], [], []>} : vector<8x128xf32>, vector<128x32xf32>, vector<8x32xf32> -> vector<8x32xf32>
      %cst_45 = arith.constant 2.000000e+00 : f32
      %81 = vector.broadcast %cst_45 : f32 to vector<8x32xf32>
      %82 = arith.mulf %81, %52 : vector<8x32xf32>
      %83 = arith.addf %38, %82 : vector<8x32xf32>
      %cst_46 = arith.constant 2.000000e+00 : f32
      %84 = vector.broadcast %cst_46 : f32 to vector<8x32xf32>
      %85 = arith.mulf %84, %66 : vector<8x32xf32>
      %86 = arith.addf %83, %85 : vector<8x32xf32>
      %87 = arith.addf %86, %80 : vector<8x32xf32>
      %cst_47 = arith.constant 0.0416666679 : f32
      %88 = vector.broadcast %cst_47 : f32 to vector<8x32xf32>
      %89 = arith.mulf %88, %87 : vector<8x32xf32>
      %90 = arith.addf %arg11, %89 : vector<8x32xf32>
      %c1_i32_48 = arith.constant 1 : i32
      %91 = arith.addi %14, %c1_i32_48 : i32
      %c3_i32_49 = arith.constant 3 : i32
      %92 = arith.muli %c3_i32_49, %91 : i32
      %93 = arith.index_cast %92 : i32 to index
      %c0_50 = arith.constant 0 : index
      %c0_51 = arith.constant 0 : index
      %94 = vector.load %arg0[%93, %c0_50, %c0_51] : memref<84x8x128xf32, #tpu.memory_space<vmem>>, vector<1x8x128xf32>
      %95 = vector.shape_cast %94 : vector<1x8x128xf32> to vector<8x128xf32>
      %c1_i32_52 = arith.constant 1 : i32
      %96 = arith.addi %92, %c1_i32_52 : i32
      %97 = arith.index_cast %96 : i32 to index
      %c0_53 = arith.constant 0 : index
      %c0_54 = arith.constant 0 : index
      %98 = vector.load %arg0[%97, %c0_53, %c0_54] : memref<84x8x128xf32, #tpu.memory_space<vmem>>, vector<1x8x128xf32>
      %99 = vector.shape_cast %98 : vector<1x8x128xf32> to vector<8x128xf32>
      %c2_i32_55 = arith.constant 2 : i32
      %100 = arith.addi %92, %c2_i32_55 : i32
      %101 = arith.index_cast %100 : i32 to index
      %c0_56 = arith.constant 0 : index
      %c0_57 = arith.constant 0 : index
      %102 = vector.load %arg0[%101, %c0_56, %c0_57] : memref<84x8x128xf32, #tpu.memory_space<vmem>>, vector<1x8x128xf32>
      %103 = vector.shape_cast %102 : vector<1x8x128xf32> to vector<8x128xf32>
      %cst_58 = arith.constant dense<0.000000e+00> : vector<8x128xf32>
      %104 = tpu.matmul %90, %0, %cst_58 {dimension_numbers = #tpu.dot_dimension_numbers<[1], [0], [0], [1], [0, 0, 1, 1], [], []>} : vector<8x32xf32>, vector<32x128xf32>, vector<8x128xf32> -> vector<8x128xf32>
      %105 = vector.broadcast %1 : vector<1x128xf32> to vector<8x128xf32>
      %106 = arith.addf %104, %105 : vector<8x128xf32>
      %cst_59 = arith.constant 0.000000e+00 : f32
      %107 = vector.broadcast %cst_59 : f32 to vector<8x128xf32>
      %108 = arith.maximumf %106, %107 : vector<8x128xf32>
      %cst_60 = arith.constant dense<0.000000e+00> : vector<8x128xf32>
      %109 = tpu.matmul %108, %2, %cst_60 {dimension_numbers = #tpu.dot_dimension_numbers<[1], [0], [0], [1], [0, 0, 1, 1], [], []>} : vector<8x128xf32>, vector<128x128xf32>, vector<8x128xf32> -> vector<8x128xf32>
      %110 = vector.broadcast %3 : vector<1x128xf32> to vector<8x128xf32>
      %111 = arith.addf %109, %110 : vector<8x128xf32>
      %112 = math.tanh %111 : vector<8x128xf32>
      %113 = arith.mulf %112, %95 : vector<8x128xf32>
      %cst_61 = arith.constant dense<0.000000e+00> : vector<8x32xf32>
      %114 = tpu.matmul %113, %4, %cst_61 {dimension_numbers = #tpu.dot_dimension_numbers<[1], [0], [0], [1], [0, 0, 1, 1], [], []>} : vector<8x128xf32>, vector<128x32xf32>, vector<8x32xf32> -> vector<8x32xf32>
      %cst_62 = arith.constant 1.250000e-01 : f32
      %115 = vector.broadcast %cst_62 : f32 to vector<8x32xf32>
      %116 = arith.mulf %115, %114 : vector<8x32xf32>
      %117 = arith.addf %90, %116 : vector<8x32xf32>
      %cst_63 = arith.constant dense<0.000000e+00> : vector<8x128xf32>
      %118 = tpu.matmul %117, %0, %cst_63 {dimension_numbers = #tpu.dot_dimension_numbers<[1], [0], [0], [1], [0, 0, 1, 1], [], []>} : vector<8x32xf32>, vector<32x128xf32>, vector<8x128xf32> -> vector<8x128xf32>
      %119 = vector.broadcast %1 : vector<1x128xf32> to vector<8x128xf32>
      %120 = arith.addf %118, %119 : vector<8x128xf32>
      %cst_64 = arith.constant 0.000000e+00 : f32
      %121 = vector.broadcast %cst_64 : f32 to vector<8x128xf32>
      %122 = arith.maximumf %120, %121 : vector<8x128xf32>
      %cst_65 = arith.constant dense<0.000000e+00> : vector<8x128xf32>
      %123 = tpu.matmul %122, %2, %cst_65 {dimension_numbers = #tpu.dot_dimension_numbers<[1], [0], [0], [1], [0, 0, 1, 1], [], []>} : vector<8x128xf32>, vector<128x128xf32>, vector<8x128xf32> -> vector<8x128xf32>
      %124 = vector.broadcast %3 : vector<1x128xf32> to vector<8x128xf32>
      %125 = arith.addf %123, %124 : vector<8x128xf32>
      %126 = math.tanh %125 : vector<8x128xf32>
      %127 = arith.mulf %126, %99 : vector<8x128xf32>
      %cst_66 = arith.constant dense<0.000000e+00> : vector<8x32xf32>
      %128 = tpu.matmul %127, %4, %cst_66 {dimension_numbers = #tpu.dot_dimension_numbers<[1], [0], [0], [1], [0, 0, 1, 1], [], []>} : vector<8x128xf32>, vector<128x32xf32>, vector<8x32xf32> -> vector<8x32xf32>
      %cst_67 = arith.constant 1.250000e-01 : f32
      %129 = vector.broadcast %cst_67 : f32 to vector<8x32xf32>
      %130 = arith.mulf %129, %128 : vector<8x32xf32>
      %131 = arith.addf %90, %130 : vector<8x32xf32>
      %cst_68 = arith.constant dense<0.000000e+00> : vector<8x128xf32>
      %132 = tpu.matmul %131, %0, %cst_68 {dimension_numbers = #tpu.dot_dimension_numbers<[1], [0], [0], [1], [0, 0, 1, 1], [], []>} : vector<8x32xf32>, vector<32x128xf32>, vector<8x128xf32> -> vector<8x128xf32>
      %133 = vector.broadcast %1 : vector<1x128xf32> to vector<8x128xf32>
      %134 = arith.addf %132, %133 : vector<8x128xf32>
      %cst_69 = arith.constant 0.000000e+00 : f32
      %135 = vector.broadcast %cst_69 : f32 to vector<8x128xf32>
      %136 = arith.maximumf %134, %135 : vector<8x128xf32>
      %cst_70 = arith.constant dense<0.000000e+00> : vector<8x128xf32>
      %137 = tpu.matmul %136, %2, %cst_70 {dimension_numbers = #tpu.dot_dimension_numbers<[1], [0], [0], [1], [0, 0, 1, 1], [], []>} : vector<8x128xf32>, vector<128x128xf32>, vector<8x128xf32> -> vector<8x128xf32>
      %138 = vector.broadcast %3 : vector<1x128xf32> to vector<8x128xf32>
      %139 = arith.addf %137, %138 : vector<8x128xf32>
      %140 = math.tanh %139 : vector<8x128xf32>
      %141 = arith.mulf %140, %99 : vector<8x128xf32>
      %cst_71 = arith.constant dense<0.000000e+00> : vector<8x32xf32>
      %142 = tpu.matmul %141, %4, %cst_71 {dimension_numbers = #tpu.dot_dimension_numbers<[1], [0], [0], [1], [0, 0, 1, 1], [], []>} : vector<8x128xf32>, vector<128x32xf32>, vector<8x32xf32> -> vector<8x32xf32>
      %cst_72 = arith.constant 2.500000e-01 : f32
      %143 = vector.broadcast %cst_72 : f32 to vector<8x32xf32>
      %144 = arith.mulf %143, %142 : vector<8x32xf32>
      %145 = arith.addf %90, %144 : vector<8x32xf32>
      %cst_73 = arith.constant dense<0.000000e+00> : vector<8x128xf32>
      %146 = tpu.matmul %145, %0, %cst_73 {dimension_numbers = #tpu.dot_dimension_numbers<[1], [0], [0], [1], [0, 0, 1, 1], [], []>} : vector<8x32xf32>, vector<32x128xf32>, vector<8x128xf32> -> vector<8x128xf32>
      %147 = vector.broadcast %1 : vector<1x128xf32> to vector<8x128xf32>
      %148 = arith.addf %146, %147 : vector<8x128xf32>
      %cst_74 = arith.constant 0.000000e+00 : f32
      %149 = vector.broadcast %cst_74 : f32 to vector<8x128xf32>
      %150 = arith.maximumf %148, %149 : vector<8x128xf32>
      %cst_75 = arith.constant dense<0.000000e+00> : vector<8x128xf32>
      %151 = tpu.matmul %150, %2, %cst_75 {dimension_numbers = #tpu.dot_dimension_numbers<[1], [0], [0], [1], [0, 0, 1, 1], [], []>} : vector<8x128xf32>, vector<128x128xf32>, vector<8x128xf32> -> vector<8x128xf32>
      %152 = vector.broadcast %3 : vector<1x128xf32> to vector<8x128xf32>
      %153 = arith.addf %151, %152 : vector<8x128xf32>
      %154 = math.tanh %153 : vector<8x128xf32>
      %155 = arith.mulf %154, %103 : vector<8x128xf32>
      %cst_76 = arith.constant dense<0.000000e+00> : vector<8x32xf32>
      %156 = tpu.matmul %155, %4, %cst_76 {dimension_numbers = #tpu.dot_dimension_numbers<[1], [0], [0], [1], [0, 0, 1, 1], [], []>} : vector<8x128xf32>, vector<128x32xf32>, vector<8x32xf32> -> vector<8x32xf32>
      %cst_77 = arith.constant 2.000000e+00 : f32
      %157 = vector.broadcast %cst_77 : f32 to vector<8x32xf32>
      %158 = arith.mulf %157, %128 : vector<8x32xf32>
      %159 = arith.addf %114, %158 : vector<8x32xf32>
      %cst_78 = arith.constant 2.000000e+00 : f32
      %160 = vector.broadcast %cst_78 : f32 to vector<8x32xf32>
      %161 = arith.mulf %160, %142 : vector<8x32xf32>
      %162 = arith.addf %159, %161 : vector<8x32xf32>
      %163 = arith.addf %162, %156 : vector<8x32xf32>
      %cst_79 = arith.constant 0.0416666679 : f32
      %164 = vector.broadcast %cst_79 : f32 to vector<8x32xf32>
      %165 = arith.mulf %164, %163 : vector<8x32xf32>
      %166 = arith.addf %90, %165 : vector<8x32xf32>
      %c2_i32_80 = arith.constant 2 : i32
      %167 = arith.addi %14, %c2_i32_80 : i32
      %c3_i32_81 = arith.constant 3 : i32
      %168 = arith.muli %c3_i32_81, %167 : i32
      %169 = arith.index_cast %168 : i32 to index
      %c0_82 = arith.constant 0 : index
      %c0_83 = arith.constant 0 : index
      %170 = vector.load %arg0[%169, %c0_82, %c0_83] : memref<84x8x128xf32, #tpu.memory_space<vmem>>, vector<1x8x128xf32>
      %171 = vector.shape_cast %170 : vector<1x8x128xf32> to vector<8x128xf32>
      %c1_i32_84 = arith.constant 1 : i32
      %172 = arith.addi %168, %c1_i32_84 : i32
      %173 = arith.index_cast %172 : i32 to index
      %c0_85 = arith.constant 0 : index
      %c0_86 = arith.constant 0 : index
      %174 = vector.load %arg0[%173, %c0_85, %c0_86] : memref<84x8x128xf32, #tpu.memory_space<vmem>>, vector<1x8x128xf32>
      %175 = vector.shape_cast %174 : vector<1x8x128xf32> to vector<8x128xf32>
      %c2_i32_87 = arith.constant 2 : i32
      %176 = arith.addi %168, %c2_i32_87 : i32
      %177 = arith.index_cast %176 : i32 to index
      %c0_88 = arith.constant 0 : index
      %c0_89 = arith.constant 0 : index
      %178 = vector.load %arg0[%177, %c0_88, %c0_89] : memref<84x8x128xf32, #tpu.memory_space<vmem>>, vector<1x8x128xf32>
      %179 = vector.shape_cast %178 : vector<1x8x128xf32> to vector<8x128xf32>
      %cst_90 = arith.constant dense<0.000000e+00> : vector<8x128xf32>
      %180 = tpu.matmul %166, %0, %cst_90 {dimension_numbers = #tpu.dot_dimension_numbers<[1], [0], [0], [1], [0, 0, 1, 1], [], []>} : vector<8x32xf32>, vector<32x128xf32>, vector<8x128xf32> -> vector<8x128xf32>
      %181 = vector.broadcast %1 : vector<1x128xf32> to vector<8x128xf32>
      %182 = arith.addf %180, %181 : vector<8x128xf32>
      %cst_91 = arith.constant 0.000000e+00 : f32
      %183 = vector.broadcast %cst_91 : f32 to vector<8x128xf32>
      %184 = arith.maximumf %182, %183 : vector<8x128xf32>
      %cst_92 = arith.constant dense<0.000000e+00> : vector<8x128xf32>
      %185 = tpu.matmul %184, %2, %cst_92 {dimension_numbers = #tpu.dot_dimension_numbers<[1], [0], [0], [1], [0, 0, 1, 1], [], []>} : vector<8x128xf32>, vector<128x128xf32>, vector<8x128xf32> -> vector<8x128xf32>
      %186 = vector.broadcast %3 : vector<1x128xf32> to vector<8x128xf32>
      %187 = arith.addf %185, %186 : vector<8x128xf32>
      %188 = math.tanh %187 : vector<8x128xf32>
      %189 = arith.mulf %188, %171 : vector<8x128xf32>
      %cst_93 = arith.constant dense<0.000000e+00> : vector<8x32xf32>
      %190 = tpu.matmul %189, %4, %cst_93 {dimension_numbers = #tpu.dot_dimension_numbers<[1], [0], [0], [1], [0, 0, 1, 1], [], []>} : vector<8x128xf32>, vector<128x32xf32>, vector<8x32xf32> -> vector<8x32xf32>
      %cst_94 = arith.constant 1.250000e-01 : f32
      %191 = vector.broadcast %cst_94 : f32 to vector<8x32xf32>
      %192 = arith.mulf %191, %190 : vector<8x32xf32>
      %193 = arith.addf %166, %192 : vector<8x32xf32>
      %cst_95 = arith.constant dense<0.000000e+00> : vector<8x128xf32>
      %194 = tpu.matmul %193, %0, %cst_95 {dimension_numbers = #tpu.dot_dimension_numbers<[1], [0], [0], [1], [0, 0, 1, 1], [], []>} : vector<8x32xf32>, vector<32x128xf32>, vector<8x128xf32> -> vector<8x128xf32>
      %195 = vector.broadcast %1 : vector<1x128xf32> to vector<8x128xf32>
      %196 = arith.addf %194, %195 : vector<8x128xf32>
      %cst_96 = arith.constant 0.000000e+00 : f32
      %197 = vector.broadcast %cst_96 : f32 to vector<8x128xf32>
      %198 = arith.maximumf %196, %197 : vector<8x128xf32>
      %cst_97 = arith.constant dense<0.000000e+00> : vector<8x128xf32>
      %199 = tpu.matmul %198, %2, %cst_97 {dimension_numbers = #tpu.dot_dimension_numbers<[1], [0], [0], [1], [0, 0, 1, 1], [], []>} : vector<8x128xf32>, vector<128x128xf32>, vector<8x128xf32> -> vector<8x128xf32>
      %200 = vector.broadcast %3 : vector<1x128xf32> to vector<8x128xf32>
      %201 = arith.addf %199, %200 : vector<8x128xf32>
      %202 = math.tanh %201 : vector<8x128xf32>
      %203 = arith.mulf %202, %175 : vector<8x128xf32>
      %cst_98 = arith.constant dense<0.000000e+00> : vector<8x32xf32>
      %204 = tpu.matmul %203, %4, %cst_98 {dimension_numbers = #tpu.dot_dimension_numbers<[1], [0], [0], [1], [0, 0, 1, 1], [], []>} : vector<8x128xf32>, vector<128x32xf32>, vector<8x32xf32> -> vector<8x32xf32>
      %cst_99 = arith.constant 1.250000e-01 : f32
      %205 = vector.broadcast %cst_99 : f32 to vector<8x32xf32>
      %206 = arith.mulf %205, %204 : vector<8x32xf32>
      %207 = arith.addf %166, %206 : vector<8x32xf32>
      %cst_100 = arith.constant dense<0.000000e+00> : vector<8x128xf32>
      %208 = tpu.matmul %207, %0, %cst_100 {dimension_numbers = #tpu.dot_dimension_numbers<[1], [0], [0], [1], [0, 0, 1, 1], [], []>} : vector<8x32xf32>, vector<32x128xf32>, vector<8x128xf32> -> vector<8x128xf32>
      %209 = vector.broadcast %1 : vector<1x128xf32> to vector<8x128xf32>
      %210 = arith.addf %208, %209 : vector<8x128xf32>
      %cst_101 = arith.constant 0.000000e+00 : f32
      %211 = vector.broadcast %cst_101 : f32 to vector<8x128xf32>
      %212 = arith.maximumf %210, %211 : vector<8x128xf32>
      %cst_102 = arith.constant dense<0.000000e+00> : vector<8x128xf32>
      %213 = tpu.matmul %212, %2, %cst_102 {dimension_numbers = #tpu.dot_dimension_numbers<[1], [0], [0], [1], [0, 0, 1, 1], [], []>} : vector<8x128xf32>, vector<128x128xf32>, vector<8x128xf32> -> vector<8x128xf32>
      %214 = vector.broadcast %3 : vector<1x128xf32> to vector<8x128xf32>
      %215 = arith.addf %213, %214 : vector<8x128xf32>
      %216 = math.tanh %215 : vector<8x128xf32>
      %217 = arith.mulf %216, %175 : vector<8x128xf32>
      %cst_103 = arith.constant dense<0.000000e+00> : vector<8x32xf32>
      %218 = tpu.matmul %217, %4, %cst_103 {dimension_numbers = #tpu.dot_dimension_numbers<[1], [0], [0], [1], [0, 0, 1, 1], [], []>} : vector<8x128xf32>, vector<128x32xf32>, vector<8x32xf32> -> vector<8x32xf32>
      %cst_104 = arith.constant 2.500000e-01 : f32
      %219 = vector.broadcast %cst_104 : f32 to vector<8x32xf32>
      %220 = arith.mulf %219, %218 : vector<8x32xf32>
      %221 = arith.addf %166, %220 : vector<8x32xf32>
      %cst_105 = arith.constant dense<0.000000e+00> : vector<8x128xf32>
      %222 = tpu.matmul %221, %0, %cst_105 {dimension_numbers = #tpu.dot_dimension_numbers<[1], [0], [0], [1], [0, 0, 1, 1], [], []>} : vector<8x32xf32>, vector<32x128xf32>, vector<8x128xf32> -> vector<8x128xf32>
      %223 = vector.broadcast %1 : vector<1x128xf32> to vector<8x128xf32>
      %224 = arith.addf %222, %223 : vector<8x128xf32>
      %cst_106 = arith.constant 0.000000e+00 : f32
      %225 = vector.broadcast %cst_106 : f32 to vector<8x128xf32>
      %226 = arith.maximumf %224, %225 : vector<8x128xf32>
      %cst_107 = arith.constant dense<0.000000e+00> : vector<8x128xf32>
      %227 = tpu.matmul %226, %2, %cst_107 {dimension_numbers = #tpu.dot_dimension_numbers<[1], [0], [0], [1], [0, 0, 1, 1], [], []>} : vector<8x128xf32>, vector<128x128xf32>, vector<8x128xf32> -> vector<8x128xf32>
      %228 = vector.broadcast %3 : vector<1x128xf32> to vector<8x128xf32>
      %229 = arith.addf %227, %228 : vector<8x128xf32>
      %230 = math.tanh %229 : vector<8x128xf32>
      %231 = arith.mulf %230, %179 : vector<8x128xf32>
      %cst_108 = arith.constant dense<0.000000e+00> : vector<8x32xf32>
      %232 = tpu.matmul %231, %4, %cst_108 {dimension_numbers = #tpu.dot_dimension_numbers<[1], [0], [0], [1], [0, 0, 1, 1], [], []>} : vector<8x128xf32>, vector<128x32xf32>, vector<8x32xf32> -> vector<8x32xf32>
      %cst_109 = arith.constant 2.000000e+00 : f32
      %233 = vector.broadcast %cst_109 : f32 to vector<8x32xf32>
      %234 = arith.mulf %233, %204 : vector<8x32xf32>
      %235 = arith.addf %190, %234 : vector<8x32xf32>
      %cst_110 = arith.constant 2.000000e+00 : f32
      %236 = vector.broadcast %cst_110 : f32 to vector<8x32xf32>
      %237 = arith.mulf %236, %218 : vector<8x32xf32>
      %238 = arith.addf %235, %237 : vector<8x32xf32>
      %239 = arith.addf %238, %232 : vector<8x32xf32>
      %cst_111 = arith.constant 0.0416666679 : f32
      %240 = vector.broadcast %cst_111 : f32 to vector<8x32xf32>
      %241 = arith.mulf %240, %239 : vector<8x32xf32>
      %242 = arith.addf %166, %241 : vector<8x32xf32>
      %c3_i32_112 = arith.constant 3 : i32
      %243 = arith.addi %14, %c3_i32_112 : i32
      %c3_i32_113 = arith.constant 3 : i32
      %244 = arith.muli %c3_i32_113, %243 : i32
      %245 = arith.index_cast %244 : i32 to index
      %c0_114 = arith.constant 0 : index
      %c0_115 = arith.constant 0 : index
      %246 = vector.load %arg0[%245, %c0_114, %c0_115] : memref<84x8x128xf32, #tpu.memory_space<vmem>>, vector<1x8x128xf32>
      %247 = vector.shape_cast %246 : vector<1x8x128xf32> to vector<8x128xf32>
      %c1_i32_116 = arith.constant 1 : i32
      %248 = arith.addi %244, %c1_i32_116 : i32
      %249 = arith.index_cast %248 : i32 to index
      %c0_117 = arith.constant 0 : index
      %c0_118 = arith.constant 0 : index
      %250 = vector.load %arg0[%249, %c0_117, %c0_118] : memref<84x8x128xf32, #tpu.memory_space<vmem>>, vector<1x8x128xf32>
      %251 = vector.shape_cast %250 : vector<1x8x128xf32> to vector<8x128xf32>
      %c2_i32_119 = arith.constant 2 : i32
      %252 = arith.addi %244, %c2_i32_119 : i32
      %253 = arith.index_cast %252 : i32 to index
      %c0_120 = arith.constant 0 : index
      %c0_121 = arith.constant 0 : index
      %254 = vector.load %arg0[%253, %c0_120, %c0_121] : memref<84x8x128xf32, #tpu.memory_space<vmem>>, vector<1x8x128xf32>
      %255 = vector.shape_cast %254 : vector<1x8x128xf32> to vector<8x128xf32>
      %cst_122 = arith.constant dense<0.000000e+00> : vector<8x128xf32>
      %256 = tpu.matmul %242, %0, %cst_122 {dimension_numbers = #tpu.dot_dimension_numbers<[1], [0], [0], [1], [0, 0, 1, 1], [], []>} : vector<8x32xf32>, vector<32x128xf32>, vector<8x128xf32> -> vector<8x128xf32>
      %257 = vector.broadcast %1 : vector<1x128xf32> to vector<8x128xf32>
      %258 = arith.addf %256, %257 : vector<8x128xf32>
      %cst_123 = arith.constant 0.000000e+00 : f32
      %259 = vector.broadcast %cst_123 : f32 to vector<8x128xf32>
      %260 = arith.maximumf %258, %259 : vector<8x128xf32>
      %cst_124 = arith.constant dense<0.000000e+00> : vector<8x128xf32>
      %261 = tpu.matmul %260, %2, %cst_124 {dimension_numbers = #tpu.dot_dimension_numbers<[1], [0], [0], [1], [0, 0, 1, 1], [], []>} : vector<8x128xf32>, vector<128x128xf32>, vector<8x128xf32> -> vector<8x128xf32>
      %262 = vector.broadcast %3 : vector<1x128xf32> to vector<8x128xf32>
      %263 = arith.addf %261, %262 : vector<8x128xf32>
      %264 = math.tanh %263 : vector<8x128xf32>
      %265 = arith.mulf %264, %247 : vector<8x128xf32>
      %cst_125 = arith.constant dense<0.000000e+00> : vector<8x32xf32>
      %266 = tpu.matmul %265, %4, %cst_125 {dimension_numbers = #tpu.dot_dimension_numbers<[1], [0], [0], [1], [0, 0, 1, 1], [], []>} : vector<8x128xf32>, vector<128x32xf32>, vector<8x32xf32> -> vector<8x32xf32>
      %cst_126 = arith.constant 1.250000e-01 : f32
      %267 = vector.broadcast %cst_126 : f32 to vector<8x32xf32>
      %268 = arith.mulf %267, %266 : vector<8x32xf32>
      %269 = arith.addf %242, %268 : vector<8x32xf32>
      %cst_127 = arith.constant dense<0.000000e+00> : vector<8x128xf32>
      %270 = tpu.matmul %269, %0, %cst_127 {dimension_numbers = #tpu.dot_dimension_numbers<[1], [0], [0], [1], [0, 0, 1, 1], [], []>} : vector<8x32xf32>, vector<32x128xf32>, vector<8x128xf32> -> vector<8x128xf32>
      %271 = vector.broadcast %1 : vector<1x128xf32> to vector<8x128xf32>
      %272 = arith.addf %270, %271 : vector<8x128xf32>
      %cst_128 = arith.constant 0.000000e+00 : f32
      %273 = vector.broadcast %cst_128 : f32 to vector<8x128xf32>
      %274 = arith.maximumf %272, %273 : vector<8x128xf32>
      %cst_129 = arith.constant dense<0.000000e+00> : vector<8x128xf32>
      %275 = tpu.matmul %274, %2, %cst_129 {dimension_numbers = #tpu.dot_dimension_numbers<[1], [0], [0], [1], [0, 0, 1, 1], [], []>} : vector<8x128xf32>, vector<128x128xf32>, vector<8x128xf32> -> vector<8x128xf32>
      %276 = vector.broadcast %3 : vector<1x128xf32> to vector<8x128xf32>
      %277 = arith.addf %275, %276 : vector<8x128xf32>
      %278 = math.tanh %277 : vector<8x128xf32>
      %279 = arith.mulf %278, %251 : vector<8x128xf32>
      %cst_130 = arith.constant dense<0.000000e+00> : vector<8x32xf32>
      %280 = tpu.matmul %279, %4, %cst_130 {dimension_numbers = #tpu.dot_dimension_numbers<[1], [0], [0], [1], [0, 0, 1, 1], [], []>} : vector<8x128xf32>, vector<128x32xf32>, vector<8x32xf32> -> vector<8x32xf32>
      %cst_131 = arith.constant 1.250000e-01 : f32
      %281 = vector.broadcast %cst_131 : f32 to vector<8x32xf32>
      %282 = arith.mulf %281, %280 : vector<8x32xf32>
      %283 = arith.addf %242, %282 : vector<8x32xf32>
      %cst_132 = arith.constant dense<0.000000e+00> : vector<8x128xf32>
      %284 = tpu.matmul %283, %0, %cst_132 {dimension_numbers = #tpu.dot_dimension_numbers<[1], [0], [0], [1], [0, 0, 1, 1], [], []>} : vector<8x32xf32>, vector<32x128xf32>, vector<8x128xf32> -> vector<8x128xf32>
      %285 = vector.broadcast %1 : vector<1x128xf32> to vector<8x128xf32>
      %286 = arith.addf %284, %285 : vector<8x128xf32>
      %cst_133 = arith.constant 0.000000e+00 : f32
      %287 = vector.broadcast %cst_133 : f32 to vector<8x128xf32>
      %288 = arith.maximumf %286, %287 : vector<8x128xf32>
      %cst_134 = arith.constant dense<0.000000e+00> : vector<8x128xf32>
      %289 = tpu.matmul %288, %2, %cst_134 {dimension_numbers = #tpu.dot_dimension_numbers<[1], [0], [0], [1], [0, 0, 1, 1], [], []>} : vector<8x128xf32>, vector<128x128xf32>, vector<8x128xf32> -> vector<8x128xf32>
      %290 = vector.broadcast %3 : vector<1x128xf32> to vector<8x128xf32>
      %291 = arith.addf %289, %290 : vector<8x128xf32>
      %292 = math.tanh %291 : vector<8x128xf32>
      %293 = arith.mulf %292, %251 : vector<8x128xf32>
      %cst_135 = arith.constant dense<0.000000e+00> : vector<8x32xf32>
      %294 = tpu.matmul %293, %4, %cst_135 {dimension_numbers = #tpu.dot_dimension_numbers<[1], [0], [0], [1], [0, 0, 1, 1], [], []>} : vector<8x128xf32>, vector<128x32xf32>, vector<8x32xf32> -> vector<8x32xf32>
      %cst_136 = arith.constant 2.500000e-01 : f32
      %295 = vector.broadcast %cst_136 : f32 to vector<8x32xf32>
      %296 = arith.mulf %295, %294 : vector<8x32xf32>
      %297 = arith.addf %242, %296 : vector<8x32xf32>
      %cst_137 = arith.constant dense<0.000000e+00> : vector<8x128xf32>
      %298 = tpu.matmul %297, %0, %cst_137 {dimension_numbers = #tpu.dot_dimension_numbers<[1], [0], [0], [1], [0, 0, 1, 1], [], []>} : vector<8x32xf32>, vector<32x128xf32>, vector<8x128xf32> -> vector<8x128xf32>
      %299 = vector.broadcast %1 : vector<1x128xf32> to vector<8x128xf32>
      %300 = arith.addf %298, %299 : vector<8x128xf32>
      %cst_138 = arith.constant 0.000000e+00 : f32
      %301 = vector.broadcast %cst_138 : f32 to vector<8x128xf32>
      %302 = arith.maximumf %300, %301 : vector<8x128xf32>
      %cst_139 = arith.constant dense<0.000000e+00> : vector<8x128xf32>
      %303 = tpu.matmul %302, %2, %cst_139 {dimension_numbers = #tpu.dot_dimension_numbers<[1], [0], [0], [1], [0, 0, 1, 1], [], []>} : vector<8x128xf32>, vector<128x128xf32>, vector<8x128xf32> -> vector<8x128xf32>
      %304 = vector.broadcast %3 : vector<1x128xf32> to vector<8x128xf32>
      %305 = arith.addf %303, %304 : vector<8x128xf32>
      %306 = math.tanh %305 : vector<8x128xf32>
      %307 = arith.mulf %306, %255 : vector<8x128xf32>
      %cst_140 = arith.constant dense<0.000000e+00> : vector<8x32xf32>
      %308 = tpu.matmul %307, %4, %cst_140 {dimension_numbers = #tpu.dot_dimension_numbers<[1], [0], [0], [1], [0, 0, 1, 1], [], []>} : vector<8x128xf32>, vector<128x32xf32>, vector<8x32xf32> -> vector<8x32xf32>
      %cst_141 = arith.constant 2.000000e+00 : f32
      %309 = vector.broadcast %cst_141 : f32 to vector<8x32xf32>
      %310 = arith.mulf %309, %280 : vector<8x32xf32>
      %311 = arith.addf %266, %310 : vector<8x32xf32>
      %cst_142 = arith.constant 2.000000e+00 : f32
      %312 = vector.broadcast %cst_142 : f32 to vector<8x32xf32>
      %313 = arith.mulf %312, %294 : vector<8x32xf32>
      %314 = arith.addf %311, %313 : vector<8x32xf32>
      %315 = arith.addf %314, %308 : vector<8x32xf32>
      %cst_143 = arith.constant 0.0416666679 : f32
      %316 = vector.broadcast %cst_143 : f32 to vector<8x32xf32>
      %317 = arith.mulf %316, %315 : vector<8x32xf32>
      %318 = arith.addf %242, %317 : vector<8x32xf32>
      scf.yield %318 : vector<8x32xf32>
    }
    %c7_i32_11 = arith.constant 7 : i32
    %c0_12 = arith.constant 0 : index
    %c0_13 = arith.constant 0 : index
    %8 = vector.load %arg6[%c0_12, %c0_13] : memref<32x4xf32, #tpu.memory_space<vmem>>, vector<32x4xf32>
    %cst = arith.constant dense<0.000000e+00> : vector<8x4xf32>
    %9 = tpu.matmul %7, %8, %cst {dimension_numbers = #tpu.dot_dimension_numbers<[1], [0], [0], [1], [0, 0, 1, 1], [], []>} : vector<8x32xf32>, vector<32x4xf32>, vector<8x4xf32> -> vector<8x4xf32>
    %c0_14 = arith.constant 0 : index
    %c0_15 = arith.constant 0 : index
    %10 = vector.load %arg7[%c0_14, %c0_15] : memref<1x4xf32, #tpu.memory_space<vmem>>, vector<1x4xf32>
    %11 = vector.broadcast %10 : vector<1x4xf32> to vector<8x4xf32>
    %12 = arith.addf %9, %11 : vector<8x4xf32>
    %c0_16 = arith.constant 0 : index
    %c0_17 = arith.constant 0 : index
    %13 = vector.load %arg9[%c0_16, %c0_17] : memref<8x4xf32, #tpu.memory_space<vmem>>, vector<8x4xf32>
    tpu.vector_store %arg9[%c0_16, %c0_17], %12 {strides = array<i32>} : memref<8x4xf32, #tpu.memory_space<vmem>>, vector<8x4xf32>,
    return
  }
}

</mosaic_0001>

<bundles_post_ra>
// kernel: custom-call
= control target key start
LH: loop header
LB: loop body
LE: loop exit
PB: predicated region body
PF: predicated region fallthrough
CT: control target
= control target key end

     0   :  { %s6_s0 = inlined_call_operand.vmem [shape: u32[84], index: 0, kind: output, shape index: {}]  }

// kernel: neural_cde_forward.1
= control target key start
LH: loop header
LB: loop body
LE: loop exit
PB: predicated region body
PF: predicated region fallthrough
CT: control target
= control target key end

     0   :  { %s6113_s14 = smov 0   ;;  %s7542_s0 = inlined_call_operand.vmem [shape: f32[84,8,128], index: 0, kind: input, shape index: {}]   ;;  %s7543_s2 = inlined_call_operand.vmem [shape: f32[32,128], index: 2, kind: input, shape index: {}]   ;;  %s7544_s3 = inlined_call_operand.vmem [shape: f32[1,128], index: 3, kind: input, shape index: {}]   ;;  %s7545_s4 = inlined_call_operand.vmem [shape: f32[128,128], index: 4, kind: input, shape index: {}]   ;;  %s7546_s6 = inlined_call_operand.vmem [shape: f32[32,4], index: 6, kind: input, shape index: {}]   ;;  %s7547_s7 = inlined_call_operand.vmem [shape: f32[1,4], index: 7, kind: input, shape index: {}]   ;;  %s7548_s9 = inlined_call_operand.vmem [shape: f32[8,4], index: 9, kind: output, shape index: {}]   ;;  %s7549_s5 = inlined_call_operand.vmem [shape: f32[1,128], index: 5, kind: input, shape index: {}]   ;;  %s7550_s8 = inlined_call_operand.vmem [shape: f32[128,32], index: 8, kind: input, shape index: {}]   ;;  %s7551_s1 = inlined_call_operand.vmem [shape: f32[8,32], index: 1, kind: input, shape index: {}]  }
   0x1   :  { %v5921_v0 = vld [vmem:[%s7543_s2] sm:$0xff]  ;;  %v5926_v1 = vld [vmem:[%s7543_s2 + $0x8] sm:$0xff]  ;;  %v5931_v2 = vld [vmem:[%s7543_s2 + $0x10] sm:$0xff] }
   0x2   :  { %v5936_v3 = vld [vmem:[%s7543_s2 + $0x18] sm:$0xff]  ;;  %v5941_v4 = vld [vmem:[%s7544_s3] ss:$0 sm:$0xff]  ;;  %v5951_v6 = vld [vmem:[%s7545_s4 + $0x8] sm:$0xff] }
   0x3   :  { %v5946_v5 = vld [vmem:[%s7545_s4] sm:$0xff]  ;;  %v5956_v7 = vld [vmem:[%s7545_s4 + $0x10] sm:$0xff]  ;;  %v5961_v8 = vld [vmem:[%s7545_s4 + $0x18] sm:$0xff] }
   0x4   :  { %v5966_v9 = vld [vmem:[%s7545_s4 + $0x20] sm:$0xff]  ;;  %v5971_v10 = vld [vmem:[%s7545_s4 + $0x28] sm:$0xff]  ;;  %v5976_v11 = vld [vmem:[%s7545_s4 + $0x30] sm:$0xff] }
   0x5   :  { %v5981_v12 = vld [vmem:[%s7545_s4 + $0x38] sm:$0xff]  ;;  %v5986_v13 = vld [vmem:[%s7545_s4 + $0x40] sm:$0xff]  ;;  %v5991_v14 = vld [vmem:[%s7545_s4 + $0x48] sm:$0xff] }
   0x6   :  { %v5996_v15 = vld [vmem:[%s7545_s4 + $0x50] sm:$0xff]  ;;  %v6001_v16 = vld [vmem:[%s7545_s4 + $0x58] sm:$0xff]  ;;  %v6006_v17 = vld [vmem:[%s7545_s4 + $0x60] sm:$0xff] }
   0x7   :  { %v6011_v18 = vld [vmem:[%s7545_s4 + $0x68] sm:$0xff]  ;;  %v6016_v19 = vld [vmem:[%s7545_s4 + $0x70] sm:$0xff]  ;;  %v6021_v20 = vld [vmem:[%s7545_s4 + $0x78] sm:$0xff] }
   0x8   :  { %v6026_v21 = vld [vmem:[%s7549_s5] ss:$0 sm:$0xff]  ;;  %v6036_v23 = vld [vmem:[%s7550_s8 + $0x8] sm:$0xff]  ;;  %v6041_v24 = vld [vmem:[%s7550_s8 + $0x10] sm:$0xff] }
   0x9   :  { %v6031_v22 = vld [vmem:[%s7550_s8] sm:$0xff]  ;;  %v6046_v25 = vld [vmem:[%s7550_s8 + $0x18] sm:$0xff]  ;;  %v6056_v27 = vld [vmem:[%s7550_s8 + $0x28] sm:$0xff] }
   0xa   :  { %v6051_v26 = vld [vmem:[%s7550_s8 + $0x20] sm:$0xff]  ;;  %v6061_v28 = vld [vmem:[%s7550_s8 + $0x30] sm:$0xff]  ;;  %v6066_v29 = vld [vmem:[%s7550_s8 + $0x38] sm:$0xff] }
   0xb   :  { %v6071_v30 = vld [vmem:[%s7550_s8 + $0x40] sm:$0xff]  ;;  %v6076_v31 = vld [vmem:[%s7550_s8 + $0x48] sm:$0xff]  ;;  %v6081_v32 = vld [vmem:[%s7550_s8 + $0x50] sm:$0xff] }
   0xc   :  { %v6086_v33 = vld [vmem:[%s7550_s8 + $0x58] sm:$0xff]  ;;  %v6091_v34 = vld [vmem:[%s7550_s8 + $0x60] sm:$0xff]  ;;  %v6096_v35 = vld [vmem:[%s7550_s8 + $0x68] sm:$0xff] }
   0xd   :  { %v6101_v36 = vld [vmem:[%s7550_s8 + $0x70] sm:$0xff]  ;;  %v6106_v37 = vld [vmem:[%s7550_s8 + $0x78] sm:$0xff]  ;;  %v70_v38 = vld [vmem:[%s7551_s1] sm:$0xff]  }
   0xe LB: > { %v5864_v39 = vmov 0.0   ;;  %vm5865_vm0 = vmmov 0   ;;  %vm97_vm1 = vcmask 261120   ;;  %s3802_s1 = smul.u32 96, %s5862_s14  ;;  %s76_s14 = sadd.s32 1, %s5862_s14   ;;  %s5862_s14 = sphi %s6113_s14, %s76_s14   ;;  %v5858_v38 = vphi %v70_v38, %v7552_v38  }
   0xf   : > { %4489 = vmatprep.subr.mxu0 %v5864_v39  ;;  %4497 = vmatprep.mubr.msk.f32.mxu0 %vm5865_vm0, %v5864_v39  ;;  %p73_p0 = scmp.ge.s32.totalorder %s76_s14, 7  }
  0x10   : > { %4490 = vmatpush3.msra.mxu0 %v5936_v3  ;;  %4500 = vmatprep.subr.mxu1 %v5864_v39  ;;  %s6219_s16 = scalar_lea.vmem %s7542_s0, %s3802_s1  ;;  %vm5867_vm2 = vmmov (%p73_p0), 0   ;;  %vm3736_vm3 = vcmask (%p73_p0), 31744  }
  0x11   : > { %4491 = vmatprep.subr.mxu0 %v5864_v39  ;;  %4501 = vmatpush3.msra.mxu1 %v6021_v20  ;;  %v82_v47 = vld [vmem:[%s6219_s16] sm:$0xff]  ;;  %v6308_v61 = vld [vmem:[%s6219_s16 + $0x8] sm:$0xff] }
  0x12   : > { %4492 = vmatpush3.msra.mxu0 %v5931_v2  ;;  %4502 = vmatprep.subr.mxu1 %v5864_v39 }
  0x13   : > { %4493 = vmatprep.subr.mxu0 %v5864_v39  ;;  %4503 = vmatpush3.msra.mxu1 %v6016_v19 }
  0x14   : > { %4494 = vmatpush3.msra.mxu0 %v5926_v1  ;;  %4504 = vmatprep.subr.mxu1 %v5864_v39 }
  0x15   : > { %4495 = vmatprep.subr.mxu0 %v5864_v39  ;;  %4505 = vmatpush3.msra.mxu1 %v6011_v18 }
  0x16   : > { %4496 = vmatpush3.msra.mxu0 %v5921_v0  ;;  %4506 = vmatprep.subr.mxu1 %v5864_v39 }
  0x17   : > { %4498 = vmatmul.mubr.msk.f32.vlgmr.msra.gmra.mxu0 %vm97_vm1, %v5858_v38  ;;  %4507 = vmatpush3.msra.mxu1 %v6006_v17 }
  0x18   : > { %4508 = vmatprep.subr.mxu1 %v5864_v39  ;;  %4532 = vmatprep.mubr.msk.f32.mxu1 %vm5865_vm0, %v5864_v39 }
  0x19   : > { %4509 = vmatpush3.msra.mxu1 %v6001_v16  ;;  %4535 = vmatprep.subr.mxu0 %v5864_v39 }
  0x1a   : > { %4510 = vmatprep.subr.mxu1 %v5864_v39  ;;  %4536 = vmatpush3.msra.mxu0 %v6106_v37 }
  0x1b   : > { %4511 = vmatpush3.msra.mxu1 %v5996_v15  ;;  %4537 = vmatprep.subr.mxu0 %v5864_v39 }
  0x1c   : > { %4512 = vmatprep.subr.mxu1 %v5864_v39  ;;  %4538 = vmatpush3.msra.mxu0 %v6101_v36 }
  0x1d   : > { %4513 = vmatpush3.msra.mxu1 %v5991_v14  ;;  %4539 = vmatprep.subr.mxu0 %v5864_v39 }
  0x1e   : > { %4514 = vmatprep.subr.mxu1 %v5864_v39  ;;  %4540 = vmatpush3.msra.mxu0 %v6096_v35 }
  0x1f   : > { %4515 = vmatpush3.msra.mxu1 %v5986_v13  ;;  %4541 = vmatprep.subr.mxu0 %v5864_v39 }
  0x20   : > { %4516 = vmatprep.subr.mxu1 %v5864_v39  ;;  %4542 = vmatpush3.msra.mxu0 %v6091_v34 }
  0x21   : > { %4517 = vmatpush3.msra.mxu1 %v5981_v12  ;;  %4543 = vmatprep.subr.mxu0 %v5864_v39 }
  0x22   : > { %4518 = vmatprep.subr.mxu1 %v5864_v39  ;;  %4544 = vmatpush3.msra.mxu0 %v6086_v33 }
  0x23   : > { %4519 = vmatpush3.msra.mxu1 %v5976_v11  ;;  %4545 = vmatprep.subr.mxu0 %v5864_v39 }
  0x24   : > { %4520 = vmatprep.subr.mxu1 %v5864_v39  ;;  %4546 = vmatpush3.msra.mxu0 %v6081_v32 }
  0x25   : > { %4521 = vmatpush3.msra.mxu1 %v5971_v10  ;;  %4547 = vmatprep.subr.mxu0 %v5864_v39 }
  0x26   : > { %4522 = vmatprep.subr.mxu1 %v5864_v39  ;;  %4548 = vmatpush3.msra.mxu0 %v6076_v31 }
  0x27   : > { %4523 = vmatpush3.msra.mxu1 %v5966_v9  ;;  %4549 = vmatprep.subr.mxu0 %v5864_v39 }
  0x28   : > { %4524 = vmatprep.subr.mxu1 %v5864_v39  ;;  %4550 = vmatpush3.msra.mxu0 %v6071_v30 }
  0x29   : > { %4525 = vmatpush3.msra.mxu1 %v5961_v8  ;;  %4551 = vmatprep.subr.mxu0 %v5864_v39 }
  0x2a   : > { %4526 = vmatprep.subr.mxu1 %v5864_v39  ;;  %4552 = vmatpush3.msra.mxu0 %v6066_v29 }
  0x2b   : > { %4527 = vmatpush3.msra.mxu1 %v5956_v7  ;;  %4553 = vmatprep.subr.mxu0 %v5864_v39 }
  0x2c   : > { %4528 = vmatprep.subr.mxu1 %v5864_v39  ;;  %4554 = vmatpush3.msra.mxu0 %v6061_v28 }
  0x2d   : > { %4529 = vmatpush3.msra.mxu1 %v5951_v6  ;;  %4555 = vmatprep.subr.mxu0 %v5864_v39 }
  0x2e   : > { %4530 = vmatprep.subr.mxu1 %v5864_v39  ;;  %4556 = vmatpush3.msra.mxu0 %v6056_v27 }
  0x2f   : > { %4531 = vmatpush3.msra.mxu1 %v5946_v5  ;;  %4557 = vmatprep.subr.mxu0 %v5864_v39 }
  0x30   : > { %4558 = vmatpush3.msra.mxu0 %v6051_v26  ;;  %4567 = vmatprep.mubr.msk.f32.mxu0 %vm5865_vm0, %v5864_v39 }
  0x31   : > { %4559 = vmatprep.subr.mxu0 %v5864_v39  ;;  %4570 = vmatprep.subr.mxu1 %v5864_v39 }
  0x32   : > { %4560 = vmatpush3.msra.mxu0 %v6046_v25 }
  0x33   : > { %4561 = vmatprep.subr.mxu0 %v5864_v39 }
  0x34   : > { %4562 = vmatpush3.msra.mxu0 %v6041_v24 }
  0x35   : > { %4563 = vmatprep.subr.mxu0 %v5864_v39 }
  0x36   : > { %4564 = vmatpush3.msra.mxu0 %v6036_v23 }
  0x37   : > { %4565 = vmatprep.subr.mxu0 %v5864_v39 }
  0x38   : > { %4566 = vmatpush3.msra.mxu0 %v6031_v22 }
  0x39   : > { %4581 = vmatprep.subr.mxu0 %v5864_v39 }
  0xd7   : > { %v167_v40 = vpop.f32.mrf.mxu0 }
  0xd8   : > { %v168_v41 = vadd.f32 %v5941_v4, %v167_v40 }
  0xd9   : > { %v4499_v42 = vpop.f32.mrf.mxu0 }
  0xda   : > { %v171_v43 = vmax.f32 %v168_v41, 0.0 }
  0xdc   : > { %4533 = vmatmul.mubr.f32.vlgmr.msra.gmra.mxu1 %v171_v43 }
  0xdd   : > { %4571 = vmatpush3.msra.mxu1 %v5936_v3  ;;  %4578 = vmatprep.mubr.msk.f32.mxu1 %vm5865_vm0, %v5864_v39 }
  0xde   : > { %4572 = vmatprep.subr.mxu1 %v5864_v39 }
  0xdf   : > { %4573 = vmatpush3.msra.mxu1 %v5931_v2 }
  0xe0   : > { %4574 = vmatprep.subr.mxu1 %v5864_v39 }
  0xe1   : > { %4575 = vmatpush3.msra.mxu1 %v5926_v1 }
  0xe2   : > { %4576 = vmatprep.subr.mxu1 %v5864_v39 }
  0xe3   : > { %4577 = vmatpush3.msra.mxu1 %v5921_v0 }
  0xe4   : > { %4616 = vmatprep.subr.mxu1 %v5864_v39 }
 0x19c   : > { %v244_v44 = vpop.f32.mrf.mxu1 }
 0x19d   : > { %v245_v45 = vadd.f32 %v6026_v21, %v244_v44 }
 0x19e   : > { %v4534_v46 = vpop.f32.mrf.mxu1 }
 0x19f   : > { %5816 = vtanh.f32 %v245_v45 }
 0x1ac   : > { %v5817_v48 = vpop.eup %5816 }
 0x1ad   : > { %v249_v49 = vmul.f32 %v5817_v48, %v82_v47 }
 0x1af   : > { %4568 = vmatmul.mubr.f32.vlgmr.msra.gmra.mxu0 %v249_v49 }
 0x1b0   : > { %4582 = vmatpush3.msra.mxu0 %v6021_v20  ;;  %4613 = vmatprep.mubr.msk.f32.mxu0 %vm5865_vm0, %v5864_v39 }
 0x1b1   : > { %4583 = vmatprep.subr.mxu0 %v5864_v39 }
 0x1b2   : > { %4584 = vmatpush3.msra.mxu0 %v6016_v19 }
 0x1b3   : > { %4585 = vmatprep.subr.mxu0 %v5864_v39 }
 0x1b4   : > { %4586 = vmatpush3.msra.mxu0 %v6011_v18 }
 0x1b5   : > { %4587 = vmatprep.subr.mxu0 %v5864_v39 }
 0x1b6   : > { %4588 = vmatpush3.msra.mxu0 %v6006_v17 }
 0x1b7   : > { %4589 = vmatprep.subr.mxu0 %v5864_v39 }
 0x1b8   : > { %4590 = vmatpush3.msra.mxu0 %v6001_v16 }
 0x1b9   : > { %4591 = vmatprep.subr.mxu0 %v5864_v39 }
 0x1ba   : > { %4592 = vmatpush3.msra.mxu0 %v5996_v15 }
 0x1bb   : > { %4593 = vmatprep.subr.mxu0 %v5864_v39 }
 0x1bc   : > { %4594 = vmatpush3.msra.mxu0 %v5991_v14 }
 0x1bd   : > { %4595 = vmatprep.subr.mxu0 %v5864_v39 }
 0x1be   : > { %4596 = vmatpush3.msra.mxu0 %v5986_v13 }
 0x1bf   : > { %4597 = vmatprep.subr.mxu0 %v5864_v39 }
 0x1c0   : > { %4598 = vmatpush3.msra.mxu0 %v5981_v12 }
 0x1c1   : > { %4599 = vmatprep.subr.mxu0 %v5864_v39 }
 0x1c2   : > { %4600 = vmatpush3.msra.mxu0 %v5976_v11 }
 0x1c3   : > { %4601 = vmatprep.subr.mxu0 %v5864_v39 }
 0x1c4   : > { %4602 = vmatpush3.msra.mxu0 %v5971_v10 }
 0x1c5   : > { %4603 = vmatprep.subr.mxu0 %v5864_v39 }
 0x1c6   : > { %4604 = vmatpush3.msra.mxu0 %v5966_v9 }
 0x1c7   : > { %4605 = vmatprep.subr.mxu0 %v5864_v39 }
 0x1c8   : > { %4606 = vmatpush3.msra.mxu0 %v5961_v8 }
 0x1c9   : > { %4607 = vmatprep.subr.mxu0 %v5864_v39 }
 0x1ca   : > { %4608 = vmatpush3.msra.mxu0 %v5956_v7 }
 0x1cb   : > { %4609 = vmatprep.subr.mxu0 %v5864_v39 }
 0x1cc   : > { %4610 = vmatpush3.msra.mxu0 %v5951_v6 }
 0x1cd   : > { %4611 = vmatprep.subr.mxu0 %v5864_v39 }
 0x1ce   : > { %4612 = vmatpush3.msra.mxu0 %v5946_v5 }
 0x1cf   : > { %4651 = vmatprep.subr.mxu0 %v5864_v39 }
 0x26f   : > { %v6256_v50 = vpop.f32.mrf.mxu0 }
 0x270   : > { %v320_v51 = vmul.f32 0.125, %v6256_v50 }
 0x271   : > { %v4569_v52 = vpop.f32.mrf.mxu0 }
 0x272   : > { %v321_v53 = vadd.f32 %v5858_v38, %v320_v51 }
 0x274   : > { %4579 = vmatmul.mubr.msk.f32.vlgmr.msra.gmra.mxu1 %vm97_vm1, %v321_v53 }
 0x275   : > { %4617 = vmatpush3.msra.mxu1 %v6106_v37  ;;  %4648 = vmatprep.mubr.msk.f32.mxu1 %vm5865_vm0, %v5864_v39 }
 0x276   : > { %4618 = vmatprep.subr.mxu1 %v5864_v39 }
 0x277   : > { %4619 = vmatpush3.msra.mxu1 %v6101_v36 }
 0x278   : > { %4620 = vmatprep.subr.mxu1 %v5864_v39 }
 0x279   : > { %4621 = vmatpush3.msra.mxu1 %v6096_v35 }
 0x27a   : > { %4622 = vmatprep.subr.mxu1 %v5864_v39 }
 0x27b   : > { %4623 = vmatpush3.msra.mxu1 %v6091_v34 }
 0x27c   : > { %4624 = vmatprep.subr.mxu1 %v5864_v39 }
 0x27d   : > { %4625 = vmatpush3.msra.mxu1 %v6086_v33 }
 0x27e   : > { %4626 = vmatprep.subr.mxu1 %v5864_v39 }
 0x27f   : > { %4627 = vmatpush3.msra.mxu1 %v6081_v32 }
 0x280   : > { %4628 = vmatprep.subr.mxu1 %v5864_v39 }
 0x281   : > { %4629 = vmatpush3.msra.mxu1 %v6076_v31 }
 0x282   : > { %4630 = vmatprep.subr.mxu1 %v5864_v39 }
 0x283   : > { %4631 = vmatpush3.msra.mxu1 %v6071_v30 }
 0x284   : > { %4632 = vmatprep.subr.mxu1 %v5864_v39 }
 0x285   : > { %4633 = vmatpush3.msra.mxu1 %v6066_v29 }
 0x286   : > { %4634 = vmatprep.subr.mxu1 %v5864_v39 }
 0x287   : > { %4635 = vmatpush3.msra.mxu1 %v6061_v28 }
 0x288   : > { %4636 = vmatprep.subr.mxu1 %v5864_v39 }
 0x289   : > { %4637 = vmatpush3.msra.mxu1 %v6056_v27 }
 0x28a   : > { %4638 = vmatprep.subr.mxu1 %v5864_v39 }
 0x28b   : > { %4639 = vmatpush3.msra.mxu1 %v6051_v26 }
 0x28c   : > { %4640 = vmatprep.subr.mxu1 %v5864_v39 }
 0x28d   : > { %4641 = vmatpush3.msra.mxu1 %v6046_v25 }
 0x28e   : > { %4642 = vmatprep.subr.mxu1 %v5864_v39 }
 0x28f   : > { %4643 = vmatpush3.msra.mxu1 %v6041_v24 }
 0x290   : > { %4644 = vmatprep.subr.mxu1 %v5864_v39 }
 0x291   : > { %4645 = vmatpush3.msra.mxu1 %v6036_v23 }
 0x292   : > { %4646 = vmatprep.subr.mxu1 %v5864_v39 }
 0x293   : > { %4647 = vmatpush3.msra.mxu1 %v6031_v22 }
 0x294   : > { %4662 = vmatprep.subr.mxu1 %v5864_v39 }
 0x334   : > { %v391_v54 = vpop.f32.mrf.mxu1 }
 0x335   : > { %v392_v55 = vadd.f32 %v5941_v4, %v391_v54 }
 0x336   : > { %v4580_v56 = vpop.f32.mrf.mxu1 }
 0x337   : > { %v395_v57 = vmax.f32 %v392_v55, 0.0 }
 0x339   : > { %4614 = vmatmul.mubr.f32.vlgmr.msra.gmra.mxu0 %v395_v57 }
 0x33a   : > { %4652 = vmatpush3.msra.mxu0 %v5936_v3  ;;  %4659 = vmatprep.mubr.msk.f32.mxu0 %vm5865_vm0, %v5864_v39 }
 0x33b   : > { %4653 = vmatprep.subr.mxu0 %v5864_v39 }
 0x33c   : > { %4654 = vmatpush3.msra.mxu0 %v5931_v2 }
 0x33d   : > { %4655 = vmatprep.subr.mxu0 %v5864_v39 }
 0x33e   : > { %4656 = vmatpush3.msra.mxu0 %v5926_v1 }
 0x33f   : > { %4657 = vmatprep.subr.mxu0 %v5864_v39 }
 0x340   : > { %4658 = vmatpush3.msra.mxu0 %v5921_v0 }
 0x341   : > { %4697 = vmatprep.subr.mxu0 %v5864_v39 }
 0x3f9   : > { %v462_v58 = vpop.f32.mrf.mxu0 }
 0x3fa   : > { %v463_v59 = vadd.f32 %v6026_v21, %v462_v58 }
 0x3fb   : > { %v4615_v60 = vpop.f32.mrf.mxu0 }
 0x3fc   : > { %5818 = vtanh.f32 %v463_v59 }
 0x409   : > { %v5819_v62 = vpop.eup %5818 }
 0x40a   : > { %v467_v63 = vmul.f32 %v5819_v62, %v6308_v61 }
 0x40c   : > { %4649 = vmatmul.mubr.f32.vlgmr.msra.gmra.mxu1 %v467_v63 }
 0x40d   : > { %4663 = vmatpush3.msra.mxu1 %v6021_v20  ;;  %4694 = vmatprep.mubr.msk.f32.mxu1 %vm5865_vm0, %v5864_v39 }
 0x40e   : > { %4664 = vmatprep.subr.mxu1 %v5864_v39 }
 0x40f   : > { %4665 = vmatpush3.msra.mxu1 %v6016_v19 }
 0x410   : > { %4666 = vmatprep.subr.mxu1 %v5864_v39 }
 0x411   : > { %4667 = vmatpush3.msra.mxu1 %v6011_v18 }
 0x412   : > { %4668 = vmatprep.subr.mxu1 %v5864_v39 }
 0x413   : > { %4669 = vmatpush3.msra.mxu1 %v6006_v17 }
 0x414   : > { %4670 = vmatprep.subr.mxu1 %v5864_v39 }
 0x415   : > { %4671 = vmatpush3.msra.mxu1 %v6001_v16 }
 0x416   : > { %4672 = vmatprep.subr.mxu1 %v5864_v39 }
 0x417   : > { %4673 = vmatpush3.msra.mxu1 %v5996_v15 }
 0x418   : > { %4674 = vmatprep.subr.mxu1 %v5864_v39 }
 0x419   : > { %4675 = vmatpush3.msra.mxu1 %v5991_v14 }
 0x41a   : > { %4676 = vmatprep.subr.mxu1 %v5864_v39 }
 0x41b   : > { %4677 = vmatpush3.msra.mxu1 %v5986_v13 }
 0x41c   : > { %4678 = vmatprep.subr.mxu1 %v5864_v39 }
 0x41d   : > { %4679 = vmatpush3.msra.mxu1 %v5981_v12 }
 0x41e   : > { %4680 = vmatprep.subr.mxu1 %v5864_v39 }
 0x41f   : > { %4681 = vmatpush3.msra.mxu1 %v5976_v11 }
 0x420   : > { %4682 = vmatprep.subr.mxu1 %v5864_v39 }
 0x421   : > { %4683 = vmatpush3.msra.mxu1 %v5971_v10 }
 0x422   : > { %4684 = vmatprep.subr.mxu1 %v5864_v39 }
 0x423   : > { %4685 = vmatpush3.msra.mxu1 %v5966_v9 }
 0x424   : > { %4686 = vmatprep.subr.mxu1 %v5864_v39 }
 0x425   : > { %4687 = vmatpush3.msra.mxu1 %v5961_v8 }
 0x426   : > { %4688 = vmatprep.subr.mxu1 %v5864_v39 }
 0x427   : > { %4689 = vmatpush3.msra.mxu1 %v5956_v7 }
 0x428   : > { %4690 = vmatprep.subr.mxu1 %v5864_v39 }
 0x429   : > { %4691 = vmatpush3.msra.mxu1 %v5951_v6 }
 0x42a   : > { %4692 = vmatprep.subr.mxu1 %v5864_v39 }
 0x42b   : > { %4693 = vmatpush3.msra.mxu1 %v5946_v5 }
 0x42c   : > { %4732 = vmatprep.subr.mxu1 %v5864_v39 }
 0x4cc   : > { %v6345_v40 = vpop.f32.mrf.mxu1 }
 0x4cd   : > { %v538_v41 = vmul.f32 0.125, %v6345_v40  ;;  %v974_v54 = vmul.f32 2.0, %v6345_v40 }
 0x4ce   : > { %v4650_v42 = vpop.f32.mrf.mxu1 }
 0x4cf   : > { %v539_v43 = vadd.f32 %v5858_v38, %v538_v41  ;;  %v975_v56 = vadd.f32 %v974_v54, %v6256_v50 }
 0x4d1   : > { %4660 = vmatmul.mubr.msk.f32.vlgmr.msra.gmra.mxu0 %vm97_vm1, %v539_v43 }
 0x4d2   : > { %4698 = vmatpush3.msra.mxu0 %v6106_v37  ;;  %4729 = vmatprep.mubr.msk.f32.mxu0 %vm5865_vm0, %v5864_v39 }
 0x4d3   : > { %4699 = vmatprep.subr.mxu0 %v5864_v39 }
 0x4d4   : > { %4700 = vmatpush3.msra.mxu0 %v6101_v36 }
 0x4d5   : > { %4701 = vmatprep.subr.mxu0 %v5864_v39 }
 0x4d6   : > { %4702 = vmatpush3.msra.mxu0 %v6096_v35 }
 0x4d7   : > { %4703 = vmatprep.subr.mxu0 %v5864_v39 }
 0x4d8   : > { %4704 = vmatpush3.msra.mxu0 %v6091_v34 }
 0x4d9   : > { %4705 = vmatprep.subr.mxu0 %v5864_v39 }
 0x4da   : > { %4706 = vmatpush3.msra.mxu0 %v6086_v33 }
 0x4db   : > { %4707 = vmatprep.subr.mxu0 %v5864_v39 }
 0x4dc   : > { %4708 = vmatpush3.msra.mxu0 %v6081_v32 }
 0x4dd   : > { %4709 = vmatprep.subr.mxu0 %v5864_v39 }
 0x4de   : > { %4710 = vmatpush3.msra.mxu0 %v6076_v31 }
 0x4df   : > { %4711 = vmatprep.subr.mxu0 %v5864_v39 }
 0x4e0   : > { %4712 = vmatpush3.msra.mxu0 %v6071_v30 }
 0x4e1   : > { %4713 = vmatprep.subr.mxu0 %v5864_v39 }
 0x4e2   : > { %4714 = vmatpush3.msra.mxu0 %v6066_v29 }
 0x4e3   : > { %4715 = vmatprep.subr.mxu0 %v5864_v39 }
 0x4e4   : > { %4716 = vmatpush3.msra.mxu0 %v6061_v28 }
 0x4e5   : > { %4717 = vmatprep.subr.mxu0 %v5864_v39 }
 0x4e6   : > { %4718 = vmatpush3.msra.mxu0 %v6056_v27 }
 0x4e7   : > { %4719 = vmatprep.subr.mxu0 %v5864_v39 }
 0x4e8   : > { %4720 = vmatpush3.msra.mxu0 %v6051_v26 }
 0x4e9   : > { %4721 = vmatprep.subr.mxu0 %v5864_v39 }
 0x4ea   : > { %4722 = vmatpush3.msra.mxu0 %v6046_v25 }
 0x4eb   : > { %4723 = vmatprep.subr.mxu0 %v5864_v39 }
 0x4ec   : > { %4724 = vmatpush3.msra.mxu0 %v6041_v24 }
 0x4ed   : > { %4725 = vmatprep.subr.mxu0 %v5864_v39 }
 0x4ee   : > { %4726 = vmatpush3.msra.mxu0 %v6036_v23 }
 0x4ef   : > { %4727 = vmatprep.subr.mxu0 %v5864_v39 }
 0x4f0   : > { %4728 = vmatpush3.msra.mxu0 %v6031_v22 }
 0x4f1   : > { %4743 = vmatprep.subr.mxu0 %v5864_v39 }
 0x591   : > { %v609_v44 = vpop.f32.mrf.mxu0 }
 0x592   : > { %v610_v45 = vadd.f32 %v5941_v4, %v609_v44  ;;  %v3806_v44 = vld [vmem:[%s6219_s16 + $0x10] sm:$0xff] }
 0x593   : > { %v4661_v46 = vpop.f32.mrf.mxu0 }
 0x594   : > { %v613_v47 = vmax.f32 %v610_v45, 0.0 }
 0x596   : > { %4695 = vmatmul.mubr.f32.vlgmr.msra.gmra.mxu1 %v613_v47 }
 0x597   : > { %4733 = vmatpush3.msra.mxu1 %v5936_v3  ;;  %4740 = vmatprep.mubr.msk.f32.mxu1 %vm5865_vm0, %v5864_v39 }
 0x598   : > { %4734 = vmatprep.subr.mxu1 %v5864_v39 }
 0x599   : > { %4735 = vmatpush3.msra.mxu1 %v5931_v2 }
 0x59a   : > { %4736 = vmatprep.subr.mxu1 %v5864_v39 }
 0x59b   : > { %4737 = vmatpush3.msra.mxu1 %v5926_v1 }
 0x59c   : > { %4738 = vmatprep.subr.mxu1 %v5864_v39 }
 0x59d   : > { %4739 = vmatpush3.msra.mxu1 %v5921_v0 }
 0x59e   : > { %4778 = vmatprep.subr.mxu1 %v5864_v39 }
 0x656   : > { %v680_v48 = vpop.f32.mrf.mxu1 }
 0x657   : > { %v681_v49 = vadd.f32 %v6026_v21, %v680_v48 }
 0x658   : > { %v4696_v51 = vpop.f32.mrf.mxu1 }
 0x659   : > { %5820 = vtanh.f32 %v681_v49 }
 0x666   : > { %v5821_v52 = vpop.eup %5820 }
 0x667   : > { %v685_v53 = vmul.f32 %v5821_v52, %v6308_v61 }
 0x669   : > { %4730 = vmatmul.mubr.f32.vlgmr.msra.gmra.mxu0 %v685_v53 }
 0x66a   : > { %4744 = vmatpush3.msra.mxu0 %v6021_v20  ;;  %4775 = vmatprep.mubr.msk.f32.mxu0 %vm5865_vm0, %v5864_v39 }
 0x66b   : > { %4745 = vmatprep.subr.mxu0 %v5864_v39 }
 0x66c   : > { %4746 = vmatpush3.msra.mxu0 %v6016_v19 }
 0x66d   : > { %4747 = vmatprep.subr.mxu0 %v5864_v39 }
 0x66e   : > { %4748 = vmatpush3.msra.mxu0 %v6011_v18 }
 0x66f   : > { %4749 = vmatprep.subr.mxu0 %v5864_v39 }
 0x670   : > { %4750 = vmatpush3.msra.mxu0 %v6006_v17 }
 0x671   : > { %4751 = vmatprep.subr.mxu0 %v5864_v39 }
 0x672   : > { %4752 = vmatpush3.msra.mxu0 %v6001_v16 }
 0x673   : > { %4753 = vmatprep.subr.mxu0 %v5864_v39 }
 0x674   : > { %4754 = vmatpush3.msra.mxu0 %v5996_v15 }
 0x675   : > { %4755 = vmatprep.subr.mxu0 %v5864_v39 }
 0x676   : > { %4756 = vmatpush3.msra.mxu0 %v5991_v14 }
 0x677   : > { %4757 = vmatprep.subr.mxu0 %v5864_v39 }
 0x678   : > { %4758 = vmatpush3.msra.mxu0 %v5986_v13 }
 0x679   : > { %4759 = vmatprep.subr.mxu0 %v5864_v39 }
 0x67a   : > { %4760 = vmatpush3.msra.mxu0 %v5981_v12 }
 0x67b   : > { %4761 = vmatprep.subr.mxu0 %v5864_v39 }
 0x67c   : > { %4762 = vmatpush3.msra.mxu0 %v5976_v11 }
 0x67d   : > { %4763 = vmatprep.subr.mxu0 %v5864_v39 }
 0x67e   : > { %4764 = vmatpush3.msra.mxu0 %v5971_v10 }
 0x67f   : > { %4765 = vmatprep.subr.mxu0 %v5864_v39 }
 0x680   : > { %4766 = vmatpush3.msra.mxu0 %v5966_v9 }
 0x681   : > { %4767 = vmatprep.subr.mxu0 %v5864_v39 }
 0x682   : > { %4768 = vmatpush3.msra.mxu0 %v5961_v8 }
 0x683   : > { %4769 = vmatprep.subr.mxu0 %v5864_v39 }
 0x684   : > { %4770 = vmatpush3.msra.mxu0 %v5956_v7 }
 0x685   : > { %4771 = vmatprep.subr.mxu0 %v5864_v39 }
 0x686   : > { %4772 = vmatpush3.msra.mxu0 %v5951_v6 }
 0x687   : > { %4773 = vmatprep.subr.mxu0 %v5864_v39 }
 0x688   : > { %4774 = vmatpush3.msra.mxu0 %v5946_v5 }
 0x689   : > { %4813 = vmatprep.subr.mxu0 %v5864_v39 }
 0x729   : > { %v752_v55 = vpop.f32.mrf.mxu0 }
 0x72a   : > { %v756_v57 = vmul.f32 0.25, %v752_v55  ;;  %v976_v58 = vmul.f32 2.0, %v752_v55 }
 0x72b   : > { %v4731_v59 = vpop.f32.mrf.mxu0 }
 0x72c   : > { %v757_v60 = vadd.f32 %v5858_v38, %v756_v57  ;;  %v6434_v61 = vadd.f32 %v976_v58, %v975_v56  ;;  %v3815_v59 = vld [vmem:[%s6219_s16 + $0x18] sm:$0xff] }
 0x72e   : > { %4741 = vmatmul.mubr.msk.f32.vlgmr.msra.gmra.mxu1 %vm97_vm1, %v757_v60 }
 0x72f   : > { %4779 = vmatpush3.msra.mxu1 %v6106_v37  ;;  %4810 = vmatprep.mubr.msk.f32.mxu1 %vm5865_vm0, %v5864_v39 }
 0x730   : > { %4780 = vmatprep.subr.mxu1 %v5864_v39 }
 0x731   : > { %4781 = vmatpush3.msra.mxu1 %v6101_v36 }
 0x732   : > { %4782 = vmatprep.subr.mxu1 %v5864_v39 }
 0x733   : > { %4783 = vmatpush3.msra.mxu1 %v6096_v35 }
 0x734   : > { %4784 = vmatprep.subr.mxu1 %v5864_v39 }
 0x735   : > { %4785 = vmatpush3.msra.mxu1 %v6091_v34 }
 0x736   : > { %4786 = vmatprep.subr.mxu1 %v5864_v39 }
 0x737   : > { %4787 = vmatpush3.msra.mxu1 %v6086_v33 }
 0x738   : > { %4788 = vmatprep.subr.mxu1 %v5864_v39 }
 0x739   : > { %4789 = vmatpush3.msra.mxu1 %v6081_v32 }
 0x73a   : > { %4790 = vmatprep.subr.mxu1 %v5864_v39 }
 0x73b   : > { %4791 = vmatpush3.msra.mxu1 %v6076_v31 }
 0x73c   : > { %4792 = vmatprep.subr.mxu1 %v5864_v39 }
 0x73d   : > { %4793 = vmatpush3.msra.mxu1 %v6071_v30 }
 0x73e   : > { %4794 = vmatprep.subr.mxu1 %v5864_v39 }
 0x73f   : > { %4795 = vmatpush3.msra.mxu1 %v6066_v29 }
 0x740   : > { %4796 = vmatprep.subr.mxu1 %v5864_v39 }
 0x741   : > { %4797 = vmatpush3.msra.mxu1 %v6061_v28 }
 0x742   : > { %4798 = vmatprep.subr.mxu1 %v5864_v39 }
 0x743   : > { %4799 = vmatpush3.msra.mxu1 %v6056_v27 }
 0x744   : > { %4800 = vmatprep.subr.mxu1 %v5864_v39 }
 0x745   : > { %4801 = vmatpush3.msra.mxu1 %v6051_v26 }
 0x746   : > { %4802 = vmatprep.subr.mxu1 %v5864_v39 }
 0x747   : > { %4803 = vmatpush3.msra.mxu1 %v6046_v25 }
 0x748   : > { %4804 = vmatprep.subr.mxu1 %v5864_v39 }
 0x749   : > { %4805 = vmatpush3.msra.mxu1 %v6041_v24 }
 0x74a   : > { %4806 = vmatprep.subr.mxu1 %v5864_v39 }
 0x74b   : > { %4807 = vmatpush3.msra.mxu1 %v6036_v23 }
 0x74c   : > { %4808 = vmatprep.subr.mxu1 %v5864_v39 }
 0x74d   : > { %4809 = vmatpush3.msra.mxu1 %v6031_v22 }
 0x74e   : > { %4824 = vmatprep.subr.mxu1 %v5864_v39 }
 0x7ee   : > { %v827_v50 = vpop.f32.mrf.mxu1 }
 0x7ef   : > { %v828_v62 = vadd.f32 %v5941_v4, %v827_v50 }
 0x7f0   : > { %v4742_v63 = vpop.f32.mrf.mxu1 }
 0x7f1   : > { %v831_v40 = vmax.f32 %v828_v62, 0.0 }
 0x7f3   : > { %4776 = vmatmul.mubr.f32.vlgmr.msra.gmra.mxu0 %v831_v40 }
 0x7f4   : > { %4814 = vmatpush3.msra.mxu0 %v5936_v3  ;;  %4821 = vmatprep.mubr.msk.f32.mxu0 %vm5865_vm0, %v5864_v39 }
 0x7f5   : > { %4815 = vmatprep.subr.mxu0 %v5864_v39 }
 0x7f6   : > { %4816 = vmatpush3.msra.mxu0 %v5931_v2 }
 0x7f7   : > { %4817 = vmatprep.subr.mxu0 %v5864_v39 }
 0x7f8   : > { %4818 = vmatpush3.msra.mxu0 %v5926_v1 }
 0x7f9   : > { %4819 = vmatprep.subr.mxu0 %v5864_v39 }
 0x7fa   : > { %4820 = vmatpush3.msra.mxu0 %v5921_v0 }
 0x7fb   : > { %4859 = vmatprep.subr.mxu0 %v5864_v39 }
 0x8b3   : > { %v898_v41 = vpop.f32.mrf.mxu0 }
 0x8b4   : > { %v899_v42 = vadd.f32 %v6026_v21, %v898_v41 }
 0x8b5   : > { %v4777_v43 = vpop.f32.mrf.mxu0 }
 0x8b6   : > { %5822 = vtanh.f32 %v899_v42 }
 0x8c3   : > { %v5823_v45 = vpop.eup %5822 }
 0x8c4   : > { %v903_v46 = vmul.f32 %v5823_v45, %v3806_v44 }
 0x8c6   : > { %4811 = vmatmul.mubr.f32.vlgmr.msra.gmra.mxu1 %v903_v46 }
 0x8c7   : > { %4825 = vmatpush3.msra.mxu1 %v6021_v20  ;;  %4856 = vmatprep.mubr.msk.f32.mxu1 %vm5865_vm0, %v5864_v39 }
 0x8c8   : > { %4826 = vmatprep.subr.mxu1 %v5864_v39 }
 0x8c9   : > { %4827 = vmatpush3.msra.mxu1 %v6016_v19 }
 0x8ca   : > { %4828 = vmatprep.subr.mxu1 %v5864_v39 }
 0x8cb   : > { %4829 = vmatpush3.msra.mxu1 %v6011_v18 }
 0x8cc   : > { %4830 = vmatprep.subr.mxu1 %v5864_v39 }
 0x8cd   : > { %4831 = vmatpush3.msra.mxu1 %v6006_v17 }
 0x8ce   : > { %4832 = vmatprep.subr.mxu1 %v5864_v39 }
 0x8cf   : > { %4833 = vmatpush3.msra.mxu1 %v6001_v16 }
 0x8d0   : > { %4834 = vmatprep.subr.mxu1 %v5864_v39 }
 0x8d1   : > { %4835 = vmatpush3.msra.mxu1 %v5996_v15 }
 0x8d2   : > { %4836 = vmatprep.subr.mxu1 %v5864_v39 }
 0x8d3   : > { %4837 = vmatpush3.msra.mxu1 %v5991_v14 }
 0x8d4   : > { %4838 = vmatprep.subr.mxu1 %v5864_v39 }
 0x8d5   : > { %4839 = vmatpush3.msra.mxu1 %v5986_v13 }
 0x8d6   : > { %4840 = vmatprep.subr.mxu1 %v5864_v39 }
 0x8d7   : > { %4841 = vmatpush3.msra.mxu1 %v5981_v12 }
 0x8d8   : > { %4842 = vmatprep.subr.mxu1 %v5864_v39 }
 0x8d9   : > { %4843 = vmatpush3.msra.mxu1 %v5976_v11 }
 0x8da   : > { %4844 = vmatprep.subr.mxu1 %v5864_v39 }
 0x8db   : > { %4845 = vmatpush3.msra.mxu1 %v5971_v10 }
 0x8dc   : > { %4846 = vmatprep.subr.mxu1 %v5864_v39 }
 0x8dd   : > { %4847 = vmatpush3.msra.mxu1 %v5966_v9 }
 0x8de   : > { %4848 = vmatprep.subr.mxu1 %v5864_v39 }
 0x8df   : > { %4849 = vmatpush3.msra.mxu1 %v5961_v8 }
 0x8e0   : > { %4850 = vmatprep.subr.mxu1 %v5864_v39 }
 0x8e1   : > { %4851 = vmatpush3.msra.mxu1 %v5956_v7 }
 0x8e2   : > { %4852 = vmatprep.subr.mxu1 %v5864_v39 }
 0x8e3   : > { %4853 = vmatpush3.msra.mxu1 %v5951_v6 }
 0x8e4   : > { %4854 = vmatprep.subr.mxu1 %v5864_v39 }
 0x8e5   : > { %4855 = vmatpush3.msra.mxu1 %v5946_v5 }
 0x8e6   : > { %4894 = vmatprep.subr.mxu1 %v5864_v39 }
 0x986   : > { %v970_v47 = vpop.f32.mrf.mxu1 }
 0x987   : > { %v978_v48 = vadd.f32 %v6434_v61, %v970_v47 }
 0x988   : > { %v4812_v49 = vpop.f32.mrf.mxu1 }
 0x989   : > { %v979_v51 = vmul.f32 0.041666668, %v978_v48  ;;  %v6657_v48 = vld [vmem:[%s6219_s16 + $0x20] sm:$0xff] }
 0x98b   : > { %v6520_v52 = vadd.f32 %v5858_v38, %v979_v51 }
 0x98d   : > { %4822 = vmatmul.mubr.msk.f32.vlgmr.msra.gmra.mxu0 %vm97_vm1, %v6520_v52 }
 0x98e   : > { %4860 = vmatpush3.msra.mxu0 %v6106_v37  ;;  %4891 = vmatprep.mubr.msk.f32.mxu0 %vm5865_vm0, %v5864_v39 }
 0x98f   : > { %4861 = vmatprep.subr.mxu0 %v5864_v39 }
 0x990   : > { %4862 = vmatpush3.msra.mxu0 %v6101_v36 }
 0x991   : > { %4863 = vmatprep.subr.mxu0 %v5864_v39 }
 0x992   : > { %4864 = vmatpush3.msra.mxu0 %v6096_v35 }
 0x993   : > { %4865 = vmatprep.subr.mxu0 %v5864_v39 }
 0x994   : > { %4866 = vmatpush3.msra.mxu0 %v6091_v34 }
 0x995   : > { %4867 = vmatprep.subr.mxu0 %v5864_v39 }
 0x996   : > { %4868 = vmatpush3.msra.mxu0 %v6086_v33 }
 0x997   : > { %4869 = vmatprep.subr.mxu0 %v5864_v39 }
 0x998   : > { %4870 = vmatpush3.msra.mxu0 %v6081_v32 }
 0x999   : > { %4871 = vmatprep.subr.mxu0 %v5864_v39 }
 0x99a   : > { %4872 = vmatpush3.msra.mxu0 %v6076_v31 }
 0x99b   : > { %4873 = vmatprep.subr.mxu0 %v5864_v39 }
 0x99c   : > { %4874 = vmatpush3.msra.mxu0 %v6071_v30 }
 0x99d   : > { %4875 = vmatprep.subr.mxu0 %v5864_v39 }
 0x99e   : > { %4876 = vmatpush3.msra.mxu0 %v6066_v29 }
 0x99f   : > { %4877 = vmatprep.subr.mxu0 %v5864_v39 }
 0x9a0   : > { %4878 = vmatpush3.msra.mxu0 %v6061_v28 }
 0x9a1   : > { %4879 = vmatprep.subr.mxu0 %v5864_v39 }
 0x9a2   : > { %4880 = vmatpush3.msra.mxu0 %v6056_v27 }
 0x9a3   : > { %4881 = vmatprep.subr.mxu0 %v5864_v39 }
 0x9a4   : > { %4882 = vmatpush3.msra.mxu0 %v6051_v26 }
 0x9a5   : > { %4883 = vmatprep.subr.mxu0 %v5864_v39 }
 0x9a6   : > { %4884 = vmatpush3.msra.mxu0 %v6046_v25 }
 0x9a7   : > { %4885 = vmatprep.subr.mxu0 %v5864_v39 }
 0x9a8   : > { %4886 = vmatpush3.msra.mxu0 %v6041_v24 }
 0x9a9   : > { %4887 = vmatprep.subr.mxu0 %v5864_v39 }
 0x9aa   : > { %4888 = vmatpush3.msra.mxu0 %v6036_v23 }
 0x9ab   : > { %4889 = vmatprep.subr.mxu0 %v5864_v39 }
 0x9ac   : > { %4890 = vmatpush3.msra.mxu0 %v6031_v22 }
 0x9ad   : > { %4905 = vmatprep.subr.mxu0 %v5864_v39 }
 0xa4d   : > { %v1063_v38 = vpop.f32.mrf.mxu0 }
 0xa4e   : > { %v1064_v53 = vadd.f32 %v5941_v4, %v1063_v38 }
 0xa4f   : > { %v4823_v54 = vpop.f32.mrf.mxu0 }
 0xa50   : > { %v1067_v55 = vmax.f32 %v1064_v53, 0.0 }
 0xa52   : > { %4857 = vmatmul.mubr.f32.vlgmr.msra.gmra.mxu1 %v1067_v55 }
 0xa53   : > { %4895 = vmatpush3.msra.mxu1 %v5936_v3  ;;  %4902 = vmatprep.mubr.msk.f32.mxu1 %vm5865_vm0, %v5864_v39 }
 0xa54   : > { %4896 = vmatprep.subr.mxu1 %v5864_v39 }
 0xa55   : > { %4897 = vmatpush3.msra.mxu1 %v5931_v2 }
 0xa56   : > { %4898 = vmatprep.subr.mxu1 %v5864_v39 }
 0xa57   : > { %4899 = vmatpush3.msra.mxu1 %v5926_v1 }
 0xa58   : > { %4900 = vmatprep.subr.mxu1 %v5864_v39 }
 0xa59   : > { %4901 = vmatpush3.msra.mxu1 %v5921_v0 }
 0xa5a   : > { %4940 = vmatprep.subr.mxu1 %v5864_v39 }
 0xb12   : > { %v1134_v56 = vpop.f32.mrf.mxu1 }
 0xb13   : > { %v1135_v57 = vadd.f32 %v6026_v21, %v1134_v56 }
 0xb14   : > { %v4858_v58 = vpop.f32.mrf.mxu1 }
 0xb15   : > { %5824 = vtanh.f32 %v1135_v57 }
 0xb22   : > { %v5825_v60 = vpop.eup %5824 }
 0xb23   : > { %v1139_v61 = vmul.f32 %v5825_v60, %v3815_v59 }
 0xb25   : > { %4892 = vmatmul.mubr.f32.vlgmr.msra.gmra.mxu0 %v1139_v61 }
 0xb26   : > { %4906 = vmatpush3.msra.mxu0 %v6021_v20  ;;  %4937 = vmatprep.mubr.msk.f32.mxu0 %vm5865_vm0, %v5864_v39 }
 0xb27   : > { %4907 = vmatprep.subr.mxu0 %v5864_v39 }
 0xb28   : > { %4908 = vmatpush3.msra.mxu0 %v6016_v19 }
 0xb29   : > { %4909 = vmatprep.subr.mxu0 %v5864_v39 }
 0xb2a   : > { %4910 = vmatpush3.msra.mxu0 %v6011_v18 }
 0xb2b   : > { %4911 = vmatprep.subr.mxu0 %v5864_v39 }
 0xb2c   : > { %4912 = vmatpush3.msra.mxu0 %v6006_v17 }
 0xb2d   : > { %4913 = vmatprep.subr.mxu0 %v5864_v39 }
 0xb2e   : > { %4914 = vmatpush3.msra.mxu0 %v6001_v16 }
 0xb2f   : > { %4915 = vmatprep.subr.mxu0 %v5864_v39 }
 0xb30   : > { %4916 = vmatpush3.msra.mxu0 %v5996_v15 }
 0xb31   : > { %4917 = vmatprep.subr.mxu0 %v5864_v39 }
 0xb32   : > { %4918 = vmatpush3.msra.mxu0 %v5991_v14 }
 0xb33   : > { %4919 = vmatprep.subr.mxu0 %v5864_v39 }
 0xb34   : > { %4920 = vmatpush3.msra.mxu0 %v5986_v13 }
 0xb35   : > { %4921 = vmatprep.subr.mxu0 %v5864_v39 }
 0xb36   : > { %4922 = vmatpush3.msra.mxu0 %v5981_v12 }
 0xb37   : > { %4923 = vmatprep.subr.mxu0 %v5864_v39 }
 0xb38   : > { %4924 = vmatpush3.msra.mxu0 %v5976_v11 }
 0xb39   : > { %4925 = vmatprep.subr.mxu0 %v5864_v39 }
 0xb3a   : > { %4926 = vmatpush3.msra.mxu0 %v5971_v10 }
 0xb3b   : > { %4927 = vmatprep.subr.mxu0 %v5864_v39 }
 0xb3c   : > { %4928 = vmatpush3.msra.mxu0 %v5966_v9 }
 0xb3d   : > { %4929 = vmatprep.subr.mxu0 %v5864_v39 }
 0xb3e   : > { %4930 = vmatpush3.msra.mxu0 %v5961_v8 }
 0xb3f   : > { %4931 = vmatprep.subr.mxu0 %v5864_v39 }
 0xb40   : > { %4932 = vmatpush3.msra.mxu0 %v5956_v7 }
 0xb41   : > { %4933 = vmatprep.subr.mxu0 %v5864_v39 }
 0xb42   : > { %4934 = vmatpush3.msra.mxu0 %v5951_v6 }
 0xb43   : > { %4935 = vmatprep.subr.mxu0 %v5864_v39 }
 0xb44   : > { %4936 = vmatpush3.msra.mxu0 %v5946_v5 }
 0xb45   : > { %4975 = vmatprep.subr.mxu0 %v5864_v39 }
 0xbe5   : > { %v6605_v50 = vpop.f32.mrf.mxu0 }
 0xbe6   : > { %v1210_v62 = vmul.f32 0.125, %v6605_v50 }
 0xbe7   : > { %v4893_v63 = vpop.f32.mrf.mxu0 }
 0xbe8   : > { %v1211_v40 = vadd.f32 %v1210_v62, %v6520_v52 }
 0xbea   : > { %4903 = vmatmul.mubr.msk.f32.vlgmr.msra.gmra.mxu1 %vm97_vm1, %v1211_v40 }
 0xbeb   : > { %4941 = vmatpush3.msra.mxu1 %v6106_v37  ;;  %4972 = vmatprep.mubr.msk.f32.mxu1 %vm5865_vm0, %v5864_v39 }
 0xbec   : > { %4942 = vmatprep.subr.mxu1 %v5864_v39 }
 0xbed   : > { %4943 = vmatpush3.msra.mxu1 %v6101_v36 }
 0xbee   : > { %4944 = vmatprep.subr.mxu1 %v5864_v39 }
 0xbef   : > { %4945 = vmatpush3.msra.mxu1 %v6096_v35 }
 0xbf0   : > { %4946 = vmatprep.subr.mxu1 %v5864_v39 }
 0xbf1   : > { %4947 = vmatpush3.msra.mxu1 %v6091_v34 }
 0xbf2   : > { %4948 = vmatprep.subr.mxu1 %v5864_v39 }
 0xbf3   : > { %4949 = vmatpush3.msra.mxu1 %v6086_v33 }
 0xbf4   : > { %4950 = vmatprep.subr.mxu1 %v5864_v39 }
 0xbf5   : > { %4951 = vmatpush3.msra.mxu1 %v6081_v32 }
 0xbf6   : > { %4952 = vmatprep.subr.mxu1 %v5864_v39 }
 0xbf7   : > { %4953 = vmatpush3.msra.mxu1 %v6076_v31 }
 0xbf8   : > { %4954 = vmatprep.subr.mxu1 %v5864_v39 }
 0xbf9   : > { %4955 = vmatpush3.msra.mxu1 %v6071_v30 }
 0xbfa   : > { %4956 = vmatprep.subr.mxu1 %v5864_v39 }
 0xbfb   : > { %4957 = vmatpush3.msra.mxu1 %v6066_v29 }
 0xbfc   : > { %4958 = vmatprep.subr.mxu1 %v5864_v39 }
 0xbfd   : > { %4959 = vmatpush3.msra.mxu1 %v6061_v28 }
 0xbfe   : > { %4960 = vmatprep.subr.mxu1 %v5864_v39 }
 0xbff   : > { %4961 = vmatpush3.msra.mxu1 %v6056_v27 }
 0xc00   : > { %4962 = vmatprep.subr.mxu1 %v5864_v39 }
 0xc01   : > { %4963 = vmatpush3.msra.mxu1 %v6051_v26 }
 0xc02   : > { %4964 = vmatprep.subr.mxu1 %v5864_v39 }
 0xc03   : > { %4965 = vmatpush3.msra.mxu1 %v6046_v25 }
 0xc04   : > { %4966 = vmatprep.subr.mxu1 %v5864_v39 }
 0xc05   : > { %4967 = vmatpush3.msra.mxu1 %v6041_v24 }
 0xc06   : > { %4968 = vmatprep.subr.mxu1 %v5864_v39 }
 0xc07   : > { %4969 = vmatpush3.msra.mxu1 %v6036_v23 }
 0xc08   : > { %4970 = vmatprep.subr.mxu1 %v5864_v39 }
 0xc09   : > { %4971 = vmatpush3.msra.mxu1 %v6031_v22 }
 0xc0a   : > { %4986 = vmatprep.subr.mxu1 %v5864_v39 }
 0xcaa   : > { %v1281_v41 = vpop.f32.mrf.mxu1 }
 0xcab   : > { %v1282_v42 = vadd.f32 %v5941_v4, %v1281_v41 }
 0xcac   : > { %v4904_v43 = vpop.f32.mrf.mxu1 }
 0xcad   : > { %v1285_v44 = vmax.f32 %v1282_v42, 0.0 }
 0xcaf   : > { %4938 = vmatmul.mubr.f32.vlgmr.msra.gmra.mxu0 %v1285_v44 }
 0xcb0   : > { %4976 = vmatpush3.msra.mxu0 %v5936_v3  ;;  %4983 = vmatprep.mubr.msk.f32.mxu0 %vm5865_vm0, %v5864_v39 }
 0xcb1   : > { %4977 = vmatprep.subr.mxu0 %v5864_v39 }
 0xcb2   : > { %4978 = vmatpush3.msra.mxu0 %v5931_v2 }
 0xcb3   : > { %4979 = vmatprep.subr.mxu0 %v5864_v39 }
 0xcb4   : > { %4980 = vmatpush3.msra.mxu0 %v5926_v1 }
 0xcb5   : > { %4981 = vmatprep.subr.mxu0 %v5864_v39 }
 0xcb6   : > { %4982 = vmatpush3.msra.mxu0 %v5921_v0 }
 0xcb7   : > { %5021 = vmatprep.subr.mxu0 %v5864_v39 }
 0xd6f   : > { %v1352_v45 = vpop.f32.mrf.mxu0 }
 0xd70   : > { %v1353_v46 = vadd.f32 %v6026_v21, %v1352_v45 }
 0xd71   : > { %v4939_v47 = vpop.f32.mrf.mxu0 }
 0xd72   : > { %5826 = vtanh.f32 %v1353_v46 }
 0xd7f   : > { %v5827_v49 = vpop.eup %5826 }
 0xd80   : > { %v1357_v51 = vmul.f32 %v5827_v49, %v6657_v48 }
 0xd82   : > { %4973 = vmatmul.mubr.f32.vlgmr.msra.gmra.mxu1 %v1357_v51 }
 0xd83   : > { %4987 = vmatpush3.msra.mxu1 %v6021_v20  ;;  %5018 = vmatprep.mubr.msk.f32.mxu1 %vm5865_vm0, %v5864_v39 }
 0xd84   : > { %4988 = vmatprep.subr.mxu1 %v5864_v39 }
 0xd85   : > { %4989 = vmatpush3.msra.mxu1 %v6016_v19 }
 0xd86   : > { %4990 = vmatprep.subr.mxu1 %v5864_v39 }
 0xd87   : > { %4991 = vmatpush3.msra.mxu1 %v6011_v18 }
 0xd88   : > { %4992 = vmatprep.subr.mxu1 %v5864_v39 }
 0xd89   : > { %4993 = vmatpush3.msra.mxu1 %v6006_v17 }
 0xd8a   : > { %4994 = vmatprep.subr.mxu1 %v5864_v39 }
 0xd8b   : > { %4995 = vmatpush3.msra.mxu1 %v6001_v16 }
 0xd8c   : > { %4996 = vmatprep.subr.mxu1 %v5864_v39 }
 0xd8d   : > { %4997 = vmatpush3.msra.mxu1 %v5996_v15 }
 0xd8e   : > { %4998 = vmatprep.subr.mxu1 %v5864_v39 }
 0xd8f   : > { %4999 = vmatpush3.msra.mxu1 %v5991_v14 }
 0xd90   : > { %5000 = vmatprep.subr.mxu1 %v5864_v39 }
 0xd91   : > { %5001 = vmatpush3.msra.mxu1 %v5986_v13 }
 0xd92   : > { %5002 = vmatprep.subr.mxu1 %v5864_v39 }
 0xd93   : > { %5003 = vmatpush3.msra.mxu1 %v5981_v12 }
 0xd94   : > { %5004 = vmatprep.subr.mxu1 %v5864_v39 }
 0xd95   : > { %5005 = vmatpush3.msra.mxu1 %v5976_v11 }
 0xd96   : > { %5006 = vmatprep.subr.mxu1 %v5864_v39 }
 0xd97   : > { %5007 = vmatpush3.msra.mxu1 %v5971_v10 }
 0xd98   : > { %5008 = vmatprep.subr.mxu1 %v5864_v39 }
 0xd99   : > { %5009 = vmatpush3.msra.mxu1 %v5966_v9 }
 0xd9a   : > { %5010 = vmatprep.subr.mxu1 %v5864_v39 }
 0xd9b   : > { %5011 = vmatpush3.msra.mxu1 %v5961_v8 }
 0xd9c   : > { %5012 = vmatprep.subr.mxu1 %v5864_v39 }
 0xd9d   : > { %5013 = vmatpush3.msra.mxu1 %v5956_v7 }
 0xd9e   : > { %5014 = vmatprep.subr.mxu1 %v5864_v39 }
 0xd9f   : > { %5015 = vmatpush3.msra.mxu1 %v5951_v6 }
 0xda0   : > { %5016 = vmatprep.subr.mxu1 %v5864_v39 }
 0xda1   : > { %5017 = vmatpush3.msra.mxu1 %v5946_v5 }
 0xda2   : > { %5056 = vmatprep.subr.mxu1 %v5864_v39 }
 0xe42   : > { %v6694_v38 = vpop.f32.mrf.mxu1 }
 0xe43   : > { %v1428_v53 = vmul.f32 0.125, %v6694_v38  ;;  %v1864_v41 = vmul.f32 2.0, %v6694_v38 }
 0xe44   : > { %v4974_v54 = vpop.f32.mrf.mxu1 }
 0xe45   : > { %v1429_v55 = vadd.f32 %v1428_v53, %v6520_v52  ;;  %v1865_v43 = vadd.f32 %v1864_v41, %v6605_v50 }
 0xe47   : > { %4984 = vmatmul.mubr.msk.f32.vlgmr.msra.gmra.mxu0 %vm97_vm1, %v1429_v55 }
 0xe48   : > { %5022 = vmatpush3.msra.mxu0 %v6106_v37  ;;  %5053 = vmatprep.mubr.msk.f32.mxu0 %vm5865_vm0, %v5864_v39 }
 0xe49   : > { %5023 = vmatprep.subr.mxu0 %v5864_v39 }
 0xe4a   : > { %5024 = vmatpush3.msra.mxu0 %v6101_v36 }
 0xe4b   : > { %5025 = vmatprep.subr.mxu0 %v5864_v39 }
 0xe4c   : > { %5026 = vmatpush3.msra.mxu0 %v6096_v35 }
 0xe4d   : > { %5027 = vmatprep.subr.mxu0 %v5864_v39 }
 0xe4e   : > { %5028 = vmatpush3.msra.mxu0 %v6091_v34 }
 0xe4f   : > { %5029 = vmatprep.subr.mxu0 %v5864_v39 }
 0xe50   : > { %5030 = vmatpush3.msra.mxu0 %v6086_v33 }
 0xe51   : > { %5031 = vmatprep.subr.mxu0 %v5864_v39 }
 0xe52   : > { %5032 = vmatpush3.msra.mxu0 %v6081_v32 }
 0xe53   : > { %5033 = vmatprep.subr.mxu0 %v5864_v39 }
 0xe54   : > { %5034 = vmatpush3.msra.mxu0 %v6076_v31 }
 0xe55   : > { %5035 = vmatprep.subr.mxu0 %v5864_v39 }
 0xe56   : > { %5036 = vmatpush3.msra.mxu0 %v6071_v30 }
 0xe57   : > { %5037 = vmatprep.subr.mxu0 %v5864_v39 }
 0xe58   : > { %5038 = vmatpush3.msra.mxu0 %v6066_v29 }
 0xe59   : > { %5039 = vmatprep.subr.mxu0 %v5864_v39 }
 0xe5a   : > { %5040 = vmatpush3.msra.mxu0 %v6061_v28 }
 0xe5b   : > { %5041 = vmatprep.subr.mxu0 %v5864_v39 }
 0xe5c   : > { %5042 = vmatpush3.msra.mxu0 %v6056_v27 }
 0xe5d   : > { %5043 = vmatprep.subr.mxu0 %v5864_v39 }
 0xe5e   : > { %5044 = vmatpush3.msra.mxu0 %v6051_v26 }
 0xe5f   : > { %5045 = vmatprep.subr.mxu0 %v5864_v39 }
 0xe60   : > { %5046 = vmatpush3.msra.mxu0 %v6046_v25 }
 0xe61   : > { %5047 = vmatprep.subr.mxu0 %v5864_v39 }
 0xe62   : > { %5048 = vmatpush3.msra.mxu0 %v6041_v24 }
 0xe63   : > { %5049 = vmatprep.subr.mxu0 %v5864_v39 }
 0xe64   : > { %5050 = vmatpush3.msra.mxu0 %v6036_v23 }
 0xe65   : > { %5051 = vmatprep.subr.mxu0 %v5864_v39 }
 0xe66   : > { %5052 = vmatpush3.msra.mxu0 %v6031_v22 }
 0xe67   : > { %5067 = vmatprep.subr.mxu0 %v5864_v39 }
 0xf07   : > { %v1499_v56 = vpop.f32.mrf.mxu0 }
 0xf08   : > { %v1500_v57 = vadd.f32 %v5941_v4, %v1499_v56  ;;  %v3823_v56 = vld [vmem:[%s6219_s16 + $0x28] sm:$0xff] }
 0xf09   : > { %v4985_v58 = vpop.f32.mrf.mxu0 }
 0xf0a   : > { %v1503_v59 = vmax.f32 %v1500_v57, 0.0 }
 0xf0c   : > { %5019 = vmatmul.mubr.f32.vlgmr.msra.gmra.mxu1 %v1503_v59 }
 0xf0d   : > { %5057 = vmatpush3.msra.mxu1 %v5936_v3  ;;  %5064 = vmatprep.mubr.msk.f32.mxu1 %vm5865_vm0, %v5864_v39 }
 0xf0e   : > { %5058 = vmatprep.subr.mxu1 %v5864_v39 }
 0xf0f   : > { %5059 = vmatpush3.msra.mxu1 %v5931_v2 }
 0xf10   : > { %5060 = vmatprep.subr.mxu1 %v5864_v39 }
 0xf11   : > { %5061 = vmatpush3.msra.mxu1 %v5926_v1 }
 0xf12   : > { %5062 = vmatprep.subr.mxu1 %v5864_v39 }
 0xf13   : > { %5063 = vmatpush3.msra.mxu1 %v5921_v0 }
 0xf14   : > { %5102 = vmatprep.subr.mxu1 %v5864_v39 }
 0xfcc   : > { %v1570_v60 = vpop.f32.mrf.mxu1 }
 0xfcd   : > { %v1571_v61 = vadd.f32 %v6026_v21, %v1570_v60 }
 0xfce   : > { %v5020_v62 = vpop.f32.mrf.mxu1 }
 0xfcf   : > { %5828 = vtanh.f32 %v1571_v61 }
 0xfdc   : > { %v5829_v63 = vpop.eup %5828 }
 0xfdd   : > { %v1575_v40 = vmul.f32 %v5829_v63, %v6657_v48 }
 0xfdf   : > { %5054 = vmatmul.mubr.f32.vlgmr.msra.gmra.mxu0 %v1575_v40 }
 0xfe0   : > { %5068 = vmatpush3.msra.mxu0 %v6021_v20  ;;  %5099 = vmatprep.mubr.msk.f32.mxu0 %vm5865_vm0, %v5864_v39 }
 0xfe1   : > { %5069 = vmatprep.subr.mxu0 %v5864_v39 }
 0xfe2   : > { %5070 = vmatpush3.msra.mxu0 %v6016_v19 }
 0xfe3   : > { %5071 = vmatprep.subr.mxu0 %v5864_v39 }
 0xfe4   : > { %5072 = vmatpush3.msra.mxu0 %v6011_v18 }
 0xfe5   : > { %5073 = vmatprep.subr.mxu0 %v5864_v39 }
 0xfe6   : > { %5074 = vmatpush3.msra.mxu0 %v6006_v17 }
 0xfe7   : > { %5075 = vmatprep.subr.mxu0 %v5864_v39 }
 0xfe8   : > { %5076 = vmatpush3.msra.mxu0 %v6001_v16 }
 0xfe9   : > { %5077 = vmatprep.subr.mxu0 %v5864_v39 }
 0xfea   : > { %5078 = vmatpush3.msra.mxu0 %v5996_v15 }
 0xfeb   : > { %5079 = vmatprep.subr.mxu0 %v5864_v39 }
 0xfec   : > { %5080 = vmatpush3.msra.mxu0 %v5991_v14 }
 0xfed   : > { %5081 = vmatprep.subr.mxu0 %v5864_v39 }
 0xfee   : > { %5082 = vmatpush3.msra.mxu0 %v5986_v13 }
 0xfef   : > { %5083 = vmatprep.subr.mxu0 %v5864_v39 }
 0xff0   : > { %5084 = vmatpush3.msra.mxu0 %v5981_v12 }
 0xff1   : > { %5085 = vmatprep.subr.mxu0 %v5864_v39 }
 0xff2   : > { %5086 = vmatpush3.msra.mxu0 %v5976_v11 }
 0xff3   : > { %5087 = vmatprep.subr.mxu0 %v5864_v39 }
 0xff4   : > { %5088 = vmatpush3.msra.mxu0 %v5971_v10 }
 0xff5   : > { %5089 = vmatprep.subr.mxu0 %v5864_v39 }
 0xff6   : > { %5090 = vmatpush3.msra.mxu0 %v5966_v9 }
 0xff7   : > { %5091 = vmatprep.subr.mxu0 %v5864_v39 }
 0xff8   : > { %5092 = vmatpush3.msra.mxu0 %v5961_v8 }
 0xff9   : > { %5093 = vmatprep.subr.mxu0 %v5864_v39 }
 0xffa   : > { %5094 = vmatpush3.msra.mxu0 %v5956_v7 }
 0xffb   : > { %5095 = vmatprep.subr.mxu0 %v5864_v39 }
 0xffc   : > { %5096 = vmatpush3.msra.mxu0 %v5951_v6 }
 0xffd   : > { %5097 = vmatprep.subr.mxu0 %v5864_v39 }
 0xffe   : > { %5098 = vmatpush3.msra.mxu0 %v5946_v5 }
 0xfff   : > { %5137 = vmatprep.subr.mxu0 %v5864_v39 }
0x109f   : > { %v1642_v42 = vpop.f32.mrf.mxu0 }
0x10a0   : > { %v1646_v44 = vmul.f32 0.25, %v1642_v42  ;;  %v1866_v45 = vmul.f32 2.0, %v1642_v42 }
0x10a1   : > { %v5055_v46 = vpop.f32.mrf.mxu0 }
0x10a2   : > { %v1647_v47 = vadd.f32 %v1646_v44, %v6520_v52  ;;  %v6783_v48 = vadd.f32 %v1866_v45, %v1865_v43  ;;  %v3830_v46 = vld [vmem:[%s6219_s16 + $0x30] sm:$0xff] }
0x10a4   : > { %5065 = vmatmul.mubr.msk.f32.vlgmr.msra.gmra.mxu1 %vm97_vm1, %v1647_v47 }
0x10a5   : > { %5103 = vmatpush3.msra.mxu1 %v6106_v37  ;;  %5134 = vmatprep.mubr.msk.f32.mxu1 %vm5865_vm0, %v5864_v39 }
0x10a6   : > { %5104 = vmatprep.subr.mxu1 %v5864_v39 }
0x10a7   : > { %5105 = vmatpush3.msra.mxu1 %v6101_v36 }
0x10a8   : > { %5106 = vmatprep.subr.mxu1 %v5864_v39 }
0x10a9   : > { %5107 = vmatpush3.msra.mxu1 %v6096_v35 }
0x10aa   : > { %5108 = vmatprep.subr.mxu1 %v5864_v39 }
0x10ab   : > { %5109 = vmatpush3.msra.mxu1 %v6091_v34 }
0x10ac   : > { %5110 = vmatprep.subr.mxu1 %v5864_v39 }
0x10ad   : > { %5111 = vmatpush3.msra.mxu1 %v6086_v33 }
0x10ae   : > { %5112 = vmatprep.subr.mxu1 %v5864_v39 }
0x10af   : > { %5113 = vmatpush3.msra.mxu1 %v6081_v32 }
0x10b0   : > { %5114 = vmatprep.subr.mxu1 %v5864_v39 }
0x10b1   : > { %5115 = vmatpush3.msra.mxu1 %v6076_v31 }
0x10b2   : > { %5116 = vmatprep.subr.mxu1 %v5864_v39 }
0x10b3   : > { %5117 = vmatpush3.msra.mxu1 %v6071_v30 }
0x10b4   : > { %5118 = vmatprep.subr.mxu1 %v5864_v39 }
0x10b5   : > { %5119 = vmatpush3.msra.mxu1 %v6066_v29 }
0x10b6   : > { %5120 = vmatprep.subr.mxu1 %v5864_v39 }
0x10b7   : > { %5121 = vmatpush3.msra.mxu1 %v6061_v28 }
0x10b8   : > { %5122 = vmatprep.subr.mxu1 %v5864_v39 }
0x10b9   : > { %5123 = vmatpush3.msra.mxu1 %v6056_v27 }
0x10ba   : > { %5124 = vmatprep.subr.mxu1 %v5864_v39 }
0x10bb   : > { %5125 = vmatpush3.msra.mxu1 %v6051_v26 }
0x10bc   : > { %5126 = vmatprep.subr.mxu1 %v5864_v39 }
0x10bd   : > { %5127 = vmatpush3.msra.mxu1 %v6046_v25 }
0x10be   : > { %5128 = vmatprep.subr.mxu1 %v5864_v39 }
0x10bf   : > { %5129 = vmatpush3.msra.mxu1 %v6041_v24 }
0x10c0   : > { %5130 = vmatprep.subr.mxu1 %v5864_v39 }
0x10c1   : > { %5131 = vmatpush3.msra.mxu1 %v6036_v23 }
0x10c2   : > { %5132 = vmatprep.subr.mxu1 %v5864_v39 }
0x10c3   : > { %5133 = vmatpush3.msra.mxu1 %v6031_v22 }
0x10c4   : > { %5148 = vmatprep.subr.mxu1 %v5864_v39 }
0x1164   : > { %v1717_v50 = vpop.f32.mrf.mxu1 }
0x1165   : > { %v1718_v49 = vadd.f32 %v5941_v4, %v1717_v50 }
0x1166   : > { %v5066_v51 = vpop.f32.mrf.mxu1 }
0x1167   : > { %v1721_v38 = vmax.f32 %v1718_v49, 0.0 }
0x1169   : > { %5100 = vmatmul.mubr.f32.vlgmr.msra.gmra.mxu0 %v1721_v38 }
0x116a   : > { %5138 = vmatpush3.msra.mxu0 %v5936_v3  ;;  %5145 = vmatprep.mubr.msk.f32.mxu0 %vm5865_vm0, %v5864_v39 }
0x116b   : > { %5139 = vmatprep.subr.mxu0 %v5864_v39 }
0x116c   : > { %5140 = vmatpush3.msra.mxu0 %v5931_v2 }
0x116d   : > { %5141 = vmatprep.subr.mxu0 %v5864_v39 }
0x116e   : > { %5142 = vmatpush3.msra.mxu0 %v5926_v1 }
0x116f   : > { %5143 = vmatprep.subr.mxu0 %v5864_v39 }
0x1170   : > { %5144 = vmatpush3.msra.mxu0 %v5921_v0 }
0x1171   : > { %5183 = vmatprep.subr.mxu0 %v5864_v39 }
0x1229   : > { %v1788_v53 = vpop.f32.mrf.mxu0 }
0x122a   : > { %v1789_v54 = vadd.f32 %v6026_v21, %v1788_v53 }
0x122b   : > { %v5101_v55 = vpop.f32.mrf.mxu0 }
0x122c   : > { %5830 = vtanh.f32 %v1789_v54 }
0x1239   : > { %v5831_v57 = vpop.eup %5830 }
0x123a   : > { %v1793_v58 = vmul.f32 %v5831_v57, %v3823_v56 }
0x123c   : > { %5135 = vmatmul.mubr.f32.vlgmr.msra.gmra.mxu1 %v1793_v58 }
0x123d   : > { %5149 = vmatpush3.msra.mxu1 %v6021_v20  ;;  %5180 = vmatprep.mubr.msk.f32.mxu1 %vm5865_vm0, %v5864_v39 }
0x123e   : > { %5150 = vmatprep.subr.mxu1 %v5864_v39 }
0x123f   : > { %5151 = vmatpush3.msra.mxu1 %v6016_v19 }
0x1240   : > { %5152 = vmatprep.subr.mxu1 %v5864_v39 }
0x1241   : > { %5153 = vmatpush3.msra.mxu1 %v6011_v18 }
0x1242   : > { %5154 = vmatprep.subr.mxu1 %v5864_v39 }
0x1243   : > { %5155 = vmatpush3.msra.mxu1 %v6006_v17 }
0x1244   : > { %5156 = vmatprep.subr.mxu1 %v5864_v39 }
0x1245   : > { %5157 = vmatpush3.msra.mxu1 %v6001_v16 }
0x1246   : > { %5158 = vmatprep.subr.mxu1 %v5864_v39 }
0x1247   : > { %5159 = vmatpush3.msra.mxu1 %v5996_v15 }
0x1248   : > { %5160 = vmatprep.subr.mxu1 %v5864_v39 }
0x1249   : > { %5161 = vmatpush3.msra.mxu1 %v5991_v14 }
0x124a   : > { %5162 = vmatprep.subr.mxu1 %v5864_v39 }
0x124b   : > { %5163 = vmatpush3.msra.mxu1 %v5986_v13 }
0x124c   : > { %5164 = vmatprep.subr.mxu1 %v5864_v39 }
0x124d   : > { %5165 = vmatpush3.msra.mxu1 %v5981_v12 }
0x124e   : > { %5166 = vmatprep.subr.mxu1 %v5864_v39 }
0x124f   : > { %5167 = vmatpush3.msra.mxu1 %v5976_v11 }
0x1250   : > { %5168 = vmatprep.subr.mxu1 %v5864_v39 }
0x1251   : > { %5169 = vmatpush3.msra.mxu1 %v5971_v10 }
0x1252   : > { %5170 = vmatprep.subr.mxu1 %v5864_v39 }
0x1253   : > { %5171 = vmatpush3.msra.mxu1 %v5966_v9 }
0x1254   : > { %5172 = vmatprep.subr.mxu1 %v5864_v39 }
0x1255   : > { %5173 = vmatpush3.msra.mxu1 %v5961_v8 }
0x1256   : > { %5174 = vmatprep.subr.mxu1 %v5864_v39 }
0x1257   : > { %5175 = vmatpush3.msra.mxu1 %v5956_v7 }
0x1258   : > { %5176 = vmatprep.subr.mxu1 %v5864_v39 }
0x1259   : > { %5177 = vmatpush3.msra.mxu1 %v5951_v6 }
0x125a   : > { %5178 = vmatprep.subr.mxu1 %v5864_v39 }
0x125b   : > { %5179 = vmatpush3.msra.mxu1 %v5946_v5 }
0x125c   : > { %5218 = vmatprep.subr.mxu1 %v5864_v39 }
0x12fc   : > { %v1860_v59 = vpop.f32.mrf.mxu1 }
0x12fd   : > { %v1868_v60 = vadd.f32 %v6783_v48, %v1860_v59 }
0x12fe   : > { %v5136_v61 = vpop.f32.mrf.mxu1 }
0x12ff   : > { %v1869_v62 = vmul.f32 0.041666668, %v1868_v60  ;;  %v7006_v60 = vld [vmem:[%s6219_s16 + $0x38] sm:$0xff] }
0x1301   : > { %v6869_v63 = vadd.f32 %v1869_v62, %v6520_v52 }
0x1303   : > { %5146 = vmatmul.mubr.msk.f32.vlgmr.msra.gmra.mxu0 %vm97_vm1, %v6869_v63 }
0x1304   : > { %5184 = vmatpush3.msra.mxu0 %v6106_v37  ;;  %5215 = vmatprep.mubr.msk.f32.mxu0 %vm5865_vm0, %v5864_v39 }
0x1305   : > { %5185 = vmatprep.subr.mxu0 %v5864_v39 }
0x1306   : > { %5186 = vmatpush3.msra.mxu0 %v6101_v36 }
0x1307   : > { %5187 = vmatprep.subr.mxu0 %v5864_v39 }
0x1308   : > { %5188 = vmatpush3.msra.mxu0 %v6096_v35 }
0x1309   : > { %5189 = vmatprep.subr.mxu0 %v5864_v39 }
0x130a   : > { %5190 = vmatpush3.msra.mxu0 %v6091_v34 }
0x130b   : > { %5191 = vmatprep.subr.mxu0 %v5864_v39 }
0x130c   : > { %5192 = vmatpush3.msra.mxu0 %v6086_v33 }
0x130d   : > { %5193 = vmatprep.subr.mxu0 %v5864_v39 }
0x130e   : > { %5194 = vmatpush3.msra.mxu0 %v6081_v32 }
0x130f   : > { %5195 = vmatprep.subr.mxu0 %v5864_v39 }
0x1310   : > { %5196 = vmatpush3.msra.mxu0 %v6076_v31 }
0x1311   : > { %5197 = vmatprep.subr.mxu0 %v5864_v39 }
0x1312   : > { %5198 = vmatpush3.msra.mxu0 %v6071_v30 }
0x1313   : > { %5199 = vmatprep.subr.mxu0 %v5864_v39 }
0x1314   : > { %5200 = vmatpush3.msra.mxu0 %v6066_v29 }
0x1315   : > { %5201 = vmatprep.subr.mxu0 %v5864_v39 }
0x1316   : > { %5202 = vmatpush3.msra.mxu0 %v6061_v28 }
0x1317   : > { %5203 = vmatprep.subr.mxu0 %v5864_v39 }
0x1318   : > { %5204 = vmatpush3.msra.mxu0 %v6056_v27 }
0x1319   : > { %5205 = vmatprep.subr.mxu0 %v5864_v39 }
0x131a   : > { %5206 = vmatpush3.msra.mxu0 %v6051_v26 }
0x131b   : > { %5207 = vmatprep.subr.mxu0 %v5864_v39 }
0x131c   : > { %5208 = vmatpush3.msra.mxu0 %v6046_v25 }
0x131d   : > { %5209 = vmatprep.subr.mxu0 %v5864_v39 }
0x131e   : > { %5210 = vmatpush3.msra.mxu0 %v6041_v24 }
0x131f   : > { %5211 = vmatprep.subr.mxu0 %v5864_v39 }
0x1320   : > { %5212 = vmatpush3.msra.mxu0 %v6036_v23 }
0x1321   : > { %5213 = vmatprep.subr.mxu0 %v5864_v39 }
0x1322   : > { %5214 = vmatpush3.msra.mxu0 %v6031_v22 }
0x1323   : > { %5229 = vmatprep.subr.mxu0 %v5864_v39 }
0x13c3   : > { %v1953_v52 = vpop.f32.mrf.mxu0 }
0x13c4   : > { %v1954_v40 = vadd.f32 %v5941_v4, %v1953_v52 }
0x13c5   : > { %v5147_v41 = vpop.f32.mrf.mxu0 }
0x13c6   : > { %v1957_v42 = vmax.f32 %v1954_v40, 0.0 }
0x13c8   : > { %5181 = vmatmul.mubr.f32.vlgmr.msra.gmra.mxu1 %v1957_v42 }
0x13c9   : > { %5219 = vmatpush3.msra.mxu1 %v5936_v3  ;;  %5226 = vmatprep.mubr.msk.f32.mxu1 %vm5865_vm0, %v5864_v39 }
0x13ca   : > { %5220 = vmatprep.subr.mxu1 %v5864_v39 }
0x13cb   : > { %5221 = vmatpush3.msra.mxu1 %v5931_v2 }
0x13cc   : > { %5222 = vmatprep.subr.mxu1 %v5864_v39 }
0x13cd   : > { %5223 = vmatpush3.msra.mxu1 %v5926_v1 }
0x13ce   : > { %5224 = vmatprep.subr.mxu1 %v5864_v39 }
0x13cf   : > { %5225 = vmatpush3.msra.mxu1 %v5921_v0 }
0x13d0   : > { %5264 = vmatprep.subr.mxu1 %v5864_v39 }
0x1488   : > { %v2024_v43 = vpop.f32.mrf.mxu1 }
0x1489   : > { %v2025_v44 = vadd.f32 %v6026_v21, %v2024_v43 }
0x148a   : > { %v5182_v45 = vpop.f32.mrf.mxu1 }
0x148b   : > { %5832 = vtanh.f32 %v2025_v44 }
0x1498   : > { %v5833_v47 = vpop.eup %5832 }
0x1499   : > { %v2029_v48 = vmul.f32 %v5833_v47, %v3830_v46 }
0x149b   : > { %5216 = vmatmul.mubr.f32.vlgmr.msra.gmra.mxu0 %v2029_v48 }
0x149c   : > { %5230 = vmatpush3.msra.mxu0 %v6021_v20  ;;  %5261 = vmatprep.mubr.msk.f32.mxu0 %vm5865_vm0, %v5864_v39 }
0x149d   : > { %5231 = vmatprep.subr.mxu0 %v5864_v39 }
0x149e   : > { %5232 = vmatpush3.msra.mxu0 %v6016_v19 }
0x149f   : > { %5233 = vmatprep.subr.mxu0 %v5864_v39 }
0x14a0   : > { %5234 = vmatpush3.msra.mxu0 %v6011_v18 }
0x14a1   : > { %5235 = vmatprep.subr.mxu0 %v5864_v39 }
0x14a2   : > { %5236 = vmatpush3.msra.mxu0 %v6006_v17 }
0x14a3   : > { %5237 = vmatprep.subr.mxu0 %v5864_v39 }
0x14a4   : > { %5238 = vmatpush3.msra.mxu0 %v6001_v16 }
0x14a5   : > { %5239 = vmatprep.subr.mxu0 %v5864_v39 }
0x14a6   : > { %5240 = vmatpush3.msra.mxu0 %v5996_v15 }
0x14a7   : > { %5241 = vmatprep.subr.mxu0 %v5864_v39 }
0x14a8   : > { %5242 = vmatpush3.msra.mxu0 %v5991_v14 }
0x14a9   : > { %5243 = vmatprep.subr.mxu0 %v5864_v39 }
0x14aa   : > { %5244 = vmatpush3.msra.mxu0 %v5986_v13 }
0x14ab   : > { %5245 = vmatprep.subr.mxu0 %v5864_v39 }
0x14ac   : > { %5246 = vmatpush3.msra.mxu0 %v5981_v12 }
0x14ad   : > { %5247 = vmatprep.subr.mxu0 %v5864_v39 }
0x14ae   : > { %5248 = vmatpush3.msra.mxu0 %v5976_v11 }
0x14af   : > { %5249 = vmatprep.subr.mxu0 %v5864_v39 }
0x14b0   : > { %5250 = vmatpush3.msra.mxu0 %v5971_v10 }
0x14b1   : > { %5251 = vmatprep.subr.mxu0 %v5864_v39 }
0x14b2   : > { %5252 = vmatpush3.msra.mxu0 %v5966_v9 }
0x14b3   : > { %5253 = vmatprep.subr.mxu0 %v5864_v39 }
0x14b4   : > { %5254 = vmatpush3.msra.mxu0 %v5961_v8 }
0x14b5   : > { %5255 = vmatprep.subr.mxu0 %v5864_v39 }
0x14b6   : > { %5256 = vmatpush3.msra.mxu0 %v5956_v7 }
0x14b7   : > { %5257 = vmatprep.subr.mxu0 %v5864_v39 }
0x14b8   : > { %5258 = vmatpush3.msra.mxu0 %v5951_v6 }
0x14b9   : > { %5259 = vmatprep.subr.mxu0 %v5864_v39 }
0x14ba   : > { %5260 = vmatpush3.msra.mxu0 %v5946_v5 }
0x14bb   : > { %5299 = vmatprep.subr.mxu0 %v5864_v39 }
0x155b   : > { %v6954_v50 = vpop.f32.mrf.mxu0 }
0x155c   : > { %v2100_v49 = vmul.f32 0.125, %v6954_v50 }
0x155d   : > { %v5217_v51 = vpop.f32.mrf.mxu0 }
0x155e   : > { %v2101_v38 = vadd.f32 %v2100_v49, %v6869_v63 }
0x1560   : > { %5227 = vmatmul.mubr.msk.f32.vlgmr.msra.gmra.mxu1 %vm97_vm1, %v2101_v38 }
0x1561   : > { %5265 = vmatpush3.msra.mxu1 %v6106_v37  ;;  %5296 = vmatprep.mubr.msk.f32.mxu1 %vm5865_vm0, %v5864_v39 }
0x1562   : > { %5266 = vmatprep.subr.mxu1 %v5864_v39 }
0x1563   : > { %5267 = vmatpush3.msra.mxu1 %v6101_v36 }
0x1564   : > { %5268 = vmatprep.subr.mxu1 %v5864_v39 }
0x1565   : > { %5269 = vmatpush3.msra.mxu1 %v6096_v35 }
0x1566   : > { %5270 = vmatprep.subr.mxu1 %v5864_v39 }
0x1567   : > { %5271 = vmatpush3.msra.mxu1 %v6091_v34 }
0x1568   : > { %5272 = vmatprep.subr.mxu1 %v5864_v39 }
0x1569   : > { %5273 = vmatpush3.msra.mxu1 %v6086_v33 }
0x156a   : > { %5274 = vmatprep.subr.mxu1 %v5864_v39 }
0x156b   : > { %5275 = vmatpush3.msra.mxu1 %v6081_v32 }
0x156c   : > { %5276 = vmatprep.subr.mxu1 %v5864_v39 }
0x156d   : > { %5277 = vmatpush3.msra.mxu1 %v6076_v31 }
0x156e   : > { %5278 = vmatprep.subr.mxu1 %v5864_v39 }
0x156f   : > { %5279 = vmatpush3.msra.mxu1 %v6071_v30 }
0x1570   : > { %5280 = vmatprep.subr.mxu1 %v5864_v39 }
0x1571   : > { %5281 = vmatpush3.msra.mxu1 %v6066_v29 }
0x1572   : > { %5282 = vmatprep.subr.mxu1 %v5864_v39 }
0x1573   : > { %5283 = vmatpush3.msra.mxu1 %v6061_v28 }
0x1574   : > { %5284 = vmatprep.subr.mxu1 %v5864_v39 }
0x1575   : > { %5285 = vmatpush3.msra.mxu1 %v6056_v27 }
0x1576   : > { %5286 = vmatprep.subr.mxu1 %v5864_v39 }
0x1577   : > { %5287 = vmatpush3.msra.mxu1 %v6051_v26 }
0x1578   : > { %5288 = vmatprep.subr.mxu1 %v5864_v39 }
0x1579   : > { %5289 = vmatpush3.msra.mxu1 %v6046_v25 }
0x157a   : > { %5290 = vmatprep.subr.mxu1 %v5864_v39 }
0x157b   : > { %5291 = vmatpush3.msra.mxu1 %v6041_v24 }
0x157c   : > { %5292 = vmatprep.subr.mxu1 %v5864_v39 }
0x157d   : > { %5293 = vmatpush3.msra.mxu1 %v6036_v23 }
0x157e   : > { %5294 = vmatprep.subr.mxu1 %v5864_v39 }
0x157f   : > { %5295 = vmatpush3.msra.mxu1 %v6031_v22 }
0x1580   : > { %5310 = vmatprep.subr.mxu1 %v5864_v39 }
0x1620   : > { %v2171_v53 = vpop.f32.mrf.mxu1 }
0x1621   : > { %v2172_v54 = vadd.f32 %v5941_v4, %v2171_v53 }
0x1622   : > { %v5228_v55 = vpop.f32.mrf.mxu1 }
0x1623   : > { %v2175_v56 = vmax.f32 %v2172_v54, 0.0 }
0x1625   : > { %5262 = vmatmul.mubr.f32.vlgmr.msra.gmra.mxu0 %v2175_v56 }
0x1626   : > { %5300 = vmatpush3.msra.mxu0 %v5936_v3  ;;  %5307 = vmatprep.mubr.msk.f32.mxu0 %vm5865_vm0, %v5864_v39 }
0x1627   : > { %5301 = vmatprep.subr.mxu0 %v5864_v39 }
0x1628   : > { %5302 = vmatpush3.msra.mxu0 %v5931_v2 }
0x1629   : > { %5303 = vmatprep.subr.mxu0 %v5864_v39 }
0x162a   : > { %5304 = vmatpush3.msra.mxu0 %v5926_v1 }
0x162b   : > { %5305 = vmatprep.subr.mxu0 %v5864_v39 }
0x162c   : > { %5306 = vmatpush3.msra.mxu0 %v5921_v0 }
0x162d   : > { %5345 = vmatprep.subr.mxu0 %v5864_v39 }
0x16e5   : > { %v2242_v57 = vpop.f32.mrf.mxu0 }
0x16e6   : > { %v2243_v58 = vadd.f32 %v6026_v21, %v2242_v57 }
0x16e7   : > { %v5263_v59 = vpop.f32.mrf.mxu0 }
0x16e8   : > { %5834 = vtanh.f32 %v2243_v58 }
0x16f5   : > { %v5835_v61 = vpop.eup %5834 }
0x16f6   : > { %v2247_v62 = vmul.f32 %v5835_v61, %v7006_v60 }
0x16f8   : > { %5297 = vmatmul.mubr.f32.vlgmr.msra.gmra.mxu1 %v2247_v62 }
0x16f9   : > { %5311 = vmatpush3.msra.mxu1 %v6021_v20  ;;  %5342 = vmatprep.mubr.msk.f32.mxu1 %vm5865_vm0, %v5864_v39 }
0x16fa   : > { %5312 = vmatprep.subr.mxu1 %v5864_v39 }
0x16fb   : > { %5313 = vmatpush3.msra.mxu1 %v6016_v19 }
0x16fc   : > { %5314 = vmatprep.subr.mxu1 %v5864_v39 }
0x16fd   : > { %5315 = vmatpush3.msra.mxu1 %v6011_v18 }
0x16fe   : > { %5316 = vmatprep.subr.mxu1 %v5864_v39 }
0x16ff   : > { %5317 = vmatpush3.msra.mxu1 %v6006_v17 }
0x1700   : > { %5318 = vmatprep.subr.mxu1 %v5864_v39 }
0x1701   : > { %5319 = vmatpush3.msra.mxu1 %v6001_v16 }
0x1702   : > { %5320 = vmatprep.subr.mxu1 %v5864_v39 }
0x1703   : > { %5321 = vmatpush3.msra.mxu1 %v5996_v15 }
0x1704   : > { %5322 = vmatprep.subr.mxu1 %v5864_v39 }
0x1705   : > { %5323 = vmatpush3.msra.mxu1 %v5991_v14 }
0x1706   : > { %5324 = vmatprep.subr.mxu1 %v5864_v39 }
0x1707   : > { %5325 = vmatpush3.msra.mxu1 %v5986_v13 }
0x1708   : > { %5326 = vmatprep.subr.mxu1 %v5864_v39 }
0x1709   : > { %5327 = vmatpush3.msra.mxu1 %v5981_v12 }
0x170a   : > { %5328 = vmatprep.subr.mxu1 %v5864_v39 }
0x170b   : > { %5329 = vmatpush3.msra.mxu1 %v5976_v11 }
0x170c   : > { %5330 = vmatprep.subr.mxu1 %v5864_v39 }
0x170d   : > { %5331 = vmatpush3.msra.mxu1 %v5971_v10 }
0x170e   : > { %5332 = vmatprep.subr.mxu1 %v5864_v39 }
0x170f   : > { %5333 = vmatpush3.msra.mxu1 %v5966_v9 }
0x1710   : > { %5334 = vmatprep.subr.mxu1 %v5864_v39 }
0x1711   : > { %5335 = vmatpush3.msra.mxu1 %v5961_v8 }
0x1712   : > { %5336 = vmatprep.subr.mxu1 %v5864_v39 }
0x1713   : > { %5337 = vmatpush3.msra.mxu1 %v5956_v7 }
0x1714   : > { %5338 = vmatprep.subr.mxu1 %v5864_v39 }
0x1715   : > { %5339 = vmatpush3.msra.mxu1 %v5951_v6 }
0x1716   : > { %5340 = vmatprep.subr.mxu1 %v5864_v39 }
0x1717   : > { %5341 = vmatpush3.msra.mxu1 %v5946_v5 }
0x1718   : > { %5380 = vmatprep.subr.mxu1 %v5864_v39 }
0x17b8   : > { %v7043_v52 = vpop.f32.mrf.mxu1 }
0x17b9   : > { %v2318_v40 = vmul.f32 0.125, %v7043_v52  ;;  %v2754_v53 = vmul.f32 2.0, %v7043_v52 }
0x17ba   : > { %v5298_v41 = vpop.f32.mrf.mxu1 }
0x17bb   : > { %v2319_v42 = vadd.f32 %v2318_v40, %v6869_v63  ;;  %v2755_v55 = vadd.f32 %v2754_v53, %v6954_v50 }
0x17bd   : > { %5308 = vmatmul.mubr.msk.f32.vlgmr.msra.gmra.mxu0 %vm97_vm1, %v2319_v42 }
0x17be   : > { %5346 = vmatpush3.msra.mxu0 %v6106_v37  ;;  %5377 = vmatprep.mubr.msk.f32.mxu0 %vm5865_vm0, %v5864_v39 }
0x17bf   : > { %5347 = vmatprep.subr.mxu0 %v5864_v39 }
0x17c0   : > { %5348 = vmatpush3.msra.mxu0 %v6101_v36 }
0x17c1   : > { %5349 = vmatprep.subr.mxu0 %v5864_v39 }
0x17c2   : > { %5350 = vmatpush3.msra.mxu0 %v6096_v35 }
0x17c3   : > { %5351 = vmatprep.subr.mxu0 %v5864_v39 }
0x17c4   : > { %5352 = vmatpush3.msra.mxu0 %v6091_v34 }
0x17c5   : > { %5353 = vmatprep.subr.mxu0 %v5864_v39 }
0x17c6   : > { %5354 = vmatpush3.msra.mxu0 %v6086_v33 }
0x17c7   : > { %5355 = vmatprep.subr.mxu0 %v5864_v39 }
0x17c8   : > { %5356 = vmatpush3.msra.mxu0 %v6081_v32 }
0x17c9   : > { %5357 = vmatprep.subr.mxu0 %v5864_v39 }
0x17ca   : > { %5358 = vmatpush3.msra.mxu0 %v6076_v31 }
0x17cb   : > { %5359 = vmatprep.subr.mxu0 %v5864_v39 }
0x17cc   : > { %5360 = vmatpush3.msra.mxu0 %v6071_v30 }
0x17cd   : > { %5361 = vmatprep.subr.mxu0 %v5864_v39 }
0x17ce   : > { %5362 = vmatpush3.msra.mxu0 %v6066_v29 }
0x17cf   : > { %5363 = vmatprep.subr.mxu0 %v5864_v39 }
0x17d0   : > { %5364 = vmatpush3.msra.mxu0 %v6061_v28 }
0x17d1   : > { %5365 = vmatprep.subr.mxu0 %v5864_v39 }
0x17d2   : > { %5366 = vmatpush3.msra.mxu0 %v6056_v27 }
0x17d3   : > { %5367 = vmatprep.subr.mxu0 %v5864_v39 }
0x17d4   : > { %5368 = vmatpush3.msra.mxu0 %v6051_v26 }
0x17d5   : > { %5369 = vmatprep.subr.mxu0 %v5864_v39 }
0x17d6   : > { %5370 = vmatpush3.msra.mxu0 %v6046_v25 }
0x17d7   : > { %5371 = vmatprep.subr.mxu0 %v5864_v39 }
0x17d8   : > { %5372 = vmatpush3.msra.mxu0 %v6041_v24 }
0x17d9   : > { %5373 = vmatprep.subr.mxu0 %v5864_v39 }
0x17da   : > { %5374 = vmatpush3.msra.mxu0 %v6036_v23 }
0x17db   : > { %5375 = vmatprep.subr.mxu0 %v5864_v39 }
0x17dc   : > { %5376 = vmatpush3.msra.mxu0 %v6031_v22 }
0x17dd   : > { %5391 = vmatprep.subr.mxu0 %v5864_v39 }
0x187d   : > { %v2389_v43 = vpop.f32.mrf.mxu0 }
0x187e   : > { %v2390_v44 = vadd.f32 %v5941_v4, %v2389_v43  ;;  %v3838_v43 = vld [vmem:[%s6219_s16 + $0x40] sm:$0xff] }
0x187f   : > { %v5309_v45 = vpop.f32.mrf.mxu0 }
0x1880   : > { %v2393_v46 = vmax.f32 %v2390_v44, 0.0 }
0x1882   : > { %5343 = vmatmul.mubr.f32.vlgmr.msra.gmra.mxu1 %v2393_v46 }
0x1883   : > { %5381 = vmatpush3.msra.mxu1 %v5936_v3  ;;  %5388 = vmatprep.mubr.msk.f32.mxu1 %vm5865_vm0, %v5864_v39 }
0x1884   : > { %5382 = vmatprep.subr.mxu1 %v5864_v39 }
0x1885   : > { %5383 = vmatpush3.msra.mxu1 %v5931_v2 }
0x1886   : > { %5384 = vmatprep.subr.mxu1 %v5864_v39 }
0x1887   : > { %5385 = vmatpush3.msra.mxu1 %v5926_v1 }
0x1888   : > { %5386 = vmatprep.subr.mxu1 %v5864_v39 }
0x1889   : > { %5387 = vmatpush3.msra.mxu1 %v5921_v0 }
0x188a   : > { %5426 = vmatprep.subr.mxu1 %v5864_v39 }
0x1942   : > { %v2460_v47 = vpop.f32.mrf.mxu1 }
0x1943   : > { %v2461_v48 = vadd.f32 %v6026_v21, %v2460_v47 }
0x1944   : > { %v5344_v49 = vpop.f32.mrf.mxu1 }
0x1945   : > { %5836 = vtanh.f32 %v2461_v48 }
0x1952   : > { %v5837_v51 = vpop.eup %5836 }
0x1953   : > { %v2465_v38 = vmul.f32 %v5837_v51, %v7006_v60 }
0x1955   : > { %5378 = vmatmul.mubr.f32.vlgmr.msra.gmra.mxu0 %v2465_v38 }
0x1956   : > { %5392 = vmatpush3.msra.mxu0 %v6021_v20  ;;  %5423 = vmatprep.mubr.msk.f32.mxu0 %vm5865_vm0, %v5864_v39 }
0x1957   : > { %5393 = vmatprep.subr.mxu0 %v5864_v39 }
0x1958   : > { %5394 = vmatpush3.msra.mxu0 %v6016_v19 }
0x1959   : > { %5395 = vmatprep.subr.mxu0 %v5864_v39 }
0x195a   : > { %5396 = vmatpush3.msra.mxu0 %v6011_v18 }
0x195b   : > { %5397 = vmatprep.subr.mxu0 %v5864_v39 }
0x195c   : > { %5398 = vmatpush3.msra.mxu0 %v6006_v17 }
0x195d   : > { %5399 = vmatprep.subr.mxu0 %v5864_v39 }
0x195e   : > { %5400 = vmatpush3.msra.mxu0 %v6001_v16 }
0x195f   : > { %5401 = vmatprep.subr.mxu0 %v5864_v39 }
0x1960   : > { %5402 = vmatpush3.msra.mxu0 %v5996_v15 }
0x1961   : > { %5403 = vmatprep.subr.mxu0 %v5864_v39 }
0x1962   : > { %5404 = vmatpush3.msra.mxu0 %v5991_v14 }
0x1963   : > { %5405 = vmatprep.subr.mxu0 %v5864_v39 }
0x1964   : > { %5406 = vmatpush3.msra.mxu0 %v5986_v13 }
0x1965   : > { %5407 = vmatprep.subr.mxu0 %v5864_v39 }
0x1966   : > { %5408 = vmatpush3.msra.mxu0 %v5981_v12 }
0x1967   : > { %5409 = vmatprep.subr.mxu0 %v5864_v39 }
0x1968   : > { %5410 = vmatpush3.msra.mxu0 %v5976_v11 }
0x1969   : > { %5411 = vmatprep.subr.mxu0 %v5864_v39 }
0x196a   : > { %5412 = vmatpush3.msra.mxu0 %v5971_v10 }
0x196b   : > { %5413 = vmatprep.subr.mxu0 %v5864_v39 }
0x196c   : > { %5414 = vmatpush3.msra.mxu0 %v5966_v9 }
0x196d   : > { %5415 = vmatprep.subr.mxu0 %v5864_v39 }
0x196e   : > { %5416 = vmatpush3.msra.mxu0 %v5961_v8 }
0x196f   : > { %5417 = vmatprep.subr.mxu0 %v5864_v39 }
0x1970   : > { %5418 = vmatpush3.msra.mxu0 %v5956_v7 }
0x1971   : > { %5419 = vmatprep.subr.mxu0 %v5864_v39 }
0x1972   : > { %5420 = vmatpush3.msra.mxu0 %v5951_v6 }
0x1973   : > { %5421 = vmatprep.subr.mxu0 %v5864_v39 }
0x1974   : > { %5422 = vmatpush3.msra.mxu0 %v5946_v5 }
0x1975   : > { %5461 = vmatprep.subr.mxu0 %v5864_v39 }
0x1a15   : > { %v2532_v54 = vpop.f32.mrf.mxu0 }
0x1a16   : > { %v2536_v56 = vmul.f32 0.25, %v2532_v54  ;;  %v2756_v57 = vmul.f32 2.0, %v2532_v54 }
0x1a17   : > { %v5379_v58 = vpop.f32.mrf.mxu0 }
0x1a18   : > { %v2537_v59 = vadd.f32 %v2536_v56, %v6869_v63  ;;  %v7132_v60 = vadd.f32 %v2756_v57, %v2755_v55  ;;  %v3845_v58 = vld [vmem:[%s6219_s16 + $0x48] sm:$0xff] }
0x1a1a   : > { %5389 = vmatmul.mubr.msk.f32.vlgmr.msra.gmra.mxu1 %vm97_vm1, %v2537_v59 }
0x1a1b   : > { %5427 = vmatpush3.msra.mxu1 %v6106_v37  ;;  %5458 = vmatprep.mubr.msk.f32.mxu1 %vm5865_vm0, %v5864_v39 }
0x1a1c   : > { %5428 = vmatprep.subr.mxu1 %v5864_v39 }
0x1a1d   : > { %5429 = vmatpush3.msra.mxu1 %v6101_v36 }
0x1a1e   : > { %5430 = vmatprep.subr.mxu1 %v5864_v39 }
0x1a1f   : > { %5431 = vmatpush3.msra.mxu1 %v6096_v35 }
0x1a20   : > { %5432 = vmatprep.subr.mxu1 %v5864_v39 }
0x1a21   : > { %5433 = vmatpush3.msra.mxu1 %v6091_v34 }
0x1a22   : > { %5434 = vmatprep.subr.mxu1 %v5864_v39 }
0x1a23   : > { %5435 = vmatpush3.msra.mxu1 %v6086_v33 }
0x1a24   : > { %5436 = vmatprep.subr.mxu1 %v5864_v39 }
0x1a25   : > { %5437 = vmatpush3.msra.mxu1 %v6081_v32 }
0x1a26   : > { %5438 = vmatprep.subr.mxu1 %v5864_v39 }
0x1a27   : > { %5439 = vmatpush3.msra.mxu1 %v6076_v31 }
0x1a28   : > { %5440 = vmatprep.subr.mxu1 %v5864_v39 }
0x1a29   : > { %5441 = vmatpush3.msra.mxu1 %v6071_v30 }
0x1a2a   : > { %5442 = vmatprep.subr.mxu1 %v5864_v39 }
0x1a2b   : > { %5443 = vmatpush3.msra.mxu1 %v6066_v29 }
0x1a2c   : > { %5444 = vmatprep.subr.mxu1 %v5864_v39 }
0x1a2d   : > { %5445 = vmatpush3.msra.mxu1 %v6061_v28 }
0x1a2e   : > { %5446 = vmatprep.subr.mxu1 %v5864_v39 }
0x1a2f   : > { %5447 = vmatpush3.msra.mxu1 %v6056_v27 }
0x1a30   : > { %5448 = vmatprep.subr.mxu1 %v5864_v39 }
0x1a31   : > { %5449 = vmatpush3.msra.mxu1 %v6051_v26 }
0x1a32   : > { %5450 = vmatprep.subr.mxu1 %v5864_v39 }
0x1a33   : > { %5451 = vmatpush3.msra.mxu1 %v6046_v25 }
0x1a34   : > { %5452 = vmatprep.subr.mxu1 %v5864_v39 }
0x1a35   : > { %5453 = vmatpush3.msra.mxu1 %v6041_v24 }
0x1a36   : > { %5454 = vmatprep.subr.mxu1 %v5864_v39 }
0x1a37   : > { %5455 = vmatpush3.msra.mxu1 %v6036_v23 }
0x1a38   : > { %5456 = vmatprep.subr.mxu1 %v5864_v39 }
0x1a39   : > { %5457 = vmatpush3.msra.mxu1 %v6031_v22 }
0x1a3a   : > { %5472 = vmatprep.subr.mxu1 %v5864_v39 }
0x1ada   : > { %v2607_v50 = vpop.f32.mrf.mxu1 }
0x1adb   : > { %v2608_v61 = vadd.f32 %v5941_v4, %v2607_v50 }
0x1adc   : > { %v5390_v62 = vpop.f32.mrf.mxu1 }
0x1add   : > { %v2611_v52 = vmax.f32 %v2608_v61, 0.0 }
0x1adf   : > { %5424 = vmatmul.mubr.f32.vlgmr.msra.gmra.mxu0 %v2611_v52 }
0x1ae0   : > { %5462 = vmatpush3.msra.mxu0 %v5936_v3  ;;  %5469 = vmatprep.mubr.msk.f32.mxu0 %vm5865_vm0, %v5864_v39 }
0x1ae1   : > { %5463 = vmatprep.subr.mxu0 %v5864_v39 }
0x1ae2   : > { %5464 = vmatpush3.msra.mxu0 %v5931_v2 }
0x1ae3   : > { %5465 = vmatprep.subr.mxu0 %v5864_v39 }
0x1ae4   : > { %5466 = vmatpush3.msra.mxu0 %v5926_v1 }
0x1ae5   : > { %5467 = vmatprep.subr.mxu0 %v5864_v39 }
0x1ae6   : > { %5468 = vmatpush3.msra.mxu0 %v5921_v0 }
0x1ae7   : > { %5507 = vmatprep.subr.mxu0 %v5864_v39 }
0x1b9f   : > { %v2678_v40 = vpop.f32.mrf.mxu0 }
0x1ba0   : > { %v2679_v41 = vadd.f32 %v6026_v21, %v2678_v40 }
0x1ba1   : > { %v5425_v42 = vpop.f32.mrf.mxu0 }
0x1ba2   : > { %5838 = vtanh.f32 %v2679_v41 }
0x1baf   : > { %v5839_v44 = vpop.eup %5838 }
0x1bb0   : > { %v2683_v45 = vmul.f32 %v5839_v44, %v3838_v43 }
0x1bb2   : > { %5459 = vmatmul.mubr.f32.vlgmr.msra.gmra.mxu1 %v2683_v45 }
0x1bb3   : > { %5473 = vmatpush3.msra.mxu1 %v6021_v20  ;;  %5504 = vmatprep.mubr.msk.f32.mxu1 %vm5865_vm0, %v5864_v39 }
0x1bb4   : > { %5474 = vmatprep.subr.mxu1 %v5864_v39 }
0x1bb5   : > { %5475 = vmatpush3.msra.mxu1 %v6016_v19 }
0x1bb6   : > { %5476 = vmatprep.subr.mxu1 %v5864_v39 }
0x1bb7   : > { %5477 = vmatpush3.msra.mxu1 %v6011_v18 }
0x1bb8   : > { %5478 = vmatprep.subr.mxu1 %v5864_v39 }
0x1bb9   : > { %5479 = vmatpush3.msra.mxu1 %v6006_v17 }
0x1bba   : > { %5480 = vmatprep.subr.mxu1 %v5864_v39 }
0x1bbb   : > { %5481 = vmatpush3.msra.mxu1 %v6001_v16 }
0x1bbc   : > { %5482 = vmatprep.subr.mxu1 %v5864_v39 }
0x1bbd   : > { %5483 = vmatpush3.msra.mxu1 %v5996_v15 }
0x1bbe   : > { %5484 = vmatprep.subr.mxu1 %v5864_v39 }
0x1bbf   : > { %5485 = vmatpush3.msra.mxu1 %v5991_v14 }
0x1bc0   : > { %5486 = vmatprep.subr.mxu1 %v5864_v39 }
0x1bc1   : > { %5487 = vmatpush3.msra.mxu1 %v5986_v13 }
0x1bc2   : > { %5488 = vmatprep.subr.mxu1 %v5864_v39 }
0x1bc3   : > { %5489 = vmatpush3.msra.mxu1 %v5981_v12 }
0x1bc4   : > { %5490 = vmatprep.subr.mxu1 %v5864_v39 }
0x1bc5   : > { %5491 = vmatpush3.msra.mxu1 %v5976_v11 }
0x1bc6   : > { %5492 = vmatprep.subr.mxu1 %v5864_v39 }
0x1bc7   : > { %5493 = vmatpush3.msra.mxu1 %v5971_v10 }
0x1bc8   : > { %5494 = vmatprep.subr.mxu1 %v5864_v39 }
0x1bc9   : > { %5495 = vmatpush3.msra.mxu1 %v5966_v9 }
0x1bca   : > { %5496 = vmatprep.subr.mxu1 %v5864_v39 }
0x1bcb   : > { %5497 = vmatpush3.msra.mxu1 %v5961_v8 }
0x1bcc   : > { %5498 = vmatprep.subr.mxu1 %v5864_v39 }
0x1bcd   : > { %5499 = vmatpush3.msra.mxu1 %v5956_v7 }
0x1bce   : > { %5500 = vmatprep.subr.mxu1 %v5864_v39 }
0x1bcf   : > { %5501 = vmatpush3.msra.mxu1 %v5951_v6 }
0x1bd0   : > { %5502 = vmatprep.subr.mxu1 %v5864_v39 }
0x1bd1   : > { %5503 = vmatpush3.msra.mxu1 %v5946_v5 }
0x1bd2   : > { %5542 = vmatprep.subr.mxu1 %v5864_v39 }
0x1c72   : > { %v2750_v46 = vpop.f32.mrf.mxu1 }
0x1c73   : > { %v2758_v47 = vadd.f32 %v7132_v60, %v2750_v46 }
0x1c74   : > { %v5460_v48 = vpop.f32.mrf.mxu1 }
0x1c75   : > { %v2759_v49 = vmul.f32 0.041666668, %v2758_v47  ;;  %v7355_v47 = vld [vmem:[%s6219_s16 + $0x50] sm:$0xff] }
0x1c77   : > { %v7218_v51 = vadd.f32 %v2759_v49, %v6869_v63 }
0x1c79   : > { %5470 = vmatmul.mubr.msk.f32.vlgmr.msra.gmra.mxu0 %vm97_vm1, %v7218_v51 }
0x1c7a   : > { %5508 = vmatpush3.msra.mxu0 %v6106_v37  ;;  %5539 = vmatprep.mubr.msk.f32.mxu0 %vm5865_vm0, %v5864_v39 }
0x1c7b   : > { %5509 = vmatprep.subr.mxu0 %v5864_v39 }
0x1c7c   : > { %5510 = vmatpush3.msra.mxu0 %v6101_v36 }
0x1c7d   : > { %5511 = vmatprep.subr.mxu0 %v5864_v39 }
0x1c7e   : > { %5512 = vmatpush3.msra.mxu0 %v6096_v35 }
0x1c7f   : > { %5513 = vmatprep.subr.mxu0 %v5864_v39 }
0x1c80   : > { %5514 = vmatpush3.msra.mxu0 %v6091_v34 }
0x1c81   : > { %5515 = vmatprep.subr.mxu0 %v5864_v39 }
0x1c82   : > { %5516 = vmatpush3.msra.mxu0 %v6086_v33 }
0x1c83   : > { %5517 = vmatprep.subr.mxu0 %v5864_v39 }
0x1c84   : > { %5518 = vmatpush3.msra.mxu0 %v6081_v32 }
0x1c85   : > { %5519 = vmatprep.subr.mxu0 %v5864_v39 }
0x1c86   : > { %5520 = vmatpush3.msra.mxu0 %v6076_v31 }
0x1c87   : > { %5521 = vmatprep.subr.mxu0 %v5864_v39 }
0x1c88   : > { %5522 = vmatpush3.msra.mxu0 %v6071_v30 }
0x1c89   : > { %5523 = vmatprep.subr.mxu0 %v5864_v39 }
0x1c8a   : > { %5524 = vmatpush3.msra.mxu0 %v6066_v29 }
0x1c8b   : > { %5525 = vmatprep.subr.mxu0 %v5864_v39 }
0x1c8c   : > { %5526 = vmatpush3.msra.mxu0 %v6061_v28 }
0x1c8d   : > { %5527 = vmatprep.subr.mxu0 %v5864_v39 }
0x1c8e   : > { %5528 = vmatpush3.msra.mxu0 %v6056_v27 }
0x1c8f   : > { %5529 = vmatprep.subr.mxu0 %v5864_v39 }
0x1c90   : > { %5530 = vmatpush3.msra.mxu0 %v6051_v26 }
0x1c91   : > { %5531 = vmatprep.subr.mxu0 %v5864_v39 }
0x1c92   : > { %5532 = vmatpush3.msra.mxu0 %v6046_v25 }
0x1c93   : > { %5533 = vmatprep.subr.mxu0 %v5864_v39 }
0x1c94   : > { %5534 = vmatpush3.msra.mxu0 %v6041_v24 }
0x1c95   : > { %5535 = vmatprep.subr.mxu0 %v5864_v39 }
0x1c96   : > { %5536 = vmatpush3.msra.mxu0 %v6036_v23 }
0x1c97   : > { %5537 = vmatprep.subr.mxu0 %v5864_v39 }
0x1c98   : > { %5538 = vmatpush3.msra.mxu0 %v6031_v22 }
0x1c99   : > { %5553 = vmatprep.subr.mxu0 %v5864_v39 }
0x1d39   : > { %v2843_v63 = vpop.f32.mrf.mxu0 }
0x1d3a   : > { %v2844_v38 = vadd.f32 %v5941_v4, %v2843_v63 }
0x1d3b   : > { %v5471_v53 = vpop.f32.mrf.mxu0 }
0x1d3c   : > { %v2847_v54 = vmax.f32 %v2844_v38, 0.0 }
0x1d3e   : > { %5505 = vmatmul.mubr.f32.vlgmr.msra.gmra.mxu1 %v2847_v54 }
0x1d3f   : > { %5543 = vmatpush3.msra.mxu1 %v5936_v3  ;;  %5550 = vmatprep.mubr.msk.f32.mxu1 %vm5865_vm0, %v5864_v39 }
0x1d40   : > { %5544 = vmatprep.subr.mxu1 %v5864_v39 }
0x1d41   : > { %5545 = vmatpush3.msra.mxu1 %v5931_v2 }
0x1d42   : > { %5546 = vmatprep.subr.mxu1 %v5864_v39 }
0x1d43   : > { %5547 = vmatpush3.msra.mxu1 %v5926_v1 }
0x1d44   : > { %5548 = vmatprep.subr.mxu1 %v5864_v39 }
0x1d45   : > { %5549 = vmatpush3.msra.mxu1 %v5921_v0 }
0x1d46   : > { %5588 = vmatprep.subr.mxu1 %v5864_v39 }
0x1dfe   : > { %v2914_v55 = vpop.f32.mrf.mxu1 }
0x1dff   : > { %v2915_v56 = vadd.f32 %v6026_v21, %v2914_v55 }
0x1e00   : > { %v5506_v57 = vpop.f32.mrf.mxu1 }
0x1e01   : > { %5840 = vtanh.f32 %v2915_v56 }
0x1e0e   : > { %v5841_v59 = vpop.eup %5840 }
0x1e0f   : > { %v2919_v60 = vmul.f32 %v5841_v59, %v3845_v58 }
0x1e11   : > { %5540 = vmatmul.mubr.f32.vlgmr.msra.gmra.mxu0 %v2919_v60 }
0x1e12   : > { %5554 = vmatpush3.msra.mxu0 %v6021_v20  ;;  %5585 = vmatprep.mubr.msk.f32.mxu0 %vm5865_vm0, %v5864_v39 }
0x1e13   : > { %5555 = vmatprep.subr.mxu0 %v5864_v39 }
0x1e14   : > { %5556 = vmatpush3.msra.mxu0 %v6016_v19 }
0x1e15   : > { %5557 = vmatprep.subr.mxu0 %v5864_v39 }
0x1e16   : > { %5558 = vmatpush3.msra.mxu0 %v6011_v18 }
0x1e17   : > { %5559 = vmatprep.subr.mxu0 %v5864_v39 }
0x1e18   : > { %5560 = vmatpush3.msra.mxu0 %v6006_v17 }
0x1e19   : > { %5561 = vmatprep.subr.mxu0 %v5864_v39 }
0x1e1a   : > { %5562 = vmatpush3.msra.mxu0 %v6001_v16 }
0x1e1b   : > { %5563 = vmatprep.subr.mxu0 %v5864_v39 }
0x1e1c   : > { %5564 = vmatpush3.msra.mxu0 %v5996_v15 }
0x1e1d   : > { %5565 = vmatprep.subr.mxu0 %v5864_v39 }
0x1e1e   : > { %5566 = vmatpush3.msra.mxu0 %v5991_v14 }
0x1e1f   : > { %5567 = vmatprep.subr.mxu0 %v5864_v39 }
0x1e20   : > { %5568 = vmatpush3.msra.mxu0 %v5986_v13 }
0x1e21   : > { %5569 = vmatprep.subr.mxu0 %v5864_v39 }
0x1e22   : > { %5570 = vmatpush3.msra.mxu0 %v5981_v12 }
0x1e23   : > { %5571 = vmatprep.subr.mxu0 %v5864_v39 }
0x1e24   : > { %5572 = vmatpush3.msra.mxu0 %v5976_v11 }
0x1e25   : > { %5573 = vmatprep.subr.mxu0 %v5864_v39 }
0x1e26   : > { %5574 = vmatpush3.msra.mxu0 %v5971_v10 }
0x1e27   : > { %5575 = vmatprep.subr.mxu0 %v5864_v39 }
0x1e28   : > { %5576 = vmatpush3.msra.mxu0 %v5966_v9 }
0x1e29   : > { %5577 = vmatprep.subr.mxu0 %v5864_v39 }
0x1e2a   : > { %5578 = vmatpush3.msra.mxu0 %v5961_v8 }
0x1e2b   : > { %5579 = vmatprep.subr.mxu0 %v5864_v39 }
0x1e2c   : > { %5580 = vmatpush3.msra.mxu0 %v5956_v7 }
0x1e2d   : > { %5581 = vmatprep.subr.mxu0 %v5864_v39 }
0x1e2e   : > { %5582 = vmatpush3.msra.mxu0 %v5951_v6 }
0x1e2f   : > { %5583 = vmatprep.subr.mxu0 %v5864_v39 }
0x1e30   : > { %5584 = vmatpush3.msra.mxu0 %v5946_v5 }
0x1e31   : > { %5623 = vmatprep.subr.mxu0 %v5864_v39 }
0x1ed1   : > { %v7303_v50 = vpop.f32.mrf.mxu0 }
0x1ed2   : > { %v2990_v61 = vmul.f32 0.125, %v7303_v50 }
0x1ed3   : > { %v5541_v62 = vpop.f32.mrf.mxu0 }
0x1ed4   : > { %v2991_v52 = vadd.f32 %v2990_v61, %v7218_v51 }
0x1ed6   : > { %5551 = vmatmul.mubr.msk.f32.vlgmr.msra.gmra.mxu1 %vm97_vm1, %v2991_v52 }
0x1ed7   : > { %5589 = vmatpush3.msra.mxu1 %v6106_v37  ;;  %5620 = vmatprep.mubr.msk.f32.mxu1 %vm5865_vm0, %v5864_v39 }
0x1ed8   : > { %5590 = vmatprep.subr.mxu1 %v5864_v39 }
0x1ed9   : > { %5591 = vmatpush3.msra.mxu1 %v6101_v36 }
0x1eda   : > { %5592 = vmatprep.subr.mxu1 %v5864_v39 }
0x1edb   : > { %5593 = vmatpush3.msra.mxu1 %v6096_v35 }
0x1edc   : > { %5594 = vmatprep.subr.mxu1 %v5864_v39 }
0x1edd   : > { %5595 = vmatpush3.msra.mxu1 %v6091_v34 }
0x1ede   : > { %5596 = vmatprep.subr.mxu1 %v5864_v39 }
0x1edf   : > { %5597 = vmatpush3.msra.mxu1 %v6086_v33 }
0x1ee0   : > { %5598 = vmatprep.subr.mxu1 %v5864_v39 }
0x1ee1   : > { %5599 = vmatpush3.msra.mxu1 %v6081_v32 }
0x1ee2   : > { %5600 = vmatprep.subr.mxu1 %v5864_v39 }
0x1ee3   : > { %5601 = vmatpush3.msra.mxu1 %v6076_v31 }
0x1ee4   : > { %5602 = vmatprep.subr.mxu1 %v5864_v39 }
0x1ee5   : > { %5603 = vmatpush3.msra.mxu1 %v6071_v30 }
0x1ee6   : > { %5604 = vmatprep.subr.mxu1 %v5864_v39 }
0x1ee7   : > { %5605 = vmatpush3.msra.mxu1 %v6066_v29 }
0x1ee8   : > { %5606 = vmatprep.subr.mxu1 %v5864_v39 }
0x1ee9   : > { %5607 = vmatpush3.msra.mxu1 %v6061_v28 }
0x1eea   : > { %5608 = vmatprep.subr.mxu1 %v5864_v39 }
0x1eeb   : > { %5609 = vmatpush3.msra.mxu1 %v6056_v27 }
0x1eec   : > { %5610 = vmatprep.subr.mxu1 %v5864_v39 }
0x1eed   : > { %5611 = vmatpush3.msra.mxu1 %v6051_v26 }
0x1eee   : > { %5612 = vmatprep.subr.mxu1 %v5864_v39 }
0x1eef   : > { %5613 = vmatpush3.msra.mxu1 %v6046_v25 }
0x1ef0   : > { %5614 = vmatprep.subr.mxu1 %v5864_v39 }
0x1ef1   : > { %5615 = vmatpush3.msra.mxu1 %v6041_v24 }
0x1ef2   : > { %5616 = vmatprep.subr.mxu1 %v5864_v39 }
0x1ef3   : > { %5617 = vmatpush3.msra.mxu1 %v6036_v23 }
0x1ef4   : > { %5618 = vmatprep.subr.mxu1 %v5864_v39 }
0x1ef5   : > { %5619 = vmatpush3.msra.mxu1 %v6031_v22 }
0x1ef6   : > { %5634 = vmatprep.subr.mxu1 %v5864_v39 }
0x1f96   : > { %v3061_v40 = vpop.f32.mrf.mxu1 }
0x1f97   : > { %v3062_v41 = vadd.f32 %v5941_v4, %v3061_v40 }
0x1f98   : > { %v5552_v42 = vpop.f32.mrf.mxu1 }
0x1f99   : > { %v3065_v43 = vmax.f32 %v3062_v41, 0.0 }
0x1f9b   : > { %5586 = vmatmul.mubr.f32.vlgmr.msra.gmra.mxu0 %v3065_v43 }
0x1f9c   : > { %5624 = vmatpush3.msra.mxu0 %v5936_v3  ;;  %5631 = vmatprep.mubr.msk.f32.mxu0 %vm5865_vm0, %v5864_v39 }
0x1f9d   : > { %5625 = vmatprep.subr.mxu0 %v5864_v39 }
0x1f9e   : > { %5626 = vmatpush3.msra.mxu0 %v5931_v2 }
0x1f9f   : > { %5627 = vmatprep.subr.mxu0 %v5864_v39 }
0x1fa0   : > { %5628 = vmatpush3.msra.mxu0 %v5926_v1 }
0x1fa1   : > { %5629 = vmatprep.subr.mxu0 %v5864_v39 }
0x1fa2   : > { %5630 = vmatpush3.msra.mxu0 %v5921_v0 }
0x1fa3   : > { %5669 = vmatprep.subr.mxu0 %v5864_v39 }
0x205b   : > { %v3132_v44 = vpop.f32.mrf.mxu0 }
0x205c   : > { %v3133_v45 = vadd.f32 %v6026_v21, %v3132_v44 }
0x205d   : > { %v5587_v46 = vpop.f32.mrf.mxu0 }
0x205e   : > { %5842 = vtanh.f32 %v3133_v45 }
0x206b   : > { %v5843_v48 = vpop.eup %5842 }
0x206c   : > { %v3137_v49 = vmul.f32 %v5843_v48, %v7355_v47 }
0x206e   : > { %5621 = vmatmul.mubr.f32.vlgmr.msra.gmra.mxu1 %v3137_v49 }
0x206f   : > { %5635 = vmatpush3.msra.mxu1 %v6021_v20  ;;  %5666 = vmatprep.mubr.msk.f32.mxu1 %vm5865_vm0, %v5864_v39 }
0x2070   : > { %5636 = vmatprep.subr.mxu1 %v5864_v39 }
0x2071   : > { %5637 = vmatpush3.msra.mxu1 %v6016_v19 }
0x2072   : > { %5638 = vmatprep.subr.mxu1 %v5864_v39 }
0x2073   : > { %5639 = vmatpush3.msra.mxu1 %v6011_v18 }
0x2074   : > { %5640 = vmatprep.subr.mxu1 %v5864_v39 }
0x2075   : > { %5641 = vmatpush3.msra.mxu1 %v6006_v17 }
0x2076   : > { %5642 = vmatprep.subr.mxu1 %v5864_v39 }
0x2077   : > { %5643 = vmatpush3.msra.mxu1 %v6001_v16 }
0x2078   : > { %5644 = vmatprep.subr.mxu1 %v5864_v39 }
0x2079   : > { %5645 = vmatpush3.msra.mxu1 %v5996_v15 }
0x207a   : > { %5646 = vmatprep.subr.mxu1 %v5864_v39 }
0x207b   : > { %5647 = vmatpush3.msra.mxu1 %v5991_v14 }
0x207c   : > { %5648 = vmatprep.subr.mxu1 %v5864_v39 }
0x207d   : > { %5649 = vmatpush3.msra.mxu1 %v5986_v13 }
0x207e   : > { %5650 = vmatprep.subr.mxu1 %v5864_v39 }
0x207f   : > { %5651 = vmatpush3.msra.mxu1 %v5981_v12 }
0x2080   : > { %5652 = vmatprep.subr.mxu1 %v5864_v39 }
0x2081   : > { %5653 = vmatpush3.msra.mxu1 %v5976_v11 }
0x2082   : > { %5654 = vmatprep.subr.mxu1 %v5864_v39 }
0x2083   : > { %5655 = vmatpush3.msra.mxu1 %v5971_v10 }
0x2084   : > { %5656 = vmatprep.subr.mxu1 %v5864_v39 }
0x2085   : > { %5657 = vmatpush3.msra.mxu1 %v5966_v9 }
0x2086   : > { %5658 = vmatprep.subr.mxu1 %v5864_v39 }
0x2087   : > { %5659 = vmatpush3.msra.mxu1 %v5961_v8 }
0x2088   : > { %5660 = vmatprep.subr.mxu1 %v5864_v39 }
0x2089   : > { %5661 = vmatpush3.msra.mxu1 %v5956_v7 }
0x208a   : > { %5662 = vmatprep.subr.mxu1 %v5864_v39 }
0x208b   : > { %5663 = vmatpush3.msra.mxu1 %v5951_v6 }
0x208c   : > { %5664 = vmatprep.subr.mxu1 %v5864_v39 }
0x208d   : > { %5665 = vmatpush3.msra.mxu1 %v5946_v5 }
0x208e   : > { %5704 = vmatprep.subr.mxu1 %v5864_v39 }
0x212e   : > { %v7392_v63 = vpop.f32.mrf.mxu1 }
0x212f   : > { %v3208_v38 = vmul.f32 0.125, %v7392_v63  ;;  %v3644_v40 = vmul.f32 2.0, %v7392_v63 }
0x2130   : > { %v5622_v53 = vpop.f32.mrf.mxu1 }
0x2131   : > { %v3209_v54 = vadd.f32 %v3208_v38, %v7218_v51  ;;  %v3645_v42 = vadd.f32 %v3644_v40, %v7303_v50  ;;  %v3653_v40 = vld [vmem:[%s7546_s6 + $0x10] sm:$0xff] (%p73_p0) }
0x2133   : > { %5632 = vmatmul.mubr.msk.f32.vlgmr.msra.gmra.mxu0 %vm97_vm1, %v3209_v54 }
0x2134   : > { %5670 = vmatpush3.msra.mxu0 %v6106_v37  ;;  %5701 = vmatprep.mubr.msk.f32.mxu0 %vm5865_vm0, %v5864_v39 }
0x2135   : > { %5671 = vmatprep.subr.mxu0 %v5864_v39 }
0x2136   : > { %5672 = vmatpush3.msra.mxu0 %v6101_v36 }
0x2137   : > { %5673 = vmatprep.subr.mxu0 %v5864_v39 }
0x2138   : > { %5674 = vmatpush3.msra.mxu0 %v6096_v35 }
0x2139   : > { %5675 = vmatprep.subr.mxu0 %v5864_v39 }
0x213a   : > { %5676 = vmatpush3.msra.mxu0 %v6091_v34 }
0x213b   : > { %5677 = vmatprep.subr.mxu0 %v5864_v39 }
0x213c   : > { %5678 = vmatpush3.msra.mxu0 %v6086_v33 }
0x213d   : > { %5679 = vmatprep.subr.mxu0 %v5864_v39 }
0x213e   : > { %5680 = vmatpush3.msra.mxu0 %v6081_v32 }
0x213f   : > { %5681 = vmatprep.subr.mxu0 %v5864_v39 }
0x2140   : > { %5682 = vmatpush3.msra.mxu0 %v6076_v31 }
0x2141   : > { %5683 = vmatprep.subr.mxu0 %v5864_v39 }
0x2142   : > { %5684 = vmatpush3.msra.mxu0 %v6071_v30 }
0x2143   : > { %5685 = vmatprep.subr.mxu0 %v5864_v39 }
0x2144   : > { %5686 = vmatpush3.msra.mxu0 %v6066_v29 }
0x2145   : > { %5687 = vmatprep.subr.mxu0 %v5864_v39 }
0x2146   : > { %5688 = vmatpush3.msra.mxu0 %v6061_v28 }
0x2147   : > { %5689 = vmatprep.subr.mxu0 %v5864_v39 }
0x2148   : > { %5690 = vmatpush3.msra.mxu0 %v6056_v27 }
0x2149   : > { %5691 = vmatprep.subr.mxu0 %v5864_v39 }
0x214a   : > { %5692 = vmatpush3.msra.mxu0 %v6051_v26 }
0x214b   : > { %5693 = vmatprep.subr.mxu0 %v5864_v39 }
0x214c   : > { %5694 = vmatpush3.msra.mxu0 %v6046_v25 }
0x214d   : > { %5695 = vmatprep.subr.mxu0 %v5864_v39 }
0x214e   : > { %5696 = vmatpush3.msra.mxu0 %v6041_v24 }
0x214f   : > { %5697 = vmatprep.subr.mxu0 %v5864_v39 }
0x2150   : > { %5698 = vmatpush3.msra.mxu0 %v6036_v23 }
0x2151   : > { %5699 = vmatprep.subr.mxu0 %v5864_v39 }
0x2152   : > { %5700 = vmatpush3.msra.mxu0 %v6031_v22 }
0x2153   : > { %5715 = vmatprep.subr.mxu0 %v5864_v39 }
0x21f3   : > { %v3279_v55 = vpop.f32.mrf.mxu0 }
0x21f4   : > { %v3280_v56 = vadd.f32 %v5941_v4, %v3279_v55  ;;  %v3853_v55 = vld [vmem:[%s6219_s16 + $0x58] sm:$0xff] }
0x21f5   : > { %v5633_v57 = vpop.f32.mrf.mxu0 }
0x21f6   : > { %v3283_v58 = vmax.f32 %v3280_v56, 0.0 }
0x21f8   : > { %5667 = vmatmul.mubr.f32.vlgmr.msra.gmra.mxu1 %v3283_v58 }
0x21f9   : > { %5705 = vmatpush3.msra.mxu1 %v5936_v3  ;;  %5712 = vmatprep.mubr.msk.f32.mxu1 %vm5865_vm0, %v5864_v39 }
0x21fa   : > { %5706 = vmatprep.subr.mxu1 %v5864_v39 }
0x21fb   : > { %5707 = vmatpush3.msra.mxu1 %v5931_v2 }
0x21fc   : > { %5708 = vmatprep.subr.mxu1 %v5864_v39 }
0x21fd   : > { %5709 = vmatpush3.msra.mxu1 %v5926_v1  ;;  %v3858_v1 = vld [vmem:[%s7547_s7] ss:$0 sm:$0xff] (%p73_p0) }
0x21fe   : > { %5710 = vmatprep.subr.mxu1 %v5864_v39 }
0x21ff   : > { %5711 = vmatpush3.msra.mxu1 %v5921_v0  ;;  %v3651_v0 = vld [vmem:[%s7546_s6] sm:$0xff] (%p73_p0) }
0x2200   : > { %5750 = vmatprep.subr.mxu1 %v5864_v39 }
0x22b8   : > { %v3350_v59 = vpop.f32.mrf.mxu1 }
0x22b9   : > { %v3351_v60 = vadd.f32 %v6026_v21, %v3350_v59 }
0x22ba   : > { %v5668_v61 = vpop.f32.mrf.mxu1 }
0x22bb   : > { %5844 = vtanh.f32 %v3351_v60 }
0x22c8   : > { %v5845_v62 = vpop.eup %5844 }
0x22c9   : > { %v3355_v52 = vmul.f32 %v5845_v62, %v7355_v47  ;;  %v3654_v62 = vld [vmem:[%s7546_s6 + $0x18] sm:$0xff] (%p73_p0) }
0x22cb   : > { %5702 = vmatmul.mubr.f32.vlgmr.msra.gmra.mxu0 %v3355_v52  ;;  %v5866_v52 = vmov (%p73_p0), 0.0  }
0x22cc   : > { %5716 = vmatpush3.msra.mxu0 %v6021_v20  ;;  %5747 = vmatprep.mubr.msk.f32.mxu0 %vm5865_vm0, %v5864_v39 }
0x22cd   : > { %5717 = vmatprep.subr.mxu0 %v5864_v39 }
0x22ce   : > { %5718 = vmatpush3.msra.mxu0 %v6016_v19 }
0x22cf   : > { %5719 = vmatprep.subr.mxu0 %v5864_v39 }
0x22d0   : > { %5720 = vmatpush3.msra.mxu0 %v6011_v18 }
0x22d1   : > { %5721 = vmatprep.subr.mxu0 %v5864_v39 }
0x22d2   : > { %5722 = vmatpush3.msra.mxu0 %v6006_v17 }
0x22d3   : > { %5723 = vmatprep.subr.mxu0 %v5864_v39 }
0x22d4   : > { %5724 = vmatpush3.msra.mxu0 %v6001_v16 }
0x22d5   : > { %5725 = vmatprep.subr.mxu0 %v5864_v39 }
0x22d6   : > { %5726 = vmatpush3.msra.mxu0 %v5996_v15 }
0x22d7   : > { %5727 = vmatprep.subr.mxu0 %v5864_v39 }
0x22d8   : > { %5728 = vmatpush3.msra.mxu0 %v5991_v14 }
0x22d9   : > { %5729 = vmatprep.subr.mxu0 %v5864_v39 }
0x22da   : > { %5730 = vmatpush3.msra.mxu0 %v5986_v13 }
0x22db   : > { %5731 = vmatprep.subr.mxu0 %v5864_v39 }
0x22dc   : > { %5732 = vmatpush3.msra.mxu0 %v5981_v12 }
0x22dd   : > { %5733 = vmatprep.subr.mxu0 %v5864_v39 }
0x22de   : > { %5734 = vmatpush3.msra.mxu0 %v5976_v11 }
0x22df   : > { %5735 = vmatprep.subr.mxu0 %v5864_v39 }
0x22e0   : > { %5736 = vmatpush3.msra.mxu0 %v5971_v10 }
0x22e1   : > { %5737 = vmatprep.subr.mxu0 %v5864_v39 }
0x22e2   : > { %5738 = vmatpush3.msra.mxu0 %v5966_v9 }
0x22e3   : > { %5739 = vmatprep.subr.mxu0 %v5864_v39 }
0x22e4   : > { %5740 = vmatpush3.msra.mxu0 %v5961_v8 }
0x22e5   : > { %5741 = vmatprep.subr.mxu0 %v5864_v39 }
0x22e6   : > { %5742 = vmatpush3.msra.mxu0 %v5956_v7 }
0x22e7   : > { %5743 = vmatprep.subr.mxu0 %v5864_v39 }
0x22e8   : > { %5744 = vmatpush3.msra.mxu0 %v5951_v6 }
0x22e9   : > { %5745 = vmatprep.subr.mxu0 %v5864_v39 }
0x22ea   : > { %5746 = vmatpush3.msra.mxu0 %v5946_v5 }
0x22eb   :  { %5785 = vmatprep.subr.mxu0 (%p73_p0), %v5866_v52 }
0x238b   : > { %v3422_v41 = vpop.f32.mrf.mxu0 }
0x238c   : > { %v3426_v43 = vmul.f32 0.25, %v3422_v41  ;;  %v3646_v44 = vmul.f32 2.0, %v3422_v41 }
0x238d   : > { %v5703_v45 = vpop.f32.mrf.mxu0 }
0x238e   : > { %v3427_v46 = vadd.f32 %v3426_v43, %v7218_v51  ;;  %v3647_v47 = vadd.f32 %v3646_v44, %v3645_v42 }
0x2390   : > { %5713 = vmatmul.mubr.msk.f32.vlgmr.msra.gmra.mxu1 %vm97_vm1, %v3427_v46 }
0x2391   : > { %5751 = vmatpush3.msra.mxu1 %v6106_v37  ;;  %5782 = vmatprep.mubr.msk.f32.mxu1 %vm5865_vm0, %v5864_v39 }
0x2392   : > { %5752 = vmatprep.subr.mxu1 %v5864_v39 }
0x2393   : > { %5753 = vmatpush3.msra.mxu1 %v6101_v36 }
0x2394   : > { %5754 = vmatprep.subr.mxu1 %v5864_v39 }
0x2395   : > { %5755 = vmatpush3.msra.mxu1 %v6096_v35 }
0x2396   : > { %5756 = vmatprep.subr.mxu1 %v5864_v39 }
0x2397   : > { %5757 = vmatpush3.msra.mxu1 %v6091_v34 }
0x2398   : > { %5758 = vmatprep.subr.mxu1 %v5864_v39 }
0x2399   : > { %5759 = vmatpush3.msra.mxu1 %v6086_v33 }
0x239a   : > { %5760 = vmatprep.subr.mxu1 %v5864_v39 }
0x239b   : > { %5761 = vmatpush3.msra.mxu1 %v6081_v32 }
0x239c   : > { %5762 = vmatprep.subr.mxu1 %v5864_v39 }
0x239d   : > { %5763 = vmatpush3.msra.mxu1 %v6076_v31 }
0x239e   : > { %5764 = vmatprep.subr.mxu1 %v5864_v39 }
0x239f   : > { %5765 = vmatpush3.msra.mxu1 %v6071_v30 }
0x23a0   : > { %5766 = vmatprep.subr.mxu1 %v5864_v39 }
0x23a1   : > { %5767 = vmatpush3.msra.mxu1 %v6066_v29 }
0x23a2   : > { %5768 = vmatprep.subr.mxu1 %v5864_v39 }
0x23a3   : > { %5769 = vmatpush3.msra.mxu1 %v6061_v28 }
0x23a4   : > { %5770 = vmatprep.subr.mxu1 %v5864_v39 }
0x23a5   : > { %5771 = vmatpush3.msra.mxu1 %v6056_v27 }
0x23a6   : > { %5772 = vmatprep.subr.mxu1 %v5864_v39 }
0x23a7   : > { %5773 = vmatpush3.msra.mxu1 %v6051_v26 }
0x23a8   : > { %5774 = vmatprep.subr.mxu1 %v5864_v39 }
0x23a9   : > { %5775 = vmatpush3.msra.mxu1 %v6046_v25 }
0x23aa   : > { %5776 = vmatprep.subr.mxu1 %v5864_v39 }
0x23ab   : > { %5777 = vmatpush3.msra.mxu1 %v6041_v24 }
0x23ac   : > { %5778 = vmatprep.subr.mxu1 %v5864_v39 }
0x23ad   : > { %5779 = vmatpush3.msra.mxu1 %v6036_v23 }
0x23ae   : > { %5780 = vmatprep.subr.mxu1 %v5864_v39 }
0x23af   : > { %5781 = vmatpush3.msra.mxu1 %v6031_v22 }
0x2450   : > { %v3497_v50 = vpop.f32.mrf.mxu1 }
0x2451   : > { %v3498_v48 = vadd.f32 %v5941_v4, %v3497_v50 }
0x2452   : > { %v5714_v49 = vpop.f32.mrf.mxu1 }
0x2453   : > { %v3501_v63 = vmax.f32 %v3498_v48, 0.0 }
0x2455   : > { %5748 = vmatmul.mubr.f32.vlgmr.msra.gmra.mxu0 %v3501_v63 }
0x2456   :  { %5793 = vmatprep.mubr.msk.f32.mxu0 (%p73_p0), %vm5867_vm2, %v5866_v52  ;;  %5786 = vmatpush3.msra.mxu0 (%p73_p0), %v3654_v62 }
0x2457   :  { %5787 = vmatprep.subr.mxu0 (%p73_p0), %v5866_v52 }
0x2458   :  { %5788 = vmatpush3.msra.mxu0 (%p73_p0), %v3653_v40 }
0x2459   :  { %5789 = vmatprep.subr.mxu0 (%p73_p0), %v5866_v52 }
0x2515   : > { %v3568_v38 = vpop.f32.mrf.mxu0 }
0x2516   : > { %v3569_v53 = vadd.f32 %v6026_v21, %v3568_v38 }
0x2517   : > { %v5749_v54 = vpop.f32.mrf.mxu0 }
0x2518   : > { %5846 = vtanh.f32 %v3569_v53 }
0x2525   : > { %v5847_v56 = vpop.eup %5846 }
0x2526   : > { %v3573_v57 = vmul.f32 %v5847_v56, %v3853_v55 }
0x2528   : > { %5783 = vmatmul.mubr.f32.vlgmr.msra.gmra.mxu1 %v3573_v57 }
0x25e8   : > { %v3640_v58 = vpop.f32.mrf.mxu1 }
0x25e9   : > { %v3648_v59 = vadd.f32 %v3647_v47, %v3640_v58 }
0x25ea   : > { %v5784_v39 = vpop.f32.mrf.mxu1 }
0x25eb   : > { %v3649_v60 = vmul.f32 0.041666668, %v3648_v59  ;;  %75 = sbr.rel (!%p73_p0) target bundleno = 14 (0xe), region = 75 }
0x25ed   : > { %v3650_v61 = vadd.f32 %v3649_v60, %v7218_v51   ;;  %v3652_v51 = vld [vmem:[%s7546_s6 + $0x8] sm:$0xff] (%p73_p0) }
0x25ee   :  { %5790 = vmatpush3.msra.mxu0 (%p73_p0), %v3652_v51 }
0x25ef   : > { %v7552_v38 = vmov %v3650_v61  ;;  %5791 = vmatprep.subr.mxu0 (%p73_p0), %v5866_v52 }
0x25f0   :  { %5792 = vmatpush3.msra.mxu0 %v3651_v0 }
0x25f1   :  { %5794 = vmatmul.mubr.msk.f32.vlgmr.msra.gmra.mxu0 %vm97_vm1, %v3650_v61 }
0x26b1   :  { %v3732_v2 = vpop.f32.mrf.mxu0 }
0x26b2   :  { %v3733_v3 = vadd.f32 %v3858_v1, %v3732_v2 }
0x26b3   :  { %v5795_v4 = vpop.f32.mrf.mxu0 }
0x26b4   :  { %3737 = vst.msk [vmem:[%s7548_s9] sm:$0xff] %vm3736_vm3, %v3733_v3 }

</bundles_post_ra>
